<compile_context>
chip_gen: v5e
topology: v5e:2x2
jax: 0.10.0
libtpu: 0.0.40
codegen_flags: <defaults>
</compile_context>

<pallas_src>
import functools

import jax
import jax.numpy as jnp
from jax import lax
from jax.experimental import pallas as pl
from jax.experimental.pallas import tpu as pltpu

INPUT_SIZE = 6
HIDDEN_SIZE = 64       # logical hidden size (matches the PyTorch module)
OUTPUT_SIZE = 1
NUM_LAYERS = 2         # hard-wired: two stacked GRU layers + fc_out (module defaults)

HP = 128               # hidden padded to one full 128-lane vreg block
DP = 8                 # input features padded to one sublane group
GP0 = 3 * HP           # layer-0 padded gate width (r | z | n), one 128-lane block per gate
GP1 = 4 * HP           # layer-1 fused gate width (r | z | n_input | n_hidden)


# ----------------------------- Pallas kernel ---------------------------------

def gru_kernel(x_ref,        # (Tt, B, DP)  raw input chunk, time-major, feature-padded
               wih0_ref,     # (DP, GP0)    layer-0 W_ih^T, gate-padded (real cols 0:64/block)
               b0i_ref,      # (1, GP0)     layer-0 b_ih + b_hh(r,z) folded
               whh0_ref,     # (HP, GP0)    layer-0 W_hh^T (rows 0:64 real)
               b0n_ref,      # (1, GP0)     layer-0 b_hn (n block only)
               w1f_ref,      # (HP, GP1)    fused layer-1 [W_ih1; W_hh1] (real cols 64:128/block)
               b1a_ref,      # (1, GP1)     layer-1 r/z folded biases + b_in (n-input block)
               b1hn_ref,     # (1, HP)      layer-1 b_hn (stays inside r*(...))
               wfc_ref,      # (HP, HP)     fc_out weight, rows 64:128, column 0
               bfc_ref,      # (1, HP)      fc_out bias at column 0
               out_ref,      # (B, HP)      output: fc_out(h1_final) in column 0
               h0_scr,       # (B, HP)      carried layer-0 state (real lanes 0:64)
               h1_scr,       # (B, HP)      carried layer-1 state (real lanes 64:128)
               *, seq_len, chunk):
    c = pl.program_id(0)

    @pl.when(c == 0)
    def _init():
        h0_scr[...] = jnp.zeros_like(h0_scr)
        h1_scr[...] = jnp.zeros_like(h1_scr)

    B = x_ref.shape[1]
    wdt = whh0_ref.dtype   # recurrent matmul storage dtype (f32 default, optionally bf16)

    # Bias constants broadcast once per grid step (outside the unrolled recurrence).
    b0i = jnp.broadcast_to(b0i_ref[...], (B, GP0))
    b0n = jnp.broadcast_to(b0n_ref[...], (B, GP0))
    b1a = jnp.broadcast_to(b1a_ref[...], (B, GP1))
    b1hn = jnp.broadcast_to(b1hn_ref[...], (B, HP))

    h0 = h0_scr[...]
    h1 = h1_scr[...]

    mask_tail = (seq_len % chunk) != 0   # static: only a padded tail needs masking

    for t in range(chunk):               # bounded unroll: `chunk` steps per grid iteration
        # Layer-0 input projection: no dependence on h -> hides under the serial chain.
        gi0 = jnp.dot(x_ref[t], wih0_ref[...],
                      preferred_element_type=jnp.float32) + b0i
        # Layer-0 recurrent matmul (serial chain).
        gh0 = jnp.dot(h0.astype(wdt), whh0_ref[...],
                      preferred_element_type=jnp.float32) + b0n
        r0 = jax.nn.sigmoid(gi0[:, 0:HP] + gh0[:, 0:HP])
        z0 = jax.nn.sigmoid(gi0[:, HP:2 * HP] + gh0[:, HP:2 * HP])
        n0 = jnp.tanh(gi0[:, 2 * HP:3 * HP] + r0 * gh0[:, 2 * HP:3 * HP])
        h0n = (1.0 - z0) * n0 + z0 * h0

        # Layer 1: ONE fused matmul. h0n is real in lanes 0:64, h1 real in lanes 64:128
        # (each other's pad lanes are provably zero), so the packed LHS is a plain add.
        g1 = jnp.dot((h0n + h1).astype(wdt), w1f_ref[...],
                     preferred_element_type=jnp.float32) + b1a
        r1 = jax.nn.sigmoid(g1[:, 0:HP])
        z1 = jax.nn.sigmoid(g1[:, HP:2 * HP])
        n1 = jnp.tanh(g1[:, 2 * HP:3 * HP] + r1 * (g1[:, 3 * HP:4 * HP] + b1hn))
        h1n = (1.0 - z1) * n1 + z1 * h1

        if mask_tail:
            valid = (c * chunk + t) < seq_len
            h0 = jnp.where(valid, h0n, h0)
            h1 = jnp.where(valid, h1n, h1)
        else:
            h0, h1 = h0n, h1n

    h0_scr[...] = h0
    h1_scr[...] = h1

    # fc_out epilogue fused into the last grid step (lane-dense (B,128) output).
    @pl.when(c == pl.num_programs(0) - 1)
    def _finalize():
        out_ref[...] = (jnp.dot(h1, wfc_ref[...], preferred_element_type=jnp.float32)
                        + bfc_ref[...])


# ----------------------- weight packing / wrapper -----------------------------

def _pack_layer0(wih0, whh0, bih0, bhh0, dtype):
    H = HIDDEN_SIZE
    wih0_p = jnp.zeros((DP, GP0), jnp.float32)
    whh0_p = jnp.zeros((HP, GP0), jnp.float32)
    b0i = jnp.zeros((1, GP0), jnp.float32)
    b0n = jnp.zeros((1, GP0), jnp.float32)
    for g in range(3):
        cols = slice(g * HP, g * HP + H)
        wih0_p = wih0_p.at[:INPUT_SIZE, cols].set(wih0[:, g * H:(g + 1) * H])
        whh0_p = whh0_p.at[:H, cols].set(whh0[:, g * H:(g + 1) * H])
        if g < 2:   # r, z: b_ih + b_hh fold; n keeps b_hn inside r*(...)
            b0i = b0i.at[:, cols].set(bih0[:, g * H:(g + 1) * H] + bhh0[:, g * H:(g + 1) * H])
        else:
            b0i = b0i.at[:, cols].set(bih0[:, g * H:(g + 1) * H])
            b0n = b0n.at[:, cols].set(bhh0[:, g * H:(g + 1) * H])
    return wih0_p, whh0_p.astype(dtype), b0i, b0n


def _pack_layer1(wih1, whh1, bih1, bhh1, dtype):
    """Fused layer-1 weight: rows 0:64 = W_ih1, rows 64:128 = W_hh1.
    Columns: [r fused | z fused | n_input (W_ih1 only) | n_hidden (W_hh1 only)],
    with real output columns at lanes 64:128 of each 128 block (matches h1 layout)."""
    H = HIDDEN_SIZE
    off = H
    w1f = jnp.zeros((HP, GP1), jnp.float32)
    b1a = jnp.zeros((1, GP1), jnp.float32)
    b1hn = jnp.zeros((1, HP), jnp.float32)
    for g in range(2):   # r, z: input + hidden contributions genuinely summed by the matmul
        cols = slice(g * HP + off, g * HP + off + H)
        w1f = w1f.at[0:H, cols].set(wih1[:, g * H:(g + 1) * H])
        w1f = w1f.at[H:2 * H, cols].set(whh1[:, g * H:(g + 1) * H])
        b1a = b1a.at[:, cols].set(bih1[:, g * H:(g + 1) * H] + bhh1[:, g * H:(g + 1) * H])
    cols_n_in = slice(2 * HP + off, 2 * HP + off + H)
    cols_n_h = slice(3 * HP + off, 3 * HP + off + H)
    w1f = w1f.at[0:H, cols_n_in].set(wih1[:, 2 * H:3 * H])
    w1f = w1f.at[H:2 * H, cols_n_h].set(whh1[:, 2 * H:3 * H])
    b1a = b1a.at[:, cols_n_in].set(bih1[:, 2 * H:3 * H])
    b1hn = b1hn.at[:, off:off + H].set(bhh1[:, 2 * H:3 * H])
    return w1f.astype(dtype), b1a, b1hn


def _pack_fc(wfc, bfc):
    H = HIDDEN_SIZE
    wfc_p = jnp.zeros((HP, HP), jnp.float32).at[H:2 * H, 0:OUTPUT_SIZE].set(wfc)
    bfc_p = jnp.zeros((1, HP), jnp.float32).at[:, 0:OUTPUT_SIZE].set(bfc)
    return wfc_p, bfc_p


def gru_model_forward(x_btd, params, *, chunk=8, matmul_dtype=jnp.float32,
                      vmem_limit_bytes=32 * 1024 * 1024):
    """x_btd: (batch, seq, input_size) float32 -> (batch,) float32 (matches .squeeze())."""
    B, T, D = x_btd.shape
    assert D == INPUT_SIZE
    chunk = max(1, min(chunk, T))
    n_chunks = pl.cdiv(T, chunk)
    t_pad = n_chunks * chunk

    # Time-major, feature-padded input stream (tiny: T*B*DP*4 bytes vs T*B*1536 before).
    x_tbd = jnp.transpose(x_btd, (1, 0, 2)).astype(jnp.float32)
    x_p = jnp.zeros((t_pad, B, DP), jnp.float32).at[:T, :, :D].set(x_tbd)

    wih0_p, whh0_p, b0i, b0n = _pack_layer0(params["wih0"], params["whh0"],
                                            params["bih0"], params["bhh0"], matmul_dtype)
    w1f, b1a, b1hn = _pack_layer1(params["wih1"], params["whh1"],
                                  params["bih1"], params["bhh1"], matmul_dtype)
    wfc_p, bfc_p = _pack_fc(params["wfc"], params["bfc"])

    kernel = functools.partial(gru_kernel, seq_len=T, chunk=chunk)
    const = lambda i: (0, 0)   # weights/biases: same block every grid step (VMEM-resident)

    out = pl.pallas_call(
        kernel,
        out_shape=jax.ShapeDtypeStruct((B, HP), jnp.float32),
        grid_spec=pltpu.PrefetchScalarGridSpec(
            num_scalar_prefetch=0,
            grid=(n_chunks,),
            in_specs=[
                pl.BlockSpec((chunk, B, DP), lambda i: (i, 0, 0)),   # streamed x chunks
                pl.BlockSpec((DP, GP0), const),
                pl.BlockSpec((1, GP0), const),
                pl.BlockSpec((HP, GP0), const),
                pl.BlockSpec((1, GP0), const),
                pl.BlockSpec((HP, GP1), const),
                pl.BlockSpec((1, GP1), const),
                pl.BlockSpec((1, HP), const),
                pl.BlockSpec((HP, HP), const),
                pl.BlockSpec((1, HP), const),
            ],
            out_specs=pl.BlockSpec((B, HP), const),
            scratch_shapes=[pltpu.VMEM((B, HP), jnp.float32),
                            pltpu.VMEM((B, HP), jnp.float32)],
        ),
        compiler_params=pltpu.CompilerParams(
            dimension_semantics=("arbitrary",),     # serial recurrence over time chunks
            vmem_limit_bytes=vmem_limit_bytes,
        ),
    )(x_p, wih0_p, b0i, whh0_p, b0n, w1f, b1a, b1hn, wfc_p, bfc_p)

    # Column 0 holds fc_out(h1 at the last time step); matches PyTorch's .squeeze().
    return jnp.squeeze(out[:, :OUTPUT_SIZE])


# ---------------------------- params & reference ------------------------------

def init_params(key, input_size=INPUT_SIZE, hidden_size=HIDDEN_SIZE,
                output_size=OUTPUT_SIZE):
    """Deterministic uniform(-1/sqrt(H), 1/sqrt(H)) init, mirroring torch.nn.GRU defaults."""
    bound = 1.0 / float(hidden_size) ** 0.5
    keys = jax.random.split(key, 10)

    def u(k, shape):
        return jax.random.uniform(k, shape, jnp.float32, -bound, bound)

    return dict(
        wih0=u(keys[0], (input_size, 3 * hidden_size)),
        whh0=u(keys[1], (hidden_size, 3 * hidden_size)),
        bih0=u(keys[2], (1, 3 * hidden_size)),
        bhh0=u(keys[3], (1, 3 * hidden_size)),
        wih1=u(keys[4], (hidden_size, 3 * hidden_size)),
        whh1=u(keys[5], (hidden_size, 3 * hidden_size)),
        bih1=u(keys[6], (1, 3 * hidden_size)),
        bhh1=u(keys[7], (1, 3 * hidden_size)),
        wfc=u(keys[8], (hidden_size, output_size)),
        bfc=u(keys[9], (1, output_size)),
    )


def gru_model_reference(x_btd, params):
    """Pure-JAX reference implementing the same PyTorch GRU semantics (for validation)."""
    H = HIDDEN_SIZE

    def cell(x_t, h, wih, whh, bih, bhh):
        gi = x_t @ wih + bih
        gh = h @ whh + bhh
        r = jax.nn.sigmoid(gi[:, :H] + gh[:, :H])
        z = jax.nn.sigmoid(gi[:, H:2 * H] + gh[:, H:2 * H])
        n = jnp.tanh(gi[:, 2 * H:] + r * gh[:, 2 * H:])
        return (1.0 - z) * n + z * h

    B = x_btd.shape[0]
    h0 = jnp.zeros((B, H), jnp.float32)
    h1 = jnp.zeros((B, H), jnp.float32)

    def scan_step(carry, x_t):
        h0, h1 = carry
        h0 = cell(x_t, h0, params["wih0"], params["whh0"], params["bih0"], params["bhh0"])
        h1 = cell(h0, h1, params["wih1"], params["whh1"], params["bih1"], params["bhh1"])
        return (h0, h1), None

    (h0, h1), _ = lax.scan(scan_step, (h0, h1), jnp.transpose(x_btd, (1, 0, 2)))
    return jnp.squeeze(h1 @ params["wfc"] + params["bfc"])


if __name__ == "__main__":
    key = jax.random.PRNGKey(0)
    k_x, k_p, k_x2 = jax.random.split(key, 3)

    params = init_params(k_p)

    # Case 1: batch=2, seq=8 (single time chunk).
    batch, seq = 2, 8
    x = jax.random.normal(k_x, (batch, seq, INPUT_SIZE), jnp.float32)
    out = jax.block_until_ready(gru_model_forward(x, params))
    ref = jax.block_until_ready(gru_model_reference(x, params))
    assert out.shape == (batch,), f"unexpected output shape {out.shape}"
    assert jnp.allclose(out, ref, atol=1e-4, rtol=1e-4), (out, ref)

    # Case 2: seq not a multiple of the chunk (exercises multi-chunk grid + tail masking).
    seq2 = 11
    x2 = jax.random.normal(k_x2, (batch, seq2, INPUT_SIZE), jnp.float32)
    out2 = jax.block_until_ready(gru_model_forward(x2, params, chunk=4))
    ref2 = jax.block_until_ready(gru_model_reference(x2, params))
    assert jnp.allclose(out2, ref2, atol=1e-4, rtol=1e-4), (out2, ref2)

    print("KERNEL_OK")
</pallas_src>

<mosaic_0001>
module attributes {stable_mosaic.version = 11 : i64} {
  func.func @gru_kernel(%arg0: i32, %arg1: memref<8x2x8xf32, #tpu.memory_space<vmem>>, %arg2: memref<8x384xf32, #tpu.memory_space<vmem>>, %arg3: memref<1x384xf32, #tpu.memory_space<vmem>>, %arg4: memref<128x384xf32, #tpu.memory_space<vmem>>, %arg5: memref<1x384xf32, #tpu.memory_space<vmem>>, %arg6: memref<128x512xf32, #tpu.memory_space<vmem>>, %arg7: memref<1x512xf32, #tpu.memory_space<vmem>>, %arg8: memref<1x128xf32, #tpu.memory_space<vmem>>, %arg9: memref<128x128xf32, #tpu.memory_space<vmem>>, %arg10: memref<1x128xf32, #tpu.memory_space<vmem>>, %arg11: memref<2x128xf32, #tpu.memory_space<vmem>>, %arg12: memref<2x128xf32, #tpu.memory_space<vmem>>, %arg13: memref<2x128xf32, #tpu.memory_space<vmem>>) attributes {dimension_semantics = [#tpu.dimension_semantics<arbitrary>], iteration_bounds = array<i64: 1>, scalar_prefetch = 0 : i64, scratch_operands = 2 : i64, tpu.core_type = #tpu.core_type<tc>, window_params = [{transform_indices = @transform_0, window_bounds = array<i64: 8, 2, 8>}, {pipeline_mode = #tpu.pipeline_mode<synchronous>, transform_indices = @transform_1, window_bounds = array<i64: 8, 384>}, {pipeline_mode = #tpu.pipeline_mode<synchronous>, transform_indices = @transform_2, window_bounds = array<i64: 1, 384>}, {pipeline_mode = #tpu.pipeline_mode<synchronous>, transform_indices = @transform_3, window_bounds = array<i64: 128, 384>}, {pipeline_mode = #tpu.pipeline_mode<synchronous>, transform_indices = @transform_4, window_bounds = array<i64: 1, 384>}, {pipeline_mode = #tpu.pipeline_mode<synchronous>, transform_indices = @transform_5, window_bounds = array<i64: 128, 512>}, {pipeline_mode = #tpu.pipeline_mode<synchronous>, transform_indices = @transform_6, window_bounds = array<i64: 1, 512>}, {pipeline_mode = #tpu.pipeline_mode<synchronous>, transform_indices = @transform_7, window_bounds = array<i64: 1, 128>}, {pipeline_mode = #tpu.pipeline_mode<synchronous>, transform_indices = @transform_8, window_bounds = array<i64: 128, 128>}, {pipeline_mode = #tpu.pipeline_mode<synchronous>, transform_indices = @transform_9, window_bounds = array<i64: 1, 128>}, {pipeline_mode = #tpu.pipeline_mode<synchronous>, transform_indices = @transform_10, window_bounds = array<i64: 2, 128>}]} {
    %c0_i32 = arith.constant 0 : i32
    %0 = arith.cmpi eq, %arg0, %c0_i32 : i32
    %1 = arith.extui %0 : i1 to i32
    %c0_i32_0 = arith.constant 0 : i32
    %2 = arith.cmpi ne, %1, %c0_i32_0 : i32
    scf.if %2 {
      %cst_154 = arith.constant 0.000000e+00 : f32
      %510 = vector.broadcast %cst_154 : f32 to vector<2x128xf32>
      %c0_155 = arith.constant 0 : index
      %c0_156 = arith.constant 0 : index
      %511 = vector.load %arg12[%c0_155, %c0_156] : memref<2x128xf32, #tpu.memory_space<vmem>>, vector<2x128xf32>
      tpu.vector_store %arg12[%c0_155, %c0_156], %510 {strides = array<i32>} : memref<2x128xf32, #tpu.memory_space<vmem>>, vector<2x128xf32>,
      %cst_157 = arith.constant 0.000000e+00 : f32
      %512 = vector.broadcast %cst_157 : f32 to vector<2x128xf32>
      %c0_158 = arith.constant 0 : index
      %c0_159 = arith.constant 0 : index
      %513 = vector.load %arg13[%c0_158, %c0_159] : memref<2x128xf32, #tpu.memory_space<vmem>>, vector<2x128xf32>
      tpu.vector_store %arg13[%c0_158, %c0_159], %512 {strides = array<i32>} : memref<2x128xf32, #tpu.memory_space<vmem>>, vector<2x128xf32>,
    } else {
    }
    %c0 = arith.constant 0 : index
    %c0_1 = arith.constant 0 : index
    %3 = vector.load %arg3[%c0, %c0_1] : memref<1x384xf32, #tpu.memory_space<vmem>>, vector<1x384xf32>
    %4 = vector.shape_cast %3 : vector<1x384xf32> to vector<1x384xf32>
    %5 = vector.broadcast %4 : vector<1x384xf32> to vector<2x384xf32>
    %c0_2 = arith.constant 0 : index
    %c0_3 = arith.constant 0 : index
    %6 = vector.load %arg5[%c0_2, %c0_3] : memref<1x384xf32, #tpu.memory_space<vmem>>, vector<1x384xf32>
    %7 = vector.shape_cast %6 : vector<1x384xf32> to vector<1x384xf32>
    %8 = vector.broadcast %7 : vector<1x384xf32> to vector<2x384xf32>
    %c0_4 = arith.constant 0 : index
    %c0_5 = arith.constant 0 : index
    %9 = vector.load %arg7[%c0_4, %c0_5] : memref<1x512xf32, #tpu.memory_space<vmem>>, vector<1x512xf32>
    %10 = vector.shape_cast %9 : vector<1x512xf32> to vector<1x512xf32>
    %11 = vector.broadcast %10 : vector<1x512xf32> to vector<2x512xf32>
    %c0_6 = arith.constant 0 : index
    %c0_7 = arith.constant 0 : index
    %12 = vector.load %arg8[%c0_6, %c0_7] : memref<1x128xf32, #tpu.memory_space<vmem>>, vector<1x128xf32>
    %13 = vector.shape_cast %12 : vector<1x128xf32> to vector<1x128xf32>
    %14 = vector.broadcast %13 : vector<1x128xf32> to vector<2x128xf32>
    %c0_8 = arith.constant 0 : index
    %c0_9 = arith.constant 0 : index
    %15 = vector.load %arg12[%c0_8, %c0_9] : memref<2x128xf32, #tpu.memory_space<vmem>>, vector<2x128xf32>
    %c0_10 = arith.constant 0 : index
    %c0_11 = arith.constant 0 : index
    %16 = vector.load %arg13[%c0_10, %c0_11] : memref<2x128xf32, #tpu.memory_space<vmem>>, vector<2x128xf32>
    %c0_12 = arith.constant 0 : index
    %c0_13 = arith.constant 0 : index
    %c0_14 = arith.constant 0 : index
    %17 = vector.load %arg1[%c0_12, %c0_13, %c0_14] : memref<8x2x8xf32, #tpu.memory_space<vmem>>, vector<1x2x8xf32>
    %18 = vector.shape_cast %17 : vector<1x2x8xf32> to vector<2x8xf32>
    %c0_15 = arith.constant 0 : index
    %c0_16 = arith.constant 0 : index
    %19 = vector.load %arg2[%c0_15, %c0_16] : memref<8x384xf32, #tpu.memory_space<vmem>>, vector<8x384xf32>
    %cst = arith.constant dense<0.000000e+00> : vector<2x384xf32>
    %20 = tpu.matmul %18, %19, %cst {dimension_numbers = #tpu.dot_dimension_numbers<[1], [0], [0], [1], [0, 0, 1, 1], [], []>} : vector<2x8xf32>, vector<8x384xf32>, vector<2x384xf32> -> vector<2x384xf32>
    %21 = arith.addf %20, %5 : vector<2x384xf32>
    %c0_17 = arith.constant 0 : index
    %c0_18 = arith.constant 0 : index
    %22 = vector.load %arg4[%c0_17, %c0_18] : memref<128x384xf32, #tpu.memory_space<vmem>>, vector<128x384xf32>
    %cst_19 = arith.constant dense<0.000000e+00> : vector<2x384xf32>
    %23 = tpu.matmul %15, %22, %cst_19 {dimension_numbers = #tpu.dot_dimension_numbers<[1], [0], [0], [1], [0, 0, 1, 1], [], []>} : vector<2x128xf32>, vector<128x384xf32>, vector<2x384xf32> -> vector<2x384xf32>
    %24 = arith.addf %23, %8 : vector<2x384xf32>
    %25 = vector.extract_strided_slice %21 {offsets = [0, 0], sizes = [2, 128], strides = [1, 1]} : vector<2x384xf32> to vector<2x128xf32>
    %26 = vector.extract_strided_slice %24 {offsets = [0, 0], sizes = [2, 128], strides = [1, 1]} : vector<2x384xf32> to vector<2x128xf32>
    %27 = arith.addf %25, %26 : vector<2x128xf32>
    %28 = arith.negf %27 : vector<2x128xf32>
    %29 = math.exp %28 : vector<2x128xf32>
    %cst_20 = arith.constant 1.000000e+00 : f32
    %30 = vector.broadcast %cst_20 : f32 to vector<2x128xf32>
    %31 = arith.addf %30, %29 : vector<2x128xf32>
    %32 = arith.divf %30, %31 : vector<2x128xf32>
    %33 = vector.extract_strided_slice %21 {offsets = [0, 128], sizes = [2, 128], strides = [1, 1]} : vector<2x384xf32> to vector<2x128xf32>
    %34 = vector.extract_strided_slice %24 {offsets = [0, 128], sizes = [2, 128], strides = [1, 1]} : vector<2x384xf32> to vector<2x128xf32>
    %35 = arith.addf %33, %34 : vector<2x128xf32>
    %36 = arith.negf %35 : vector<2x128xf32>
    %37 = math.exp %36 : vector<2x128xf32>
    %cst_21 = arith.constant 1.000000e+00 : f32
    %38 = vector.broadcast %cst_21 : f32 to vector<2x128xf32>
    %39 = arith.addf %38, %37 : vector<2x128xf32>
    %40 = arith.divf %38, %39 : vector<2x128xf32>
    %41 = vector.extract_strided_slice %21 {offsets = [0, 256], sizes = [2, 128], strides = [1, 1]} : vector<2x384xf32> to vector<2x128xf32>
    %42 = vector.extract_strided_slice %24 {offsets = [0, 256], sizes = [2, 128], strides = [1, 1]} : vector<2x384xf32> to vector<2x128xf32>
    %43 = arith.mulf %32, %42 : vector<2x128xf32>
    %44 = arith.addf %41, %43 : vector<2x128xf32>
    %45 = math.tanh %44 : vector<2x128xf32>
    %cst_22 = arith.constant 1.000000e+00 : f32
    %46 = vector.broadcast %cst_22 : f32 to vector<2x128xf32>
    %47 = arith.subf %46, %40 : vector<2x128xf32>
    %48 = arith.mulf %47, %45 : vector<2x128xf32>
    %49 = arith.mulf %40, %15 : vector<2x128xf32>
    %50 = arith.addf %48, %49 : vector<2x128xf32>
    %51 = arith.addf %50, %16 : vector<2x128xf32>
    %c0_23 = arith.constant 0 : index
    %c0_24 = arith.constant 0 : index
    %52 = vector.load %arg6[%c0_23, %c0_24] : memref<128x512xf32, #tpu.memory_space<vmem>>, vector<128x512xf32>
    %cst_25 = arith.constant dense<0.000000e+00> : vector<2x512xf32>
    %53 = tpu.matmul %51, %52, %cst_25 {dimension_numbers = #tpu.dot_dimension_numbers<[1], [0], [0], [1], [0, 0, 1, 1], [], []>} : vector<2x128xf32>, vector<128x512xf32>, vector<2x512xf32> -> vector<2x512xf32>
    %54 = arith.addf %53, %11 : vector<2x512xf32>
    %55 = vector.extract_strided_slice %54 {offsets = [0, 0], sizes = [2, 128], strides = [1, 1]} : vector<2x512xf32> to vector<2x128xf32>
    %56 = arith.negf %55 : vector<2x128xf32>
    %57 = math.exp %56 : vector<2x128xf32>
    %cst_26 = arith.constant 1.000000e+00 : f32
    %58 = vector.broadcast %cst_26 : f32 to vector<2x128xf32>
    %59 = arith.addf %58, %57 : vector<2x128xf32>
    %60 = arith.divf %58, %59 : vector<2x128xf32>
    %61 = vector.extract_strided_slice %54 {offsets = [0, 128], sizes = [2, 128], strides = [1, 1]} : vector<2x512xf32> to vector<2x128xf32>
    %62 = arith.negf %61 : vector<2x128xf32>
    %63 = math.exp %62 : vector<2x128xf32>
    %cst_27 = arith.constant 1.000000e+00 : f32
    %64 = vector.broadcast %cst_27 : f32 to vector<2x128xf32>
    %65 = arith.addf %64, %63 : vector<2x128xf32>
    %66 = arith.divf %64, %65 : vector<2x128xf32>
    %67 = vector.extract_strided_slice %54 {offsets = [0, 256], sizes = [2, 128], strides = [1, 1]} : vector<2x512xf32> to vector<2x128xf32>
    %68 = vector.extract_strided_slice %54 {offsets = [0, 384], sizes = [2, 128], strides = [1, 1]} : vector<2x512xf32> to vector<2x128xf32>
    %69 = arith.addf %68, %14 : vector<2x128xf32>
    %70 = arith.mulf %60, %69 : vector<2x128xf32>
    %71 = arith.addf %67, %70 : vector<2x128xf32>
    %72 = math.tanh %71 : vector<2x128xf32>
    %cst_28 = arith.constant 1.000000e+00 : f32
    %73 = vector.broadcast %cst_28 : f32 to vector<2x128xf32>
    %74 = arith.subf %73, %66 : vector<2x128xf32>
    %75 = arith.mulf %74, %72 : vector<2x128xf32>
    %76 = arith.mulf %66, %16 : vector<2x128xf32>
    %77 = arith.addf %75, %76 : vector<2x128xf32>
    %c1 = arith.constant 1 : index
    %c0_29 = arith.constant 0 : index
    %c0_30 = arith.constant 0 : index
    %78 = vector.load %arg1[%c1, %c0_29, %c0_30] : memref<8x2x8xf32, #tpu.memory_space<vmem>>, vector<1x2x8xf32>
    %79 = vector.shape_cast %78 : vector<1x2x8xf32> to vector<2x8xf32>
    %c0_31 = arith.constant 0 : index
    %c0_32 = arith.constant 0 : index
    %80 = vector.load %arg2[%c0_31, %c0_32] : memref<8x384xf32, #tpu.memory_space<vmem>>, vector<8x384xf32>
    %cst_33 = arith.constant dense<0.000000e+00> : vector<2x384xf32>
    %81 = tpu.matmul %79, %80, %cst_33 {dimension_numbers = #tpu.dot_dimension_numbers<[1], [0], [0], [1], [0, 0, 1, 1], [], []>} : vector<2x8xf32>, vector<8x384xf32>, vector<2x384xf32> -> vector<2x384xf32>
    %82 = arith.addf %81, %5 : vector<2x384xf32>
    %c0_34 = arith.constant 0 : index
    %c0_35 = arith.constant 0 : index
    %83 = vector.load %arg4[%c0_34, %c0_35] : memref<128x384xf32, #tpu.memory_space<vmem>>, vector<128x384xf32>
    %cst_36 = arith.constant dense<0.000000e+00> : vector<2x384xf32>
    %84 = tpu.matmul %50, %83, %cst_36 {dimension_numbers = #tpu.dot_dimension_numbers<[1], [0], [0], [1], [0, 0, 1, 1], [], []>} : vector<2x128xf32>, vector<128x384xf32>, vector<2x384xf32> -> vector<2x384xf32>
    %85 = arith.addf %84, %8 : vector<2x384xf32>
    %86 = vector.extract_strided_slice %82 {offsets = [0, 0], sizes = [2, 128], strides = [1, 1]} : vector<2x384xf32> to vector<2x128xf32>
    %87 = vector.extract_strided_slice %85 {offsets = [0, 0], sizes = [2, 128], strides = [1, 1]} : vector<2x384xf32> to vector<2x128xf32>
    %88 = arith.addf %86, %87 : vector<2x128xf32>
    %89 = arith.negf %88 : vector<2x128xf32>
    %90 = math.exp %89 : vector<2x128xf32>
    %cst_37 = arith.constant 1.000000e+00 : f32
    %91 = vector.broadcast %cst_37 : f32 to vector<2x128xf32>
    %92 = arith.addf %91, %90 : vector<2x128xf32>
    %93 = arith.divf %91, %92 : vector<2x128xf32>
    %94 = vector.extract_strided_slice %82 {offsets = [0, 128], sizes = [2, 128], strides = [1, 1]} : vector<2x384xf32> to vector<2x128xf32>
    %95 = vector.extract_strided_slice %85 {offsets = [0, 128], sizes = [2, 128], strides = [1, 1]} : vector<2x384xf32> to vector<2x128xf32>
    %96 = arith.addf %94, %95 : vector<2x128xf32>
    %97 = arith.negf %96 : vector<2x128xf32>
    %98 = math.exp %97 : vector<2x128xf32>
    %cst_38 = arith.constant 1.000000e+00 : f32
    %99 = vector.broadcast %cst_38 : f32 to vector<2x128xf32>
    %100 = arith.addf %99, %98 : vector<2x128xf32>
    %101 = arith.divf %99, %100 : vector<2x128xf32>
    %102 = vector.extract_strided_slice %82 {offsets = [0, 256], sizes = [2, 128], strides = [1, 1]} : vector<2x384xf32> to vector<2x128xf32>
    %103 = vector.extract_strided_slice %85 {offsets = [0, 256], sizes = [2, 128], strides = [1, 1]} : vector<2x384xf32> to vector<2x128xf32>
    %104 = arith.mulf %93, %103 : vector<2x128xf32>
    %105 = arith.addf %102, %104 : vector<2x128xf32>
    %106 = math.tanh %105 : vector<2x128xf32>
    %cst_39 = arith.constant 1.000000e+00 : f32
    %107 = vector.broadcast %cst_39 : f32 to vector<2x128xf32>
    %108 = arith.subf %107, %101 : vector<2x128xf32>
    %109 = arith.mulf %108, %106 : vector<2x128xf32>
    %110 = arith.mulf %101, %50 : vector<2x128xf32>
    %111 = arith.addf %109, %110 : vector<2x128xf32>
    %112 = arith.addf %111, %77 : vector<2x128xf32>
    %c0_40 = arith.constant 0 : index
    %c0_41 = arith.constant 0 : index
    %113 = vector.load %arg6[%c0_40, %c0_41] : memref<128x512xf32, #tpu.memory_space<vmem>>, vector<128x512xf32>
    %cst_42 = arith.constant dense<0.000000e+00> : vector<2x512xf32>
    %114 = tpu.matmul %112, %113, %cst_42 {dimension_numbers = #tpu.dot_dimension_numbers<[1], [0], [0], [1], [0, 0, 1, 1], [], []>} : vector<2x128xf32>, vector<128x512xf32>, vector<2x512xf32> -> vector<2x512xf32>
    %115 = arith.addf %114, %11 : vector<2x512xf32>
    %116 = vector.extract_strided_slice %115 {offsets = [0, 0], sizes = [2, 128], strides = [1, 1]} : vector<2x512xf32> to vector<2x128xf32>
    %117 = arith.negf %116 : vector<2x128xf32>
    %118 = math.exp %117 : vector<2x128xf32>
    %cst_43 = arith.constant 1.000000e+00 : f32
    %119 = vector.broadcast %cst_43 : f32 to vector<2x128xf32>
    %120 = arith.addf %119, %118 : vector<2x128xf32>
    %121 = arith.divf %119, %120 : vector<2x128xf32>
    %122 = vector.extract_strided_slice %115 {offsets = [0, 128], sizes = [2, 128], strides = [1, 1]} : vector<2x512xf32> to vector<2x128xf32>
    %123 = arith.negf %122 : vector<2x128xf32>
    %124 = math.exp %123 : vector<2x128xf32>
    %cst_44 = arith.constant 1.000000e+00 : f32
    %125 = vector.broadcast %cst_44 : f32 to vector<2x128xf32>
    %126 = arith.addf %125, %124 : vector<2x128xf32>
    %127 = arith.divf %125, %126 : vector<2x128xf32>
    %128 = vector.extract_strided_slice %115 {offsets = [0, 256], sizes = [2, 128], strides = [1, 1]} : vector<2x512xf32> to vector<2x128xf32>
    %129 = vector.extract_strided_slice %115 {offsets = [0, 384], sizes = [2, 128], strides = [1, 1]} : vector<2x512xf32> to vector<2x128xf32>
    %130 = arith.addf %129, %14 : vector<2x128xf32>
    %131 = arith.mulf %121, %130 : vector<2x128xf32>
    %132 = arith.addf %128, %131 : vector<2x128xf32>
    %133 = math.tanh %132 : vector<2x128xf32>
    %cst_45 = arith.constant 1.000000e+00 : f32
    %134 = vector.broadcast %cst_45 : f32 to vector<2x128xf32>
    %135 = arith.subf %134, %127 : vector<2x128xf32>
    %136 = arith.mulf %135, %133 : vector<2x128xf32>
    %137 = arith.mulf %127, %77 : vector<2x128xf32>
    %138 = arith.addf %136, %137 : vector<2x128xf32>
    %c2 = arith.constant 2 : index
    %c0_46 = arith.constant 0 : index
    %c0_47 = arith.constant 0 : index
    %139 = vector.load %arg1[%c2, %c0_46, %c0_47] : memref<8x2x8xf32, #tpu.memory_space<vmem>>, vector<1x2x8xf32>
    %140 = vector.shape_cast %139 : vector<1x2x8xf32> to vector<2x8xf32>
    %c0_48 = arith.constant 0 : index
    %c0_49 = arith.constant 0 : index
    %141 = vector.load %arg2[%c0_48, %c0_49] : memref<8x384xf32, #tpu.memory_space<vmem>>, vector<8x384xf32>
    %cst_50 = arith.constant dense<0.000000e+00> : vector<2x384xf32>
    %142 = tpu.matmul %140, %141, %cst_50 {dimension_numbers = #tpu.dot_dimension_numbers<[1], [0], [0], [1], [0, 0, 1, 1], [], []>} : vector<2x8xf32>, vector<8x384xf32>, vector<2x384xf32> -> vector<2x384xf32>
    %143 = arith.addf %142, %5 : vector<2x384xf32>
    %c0_51 = arith.constant 0 : index
    %c0_52 = arith.constant 0 : index
    %144 = vector.load %arg4[%c0_51, %c0_52] : memref<128x384xf32, #tpu.memory_space<vmem>>, vector<128x384xf32>
    %cst_53 = arith.constant dense<0.000000e+00> : vector<2x384xf32>
    %145 = tpu.matmul %111, %144, %cst_53 {dimension_numbers = #tpu.dot_dimension_numbers<[1], [0], [0], [1], [0, 0, 1, 1], [], []>} : vector<2x128xf32>, vector<128x384xf32>, vector<2x384xf32> -> vector<2x384xf32>
    %146 = arith.addf %145, %8 : vector<2x384xf32>
    %147 = vector.extract_strided_slice %143 {offsets = [0, 0], sizes = [2, 128], strides = [1, 1]} : vector<2x384xf32> to vector<2x128xf32>
    %148 = vector.extract_strided_slice %146 {offsets = [0, 0], sizes = [2, 128], strides = [1, 1]} : vector<2x384xf32> to vector<2x128xf32>
    %149 = arith.addf %147, %148 : vector<2x128xf32>
    %150 = arith.negf %149 : vector<2x128xf32>
    %151 = math.exp %150 : vector<2x128xf32>
    %cst_54 = arith.constant 1.000000e+00 : f32
    %152 = vector.broadcast %cst_54 : f32 to vector<2x128xf32>
    %153 = arith.addf %152, %151 : vector<2x128xf32>
    %154 = arith.divf %152, %153 : vector<2x128xf32>
    %155 = vector.extract_strided_slice %143 {offsets = [0, 128], sizes = [2, 128], strides = [1, 1]} : vector<2x384xf32> to vector<2x128xf32>
    %156 = vector.extract_strided_slice %146 {offsets = [0, 128], sizes = [2, 128], strides = [1, 1]} : vector<2x384xf32> to vector<2x128xf32>
    %157 = arith.addf %155, %156 : vector<2x128xf32>
    %158 = arith.negf %157 : vector<2x128xf32>
    %159 = math.exp %158 : vector<2x128xf32>
    %cst_55 = arith.constant 1.000000e+00 : f32
    %160 = vector.broadcast %cst_55 : f32 to vector<2x128xf32>
    %161 = arith.addf %160, %159 : vector<2x128xf32>
    %162 = arith.divf %160, %161 : vector<2x128xf32>
    %163 = vector.extract_strided_slice %143 {offsets = [0, 256], sizes = [2, 128], strides = [1, 1]} : vector<2x384xf32> to vector<2x128xf32>
    %164 = vector.extract_strided_slice %146 {offsets = [0, 256], sizes = [2, 128], strides = [1, 1]} : vector<2x384xf32> to vector<2x128xf32>
    %165 = arith.mulf %154, %164 : vector<2x128xf32>
    %166 = arith.addf %163, %165 : vector<2x128xf32>
    %167 = math.tanh %166 : vector<2x128xf32>
    %cst_56 = arith.constant 1.000000e+00 : f32
    %168 = vector.broadcast %cst_56 : f32 to vector<2x128xf32>
    %169 = arith.subf %168, %162 : vector<2x128xf32>
    %170 = arith.mulf %169, %167 : vector<2x128xf32>
    %171 = arith.mulf %162, %111 : vector<2x128xf32>
    %172 = arith.addf %170, %171 : vector<2x128xf32>
    %173 = arith.addf %172, %138 : vector<2x128xf32>
    %c0_57 = arith.constant 0 : index
    %c0_58 = arith.constant 0 : index
    %174 = vector.load %arg6[%c0_57, %c0_58] : memref<128x512xf32, #tpu.memory_space<vmem>>, vector<128x512xf32>
    %cst_59 = arith.constant dense<0.000000e+00> : vector<2x512xf32>
    %175 = tpu.matmul %173, %174, %cst_59 {dimension_numbers = #tpu.dot_dimension_numbers<[1], [0], [0], [1], [0, 0, 1, 1], [], []>} : vector<2x128xf32>, vector<128x512xf32>, vector<2x512xf32> -> vector<2x512xf32>
    %176 = arith.addf %175, %11 : vector<2x512xf32>
    %177 = vector.extract_strided_slice %176 {offsets = [0, 0], sizes = [2, 128], strides = [1, 1]} : vector<2x512xf32> to vector<2x128xf32>
    %178 = arith.negf %177 : vector<2x128xf32>
    %179 = math.exp %178 : vector<2x128xf32>
    %cst_60 = arith.constant 1.000000e+00 : f32
    %180 = vector.broadcast %cst_60 : f32 to vector<2x128xf32>
    %181 = arith.addf %180, %179 : vector<2x128xf32>
    %182 = arith.divf %180, %181 : vector<2x128xf32>
    %183 = vector.extract_strided_slice %176 {offsets = [0, 128], sizes = [2, 128], strides = [1, 1]} : vector<2x512xf32> to vector<2x128xf32>
    %184 = arith.negf %183 : vector<2x128xf32>
    %185 = math.exp %184 : vector<2x128xf32>
    %cst_61 = arith.constant 1.000000e+00 : f32
    %186 = vector.broadcast %cst_61 : f32 to vector<2x128xf32>
    %187 = arith.addf %186, %185 : vector<2x128xf32>
    %188 = arith.divf %186, %187 : vector<2x128xf32>
    %189 = vector.extract_strided_slice %176 {offsets = [0, 256], sizes = [2, 128], strides = [1, 1]} : vector<2x512xf32> to vector<2x128xf32>
    %190 = vector.extract_strided_slice %176 {offsets = [0, 384], sizes = [2, 128], strides = [1, 1]} : vector<2x512xf32> to vector<2x128xf32>
    %191 = arith.addf %190, %14 : vector<2x128xf32>
    %192 = arith.mulf %182, %191 : vector<2x128xf32>
    %193 = arith.addf %189, %192 : vector<2x128xf32>
    %194 = math.tanh %193 : vector<2x128xf32>
    %cst_62 = arith.constant 1.000000e+00 : f32
    %195 = vector.broadcast %cst_62 : f32 to vector<2x128xf32>
    %196 = arith.subf %195, %188 : vector<2x128xf32>
    %197 = arith.mulf %196, %194 : vector<2x128xf32>
    %198 = arith.mulf %188, %138 : vector<2x128xf32>
    %199 = arith.addf %197, %198 : vector<2x128xf32>
    %c3 = arith.constant 3 : index
    %c0_63 = arith.constant 0 : index
    %c0_64 = arith.constant 0 : index
    %200 = vector.load %arg1[%c3, %c0_63, %c0_64] : memref<8x2x8xf32, #tpu.memory_space<vmem>>, vector<1x2x8xf32>
    %201 = vector.shape_cast %200 : vector<1x2x8xf32> to vector<2x8xf32>
    %c0_65 = arith.constant 0 : index
    %c0_66 = arith.constant 0 : index
    %202 = vector.load %arg2[%c0_65, %c0_66] : memref<8x384xf32, #tpu.memory_space<vmem>>, vector<8x384xf32>
    %cst_67 = arith.constant dense<0.000000e+00> : vector<2x384xf32>
    %203 = tpu.matmul %201, %202, %cst_67 {dimension_numbers = #tpu.dot_dimension_numbers<[1], [0], [0], [1], [0, 0, 1, 1], [], []>} : vector<2x8xf32>, vector<8x384xf32>, vector<2x384xf32> -> vector<2x384xf32>
    %204 = arith.addf %203, %5 : vector<2x384xf32>
    %c0_68 = arith.constant 0 : index
    %c0_69 = arith.constant 0 : index
    %205 = vector.load %arg4[%c0_68, %c0_69] : memref<128x384xf32, #tpu.memory_space<vmem>>, vector<128x384xf32>
    %cst_70 = arith.constant dense<0.000000e+00> : vector<2x384xf32>
    %206 = tpu.matmul %172, %205, %cst_70 {dimension_numbers = #tpu.dot_dimension_numbers<[1], [0], [0], [1], [0, 0, 1, 1], [], []>} : vector<2x128xf32>, vector<128x384xf32>, vector<2x384xf32> -> vector<2x384xf32>
    %207 = arith.addf %206, %8 : vector<2x384xf32>
    %208 = vector.extract_strided_slice %204 {offsets = [0, 0], sizes = [2, 128], strides = [1, 1]} : vector<2x384xf32> to vector<2x128xf32>
    %209 = vector.extract_strided_slice %207 {offsets = [0, 0], sizes = [2, 128], strides = [1, 1]} : vector<2x384xf32> to vector<2x128xf32>
    %210 = arith.addf %208, %209 : vector<2x128xf32>
    %211 = arith.negf %210 : vector<2x128xf32>
    %212 = math.exp %211 : vector<2x128xf32>
    %cst_71 = arith.constant 1.000000e+00 : f32
    %213 = vector.broadcast %cst_71 : f32 to vector<2x128xf32>
    %214 = arith.addf %213, %212 : vector<2x128xf32>
    %215 = arith.divf %213, %214 : vector<2x128xf32>
    %216 = vector.extract_strided_slice %204 {offsets = [0, 128], sizes = [2, 128], strides = [1, 1]} : vector<2x384xf32> to vector<2x128xf32>
    %217 = vector.extract_strided_slice %207 {offsets = [0, 128], sizes = [2, 128], strides = [1, 1]} : vector<2x384xf32> to vector<2x128xf32>
    %218 = arith.addf %216, %217 : vector<2x128xf32>
    %219 = arith.negf %218 : vector<2x128xf32>
    %220 = math.exp %219 : vector<2x128xf32>
    %cst_72 = arith.constant 1.000000e+00 : f32
    %221 = vector.broadcast %cst_72 : f32 to vector<2x128xf32>
    %222 = arith.addf %221, %220 : vector<2x128xf32>
    %223 = arith.divf %221, %222 : vector<2x128xf32>
    %224 = vector.extract_strided_slice %204 {offsets = [0, 256], sizes = [2, 128], strides = [1, 1]} : vector<2x384xf32> to vector<2x128xf32>
    %225 = vector.extract_strided_slice %207 {offsets = [0, 256], sizes = [2, 128], strides = [1, 1]} : vector<2x384xf32> to vector<2x128xf32>
    %226 = arith.mulf %215, %225 : vector<2x128xf32>
    %227 = arith.addf %224, %226 : vector<2x128xf32>
    %228 = math.tanh %227 : vector<2x128xf32>
    %cst_73 = arith.constant 1.000000e+00 : f32
    %229 = vector.broadcast %cst_73 : f32 to vector<2x128xf32>
    %230 = arith.subf %229, %223 : vector<2x128xf32>
    %231 = arith.mulf %230, %228 : vector<2x128xf32>
    %232 = arith.mulf %223, %172 : vector<2x128xf32>
    %233 = arith.addf %231, %232 : vector<2x128xf32>
    %234 = arith.addf %233, %199 : vector<2x128xf32>
    %c0_74 = arith.constant 0 : index
    %c0_75 = arith.constant 0 : index
    %235 = vector.load %arg6[%c0_74, %c0_75] : memref<128x512xf32, #tpu.memory_space<vmem>>, vector<128x512xf32>
    %cst_76 = arith.constant dense<0.000000e+00> : vector<2x512xf32>
    %236 = tpu.matmul %234, %235, %cst_76 {dimension_numbers = #tpu.dot_dimension_numbers<[1], [0], [0], [1], [0, 0, 1, 1], [], []>} : vector<2x128xf32>, vector<128x512xf32>, vector<2x512xf32> -> vector<2x512xf32>
    %237 = arith.addf %236, %11 : vector<2x512xf32>
    %238 = vector.extract_strided_slice %237 {offsets = [0, 0], sizes = [2, 128], strides = [1, 1]} : vector<2x512xf32> to vector<2x128xf32>
    %239 = arith.negf %238 : vector<2x128xf32>
    %240 = math.exp %239 : vector<2x128xf32>
    %cst_77 = arith.constant 1.000000e+00 : f32
    %241 = vector.broadcast %cst_77 : f32 to vector<2x128xf32>
    %242 = arith.addf %241, %240 : vector<2x128xf32>
    %243 = arith.divf %241, %242 : vector<2x128xf32>
    %244 = vector.extract_strided_slice %237 {offsets = [0, 128], sizes = [2, 128], strides = [1, 1]} : vector<2x512xf32> to vector<2x128xf32>
    %245 = arith.negf %244 : vector<2x128xf32>
    %246 = math.exp %245 : vector<2x128xf32>
    %cst_78 = arith.constant 1.000000e+00 : f32
    %247 = vector.broadcast %cst_78 : f32 to vector<2x128xf32>
    %248 = arith.addf %247, %246 : vector<2x128xf32>
    %249 = arith.divf %247, %248 : vector<2x128xf32>
    %250 = vector.extract_strided_slice %237 {offsets = [0, 256], sizes = [2, 128], strides = [1, 1]} : vector<2x512xf32> to vector<2x128xf32>
    %251 = vector.extract_strided_slice %237 {offsets = [0, 384], sizes = [2, 128], strides = [1, 1]} : vector<2x512xf32> to vector<2x128xf32>
    %252 = arith.addf %251, %14 : vector<2x128xf32>
    %253 = arith.mulf %243, %252 : vector<2x128xf32>
    %254 = arith.addf %250, %253 : vector<2x128xf32>
    %255 = math.tanh %254 : vector<2x128xf32>
    %cst_79 = arith.constant 1.000000e+00 : f32
    %256 = vector.broadcast %cst_79 : f32 to vector<2x128xf32>
    %257 = arith.subf %256, %249 : vector<2x128xf32>
    %258 = arith.mulf %257, %255 : vector<2x128xf32>
    %259 = arith.mulf %249, %199 : vector<2x128xf32>
    %260 = arith.addf %258, %259 : vector<2x128xf32>
    %c4 = arith.constant 4 : index
    %c0_80 = arith.constant 0 : index
    %c0_81 = arith.constant 0 : index
    %261 = vector.load %arg1[%c4, %c0_80, %c0_81] : memref<8x2x8xf32, #tpu.memory_space<vmem>>, vector<1x2x8xf32>
    %262 = vector.shape_cast %261 : vector<1x2x8xf32> to vector<2x8xf32>
    %c0_82 = arith.constant 0 : index
    %c0_83 = arith.constant 0 : index
    %263 = vector.load %arg2[%c0_82, %c0_83] : memref<8x384xf32, #tpu.memory_space<vmem>>, vector<8x384xf32>
    %cst_84 = arith.constant dense<0.000000e+00> : vector<2x384xf32>
    %264 = tpu.matmul %262, %263, %cst_84 {dimension_numbers = #tpu.dot_dimension_numbers<[1], [0], [0], [1], [0, 0, 1, 1], [], []>} : vector<2x8xf32>, vector<8x384xf32>, vector<2x384xf32> -> vector<2x384xf32>
    %265 = arith.addf %264, %5 : vector<2x384xf32>
    %c0_85 = arith.constant 0 : index
    %c0_86 = arith.constant 0 : index
    %266 = vector.load %arg4[%c0_85, %c0_86] : memref<128x384xf32, #tpu.memory_space<vmem>>, vector<128x384xf32>
    %cst_87 = arith.constant dense<0.000000e+00> : vector<2x384xf32>
    %267 = tpu.matmul %233, %266, %cst_87 {dimension_numbers = #tpu.dot_dimension_numbers<[1], [0], [0], [1], [0, 0, 1, 1], [], []>} : vector<2x128xf32>, vector<128x384xf32>, vector<2x384xf32> -> vector<2x384xf32>
    %268 = arith.addf %267, %8 : vector<2x384xf32>
    %269 = vector.extract_strided_slice %265 {offsets = [0, 0], sizes = [2, 128], strides = [1, 1]} : vector<2x384xf32> to vector<2x128xf32>
    %270 = vector.extract_strided_slice %268 {offsets = [0, 0], sizes = [2, 128], strides = [1, 1]} : vector<2x384xf32> to vector<2x128xf32>
    %271 = arith.addf %269, %270 : vector<2x128xf32>
    %272 = arith.negf %271 : vector<2x128xf32>
    %273 = math.exp %272 : vector<2x128xf32>
    %cst_88 = arith.constant 1.000000e+00 : f32
    %274 = vector.broadcast %cst_88 : f32 to vector<2x128xf32>
    %275 = arith.addf %274, %273 : vector<2x128xf32>
    %276 = arith.divf %274, %275 : vector<2x128xf32>
    %277 = vector.extract_strided_slice %265 {offsets = [0, 128], sizes = [2, 128], strides = [1, 1]} : vector<2x384xf32> to vector<2x128xf32>
    %278 = vector.extract_strided_slice %268 {offsets = [0, 128], sizes = [2, 128], strides = [1, 1]} : vector<2x384xf32> to vector<2x128xf32>
    %279 = arith.addf %277, %278 : vector<2x128xf32>
    %280 = arith.negf %279 : vector<2x128xf32>
    %281 = math.exp %280 : vector<2x128xf32>
    %cst_89 = arith.constant 1.000000e+00 : f32
    %282 = vector.broadcast %cst_89 : f32 to vector<2x128xf32>
    %283 = arith.addf %282, %281 : vector<2x128xf32>
    %284 = arith.divf %282, %283 : vector<2x128xf32>
    %285 = vector.extract_strided_slice %265 {offsets = [0, 256], sizes = [2, 128], strides = [1, 1]} : vector<2x384xf32> to vector<2x128xf32>
    %286 = vector.extract_strided_slice %268 {offsets = [0, 256], sizes = [2, 128], strides = [1, 1]} : vector<2x384xf32> to vector<2x128xf32>
    %287 = arith.mulf %276, %286 : vector<2x128xf32>
    %288 = arith.addf %285, %287 : vector<2x128xf32>
    %289 = math.tanh %288 : vector<2x128xf32>
    %cst_90 = arith.constant 1.000000e+00 : f32
    %290 = vector.broadcast %cst_90 : f32 to vector<2x128xf32>
    %291 = arith.subf %290, %284 : vector<2x128xf32>
    %292 = arith.mulf %291, %289 : vector<2x128xf32>
    %293 = arith.mulf %284, %233 : vector<2x128xf32>
    %294 = arith.addf %292, %293 : vector<2x128xf32>
    %295 = arith.addf %294, %260 : vector<2x128xf32>
    %c0_91 = arith.constant 0 : index
    %c0_92 = arith.constant 0 : index
    %296 = vector.load %arg6[%c0_91, %c0_92] : memref<128x512xf32, #tpu.memory_space<vmem>>, vector<128x512xf32>
    %cst_93 = arith.constant dense<0.000000e+00> : vector<2x512xf32>
    %297 = tpu.matmul %295, %296, %cst_93 {dimension_numbers = #tpu.dot_dimension_numbers<[1], [0], [0], [1], [0, 0, 1, 1], [], []>} : vector<2x128xf32>, vector<128x512xf32>, vector<2x512xf32> -> vector<2x512xf32>
    %298 = arith.addf %297, %11 : vector<2x512xf32>
    %299 = vector.extract_strided_slice %298 {offsets = [0, 0], sizes = [2, 128], strides = [1, 1]} : vector<2x512xf32> to vector<2x128xf32>
    %300 = arith.negf %299 : vector<2x128xf32>
    %301 = math.exp %300 : vector<2x128xf32>
    %cst_94 = arith.constant 1.000000e+00 : f32
    %302 = vector.broadcast %cst_94 : f32 to vector<2x128xf32>
    %303 = arith.addf %302, %301 : vector<2x128xf32>
    %304 = arith.divf %302, %303 : vector<2x128xf32>
    %305 = vector.extract_strided_slice %298 {offsets = [0, 128], sizes = [2, 128], strides = [1, 1]} : vector<2x512xf32> to vector<2x128xf32>
    %306 = arith.negf %305 : vector<2x128xf32>
    %307 = math.exp %306 : vector<2x128xf32>
    %cst_95 = arith.constant 1.000000e+00 : f32
    %308 = vector.broadcast %cst_95 : f32 to vector<2x128xf32>
    %309 = arith.addf %308, %307 : vector<2x128xf32>
    %310 = arith.divf %308, %309 : vector<2x128xf32>
    %311 = vector.extract_strided_slice %298 {offsets = [0, 256], sizes = [2, 128], strides = [1, 1]} : vector<2x512xf32> to vector<2x128xf32>
    %312 = vector.extract_strided_slice %298 {offsets = [0, 384], sizes = [2, 128], strides = [1, 1]} : vector<2x512xf32> to vector<2x128xf32>
    %313 = arith.addf %312, %14 : vector<2x128xf32>
    %314 = arith.mulf %304, %313 : vector<2x128xf32>
    %315 = arith.addf %311, %314 : vector<2x128xf32>
    %316 = math.tanh %315 : vector<2x128xf32>
    %cst_96 = arith.constant 1.000000e+00 : f32
    %317 = vector.broadcast %cst_96 : f32 to vector<2x128xf32>
    %318 = arith.subf %317, %310 : vector<2x128xf32>
    %319 = arith.mulf %318, %316 : vector<2x128xf32>
    %320 = arith.mulf %310, %260 : vector<2x128xf32>
    %321 = arith.addf %319, %320 : vector<2x128xf32>
    %c5 = arith.constant 5 : index
    %c0_97 = arith.constant 0 : index
    %c0_98 = arith.constant 0 : index
    %322 = vector.load %arg1[%c5, %c0_97, %c0_98] : memref<8x2x8xf32, #tpu.memory_space<vmem>>, vector<1x2x8xf32>
    %323 = vector.shape_cast %322 : vector<1x2x8xf32> to vector<2x8xf32>
    %c0_99 = arith.constant 0 : index
    %c0_100 = arith.constant 0 : index
    %324 = vector.load %arg2[%c0_99, %c0_100] : memref<8x384xf32, #tpu.memory_space<vmem>>, vector<8x384xf32>
    %cst_101 = arith.constant dense<0.000000e+00> : vector<2x384xf32>
    %325 = tpu.matmul %323, %324, %cst_101 {dimension_numbers = #tpu.dot_dimension_numbers<[1], [0], [0], [1], [0, 0, 1, 1], [], []>} : vector<2x8xf32>, vector<8x384xf32>, vector<2x384xf32> -> vector<2x384xf32>
    %326 = arith.addf %325, %5 : vector<2x384xf32>
    %c0_102 = arith.constant 0 : index
    %c0_103 = arith.constant 0 : index
    %327 = vector.load %arg4[%c0_102, %c0_103] : memref<128x384xf32, #tpu.memory_space<vmem>>, vector<128x384xf32>
    %cst_104 = arith.constant dense<0.000000e+00> : vector<2x384xf32>
    %328 = tpu.matmul %294, %327, %cst_104 {dimension_numbers = #tpu.dot_dimension_numbers<[1], [0], [0], [1], [0, 0, 1, 1], [], []>} : vector<2x128xf32>, vector<128x384xf32>, vector<2x384xf32> -> vector<2x384xf32>
    %329 = arith.addf %328, %8 : vector<2x384xf32>
    %330 = vector.extract_strided_slice %326 {offsets = [0, 0], sizes = [2, 128], strides = [1, 1]} : vector<2x384xf32> to vector<2x128xf32>
    %331 = vector.extract_strided_slice %329 {offsets = [0, 0], sizes = [2, 128], strides = [1, 1]} : vector<2x384xf32> to vector<2x128xf32>
    %332 = arith.addf %330, %331 : vector<2x128xf32>
    %333 = arith.negf %332 : vector<2x128xf32>
    %334 = math.exp %333 : vector<2x128xf32>
    %cst_105 = arith.constant 1.000000e+00 : f32
    %335 = vector.broadcast %cst_105 : f32 to vector<2x128xf32>
    %336 = arith.addf %335, %334 : vector<2x128xf32>
    %337 = arith.divf %335, %336 : vector<2x128xf32>
    %338 = vector.extract_strided_slice %326 {offsets = [0, 128], sizes = [2, 128], strides = [1, 1]} : vector<2x384xf32> to vector<2x128xf32>
    %339 = vector.extract_strided_slice %329 {offsets = [0, 128], sizes = [2, 128], strides = [1, 1]} : vector<2x384xf32> to vector<2x128xf32>
    %340 = arith.addf %338, %339 : vector<2x128xf32>
    %341 = arith.negf %340 : vector<2x128xf32>
    %342 = math.exp %341 : vector<2x128xf32>
    %cst_106 = arith.constant 1.000000e+00 : f32
    %343 = vector.broadcast %cst_106 : f32 to vector<2x128xf32>
    %344 = arith.addf %343, %342 : vector<2x128xf32>
    %345 = arith.divf %343, %344 : vector<2x128xf32>
    %346 = vector.extract_strided_slice %326 {offsets = [0, 256], sizes = [2, 128], strides = [1, 1]} : vector<2x384xf32> to vector<2x128xf32>
    %347 = vector.extract_strided_slice %329 {offsets = [0, 256], sizes = [2, 128], strides = [1, 1]} : vector<2x384xf32> to vector<2x128xf32>
    %348 = arith.mulf %337, %347 : vector<2x128xf32>
    %349 = arith.addf %346, %348 : vector<2x128xf32>
    %350 = math.tanh %349 : vector<2x128xf32>
    %cst_107 = arith.constant 1.000000e+00 : f32
    %351 = vector.broadcast %cst_107 : f32 to vector<2x128xf32>
    %352 = arith.subf %351, %345 : vector<2x128xf32>
    %353 = arith.mulf %352, %350 : vector<2x128xf32>
    %354 = arith.mulf %345, %294 : vector<2x128xf32>
    %355 = arith.addf %353, %354 : vector<2x128xf32>
    %356 = arith.addf %355, %321 : vector<2x128xf32>
    %c0_108 = arith.constant 0 : index
    %c0_109 = arith.constant 0 : index
    %357 = vector.load %arg6[%c0_108, %c0_109] : memref<128x512xf32, #tpu.memory_space<vmem>>, vector<128x512xf32>
    %cst_110 = arith.constant dense<0.000000e+00> : vector<2x512xf32>
    %358 = tpu.matmul %356, %357, %cst_110 {dimension_numbers = #tpu.dot_dimension_numbers<[1], [0], [0], [1], [0, 0, 1, 1], [], []>} : vector<2x128xf32>, vector<128x512xf32>, vector<2x512xf32> -> vector<2x512xf32>
    %359 = arith.addf %358, %11 : vector<2x512xf32>
    %360 = vector.extract_strided_slice %359 {offsets = [0, 0], sizes = [2, 128], strides = [1, 1]} : vector<2x512xf32> to vector<2x128xf32>
    %361 = arith.negf %360 : vector<2x128xf32>
    %362 = math.exp %361 : vector<2x128xf32>
    %cst_111 = arith.constant 1.000000e+00 : f32
    %363 = vector.broadcast %cst_111 : f32 to vector<2x128xf32>
    %364 = arith.addf %363, %362 : vector<2x128xf32>
    %365 = arith.divf %363, %364 : vector<2x128xf32>
    %366 = vector.extract_strided_slice %359 {offsets = [0, 128], sizes = [2, 128], strides = [1, 1]} : vector<2x512xf32> to vector<2x128xf32>
    %367 = arith.negf %366 : vector<2x128xf32>
    %368 = math.exp %367 : vector<2x128xf32>
    %cst_112 = arith.constant 1.000000e+00 : f32
    %369 = vector.broadcast %cst_112 : f32 to vector<2x128xf32>
    %370 = arith.addf %369, %368 : vector<2x128xf32>
    %371 = arith.divf %369, %370 : vector<2x128xf32>
    %372 = vector.extract_strided_slice %359 {offsets = [0, 256], sizes = [2, 128], strides = [1, 1]} : vector<2x512xf32> to vector<2x128xf32>
    %373 = vector.extract_strided_slice %359 {offsets = [0, 384], sizes = [2, 128], strides = [1, 1]} : vector<2x512xf32> to vector<2x128xf32>
    %374 = arith.addf %373, %14 : vector<2x128xf32>
    %375 = arith.mulf %365, %374 : vector<2x128xf32>
    %376 = arith.addf %372, %375 : vector<2x128xf32>
    %377 = math.tanh %376 : vector<2x128xf32>
    %cst_113 = arith.constant 1.000000e+00 : f32
    %378 = vector.broadcast %cst_113 : f32 to vector<2x128xf32>
    %379 = arith.subf %378, %371 : vector<2x128xf32>
    %380 = arith.mulf %379, %377 : vector<2x128xf32>
    %381 = arith.mulf %371, %321 : vector<2x128xf32>
    %382 = arith.addf %380, %381 : vector<2x128xf32>
    %c6 = arith.constant 6 : index
    %c0_114 = arith.constant 0 : index
    %c0_115 = arith.constant 0 : index
    %383 = vector.load %arg1[%c6, %c0_114, %c0_115] : memref<8x2x8xf32, #tpu.memory_space<vmem>>, vector<1x2x8xf32>
    %384 = vector.shape_cast %383 : vector<1x2x8xf32> to vector<2x8xf32>
    %c0_116 = arith.constant 0 : index
    %c0_117 = arith.constant 0 : index
    %385 = vector.load %arg2[%c0_116, %c0_117] : memref<8x384xf32, #tpu.memory_space<vmem>>, vector<8x384xf32>
    %cst_118 = arith.constant dense<0.000000e+00> : vector<2x384xf32>
    %386 = tpu.matmul %384, %385, %cst_118 {dimension_numbers = #tpu.dot_dimension_numbers<[1], [0], [0], [1], [0, 0, 1, 1], [], []>} : vector<2x8xf32>, vector<8x384xf32>, vector<2x384xf32> -> vector<2x384xf32>
    %387 = arith.addf %386, %5 : vector<2x384xf32>
    %c0_119 = arith.constant 0 : index
    %c0_120 = arith.constant 0 : index
    %388 = vector.load %arg4[%c0_119, %c0_120] : memref<128x384xf32, #tpu.memory_space<vmem>>, vector<128x384xf32>
    %cst_121 = arith.constant dense<0.000000e+00> : vector<2x384xf32>
    %389 = tpu.matmul %355, %388, %cst_121 {dimension_numbers = #tpu.dot_dimension_numbers<[1], [0], [0], [1], [0, 0, 1, 1], [], []>} : vector<2x128xf32>, vector<128x384xf32>, vector<2x384xf32> -> vector<2x384xf32>
    %390 = arith.addf %389, %8 : vector<2x384xf32>
    %391 = vector.extract_strided_slice %387 {offsets = [0, 0], sizes = [2, 128], strides = [1, 1]} : vector<2x384xf32> to vector<2x128xf32>
    %392 = vector.extract_strided_slice %390 {offsets = [0, 0], sizes = [2, 128], strides = [1, 1]} : vector<2x384xf32> to vector<2x128xf32>
    %393 = arith.addf %391, %392 : vector<2x128xf32>
    %394 = arith.negf %393 : vector<2x128xf32>
    %395 = math.exp %394 : vector<2x128xf32>
    %cst_122 = arith.constant 1.000000e+00 : f32
    %396 = vector.broadcast %cst_122 : f32 to vector<2x128xf32>
    %397 = arith.addf %396, %395 : vector<2x128xf32>
    %398 = arith.divf %396, %397 : vector<2x128xf32>
    %399 = vector.extract_strided_slice %387 {offsets = [0, 128], sizes = [2, 128], strides = [1, 1]} : vector<2x384xf32> to vector<2x128xf32>
    %400 = vector.extract_strided_slice %390 {offsets = [0, 128], sizes = [2, 128], strides = [1, 1]} : vector<2x384xf32> to vector<2x128xf32>
    %401 = arith.addf %399, %400 : vector<2x128xf32>
    %402 = arith.negf %401 : vector<2x128xf32>
    %403 = math.exp %402 : vector<2x128xf32>
    %cst_123 = arith.constant 1.000000e+00 : f32
    %404 = vector.broadcast %cst_123 : f32 to vector<2x128xf32>
    %405 = arith.addf %404, %403 : vector<2x128xf32>
    %406 = arith.divf %404, %405 : vector<2x128xf32>
    %407 = vector.extract_strided_slice %387 {offsets = [0, 256], sizes = [2, 128], strides = [1, 1]} : vector<2x384xf32> to vector<2x128xf32>
    %408 = vector.extract_strided_slice %390 {offsets = [0, 256], sizes = [2, 128], strides = [1, 1]} : vector<2x384xf32> to vector<2x128xf32>
    %409 = arith.mulf %398, %408 : vector<2x128xf32>
    %410 = arith.addf %407, %409 : vector<2x128xf32>
    %411 = math.tanh %410 : vector<2x128xf32>
    %cst_124 = arith.constant 1.000000e+00 : f32
    %412 = vector.broadcast %cst_124 : f32 to vector<2x128xf32>
    %413 = arith.subf %412, %406 : vector<2x128xf32>
    %414 = arith.mulf %413, %411 : vector<2x128xf32>
    %415 = arith.mulf %406, %355 : vector<2x128xf32>
    %416 = arith.addf %414, %415 : vector<2x128xf32>
    %417 = arith.addf %416, %382 : vector<2x128xf32>
    %c0_125 = arith.constant 0 : index
    %c0_126 = arith.constant 0 : index
    %418 = vector.load %arg6[%c0_125, %c0_126] : memref<128x512xf32, #tpu.memory_space<vmem>>, vector<128x512xf32>
    %cst_127 = arith.constant dense<0.000000e+00> : vector<2x512xf32>
    %419 = tpu.matmul %417, %418, %cst_127 {dimension_numbers = #tpu.dot_dimension_numbers<[1], [0], [0], [1], [0, 0, 1, 1], [], []>} : vector<2x128xf32>, vector<128x512xf32>, vector<2x512xf32> -> vector<2x512xf32>
    %420 = arith.addf %419, %11 : vector<2x512xf32>
    %421 = vector.extract_strided_slice %420 {offsets = [0, 0], sizes = [2, 128], strides = [1, 1]} : vector<2x512xf32> to vector<2x128xf32>
    %422 = arith.negf %421 : vector<2x128xf32>
    %423 = math.exp %422 : vector<2x128xf32>
    %cst_128 = arith.constant 1.000000e+00 : f32
    %424 = vector.broadcast %cst_128 : f32 to vector<2x128xf32>
    %425 = arith.addf %424, %423 : vector<2x128xf32>
    %426 = arith.divf %424, %425 : vector<2x128xf32>
    %427 = vector.extract_strided_slice %420 {offsets = [0, 128], sizes = [2, 128], strides = [1, 1]} : vector<2x512xf32> to vector<2x128xf32>
    %428 = arith.negf %427 : vector<2x128xf32>
    %429 = math.exp %428 : vector<2x128xf32>
    %cst_129 = arith.constant 1.000000e+00 : f32
    %430 = vector.broadcast %cst_129 : f32 to vector<2x128xf32>
    %431 = arith.addf %430, %429 : vector<2x128xf32>
    %432 = arith.divf %430, %431 : vector<2x128xf32>
    %433 = vector.extract_strided_slice %420 {offsets = [0, 256], sizes = [2, 128], strides = [1, 1]} : vector<2x512xf32> to vector<2x128xf32>
    %434 = vector.extract_strided_slice %420 {offsets = [0, 384], sizes = [2, 128], strides = [1, 1]} : vector<2x512xf32> to vector<2x128xf32>
    %435 = arith.addf %434, %14 : vector<2x128xf32>
    %436 = arith.mulf %426, %435 : vector<2x128xf32>
    %437 = arith.addf %433, %436 : vector<2x128xf32>
    %438 = math.tanh %437 : vector<2x128xf32>
    %cst_130 = arith.constant 1.000000e+00 : f32
    %439 = vector.broadcast %cst_130 : f32 to vector<2x128xf32>
    %440 = arith.subf %439, %432 : vector<2x128xf32>
    %441 = arith.mulf %440, %438 : vector<2x128xf32>
    %442 = arith.mulf %432, %382 : vector<2x128xf32>
    %443 = arith.addf %441, %442 : vector<2x128xf32>
    %c7 = arith.constant 7 : index
    %c0_131 = arith.constant 0 : index
    %c0_132 = arith.constant 0 : index
    %444 = vector.load %arg1[%c7, %c0_131, %c0_132] : memref<8x2x8xf32, #tpu.memory_space<vmem>>, vector<1x2x8xf32>
    %445 = vector.shape_cast %444 : vector<1x2x8xf32> to vector<2x8xf32>
    %c0_133 = arith.constant 0 : index
    %c0_134 = arith.constant 0 : index
    %446 = vector.load %arg2[%c0_133, %c0_134] : memref<8x384xf32, #tpu.memory_space<vmem>>, vector<8x384xf32>
    %cst_135 = arith.constant dense<0.000000e+00> : vector<2x384xf32>
    %447 = tpu.matmul %445, %446, %cst_135 {dimension_numbers = #tpu.dot_dimension_numbers<[1], [0], [0], [1], [0, 0, 1, 1], [], []>} : vector<2x8xf32>, vector<8x384xf32>, vector<2x384xf32> -> vector<2x384xf32>
    %448 = arith.addf %447, %5 : vector<2x384xf32>
    %c0_136 = arith.constant 0 : index
    %c0_137 = arith.constant 0 : index
    %449 = vector.load %arg4[%c0_136, %c0_137] : memref<128x384xf32, #tpu.memory_space<vmem>>, vector<128x384xf32>
    %cst_138 = arith.constant dense<0.000000e+00> : vector<2x384xf32>
    %450 = tpu.matmul %416, %449, %cst_138 {dimension_numbers = #tpu.dot_dimension_numbers<[1], [0], [0], [1], [0, 0, 1, 1], [], []>} : vector<2x128xf32>, vector<128x384xf32>, vector<2x384xf32> -> vector<2x384xf32>
    %451 = arith.addf %450, %8 : vector<2x384xf32>
    %452 = vector.extract_strided_slice %448 {offsets = [0, 0], sizes = [2, 128], strides = [1, 1]} : vector<2x384xf32> to vector<2x128xf32>
    %453 = vector.extract_strided_slice %451 {offsets = [0, 0], sizes = [2, 128], strides = [1, 1]} : vector<2x384xf32> to vector<2x128xf32>
    %454 = arith.addf %452, %453 : vector<2x128xf32>
    %455 = arith.negf %454 : vector<2x128xf32>
    %456 = math.exp %455 : vector<2x128xf32>
    %cst_139 = arith.constant 1.000000e+00 : f32
    %457 = vector.broadcast %cst_139 : f32 to vector<2x128xf32>
    %458 = arith.addf %457, %456 : vector<2x128xf32>
    %459 = arith.divf %457, %458 : vector<2x128xf32>
    %460 = vector.extract_strided_slice %448 {offsets = [0, 128], sizes = [2, 128], strides = [1, 1]} : vector<2x384xf32> to vector<2x128xf32>
    %461 = vector.extract_strided_slice %451 {offsets = [0, 128], sizes = [2, 128], strides = [1, 1]} : vector<2x384xf32> to vector<2x128xf32>
    %462 = arith.addf %460, %461 : vector<2x128xf32>
    %463 = arith.negf %462 : vector<2x128xf32>
    %464 = math.exp %463 : vector<2x128xf32>
    %cst_140 = arith.constant 1.000000e+00 : f32
    %465 = vector.broadcast %cst_140 : f32 to vector<2x128xf32>
    %466 = arith.addf %465, %464 : vector<2x128xf32>
    %467 = arith.divf %465, %466 : vector<2x128xf32>
    %468 = vector.extract_strided_slice %448 {offsets = [0, 256], sizes = [2, 128], strides = [1, 1]} : vector<2x384xf32> to vector<2x128xf32>
    %469 = vector.extract_strided_slice %451 {offsets = [0, 256], sizes = [2, 128], strides = [1, 1]} : vector<2x384xf32> to vector<2x128xf32>
    %470 = arith.mulf %459, %469 : vector<2x128xf32>
    %471 = arith.addf %468, %470 : vector<2x128xf32>
    %472 = math.tanh %471 : vector<2x128xf32>
    %cst_141 = arith.constant 1.000000e+00 : f32
    %473 = vector.broadcast %cst_141 : f32 to vector<2x128xf32>
    %474 = arith.subf %473, %467 : vector<2x128xf32>
    %475 = arith.mulf %474, %472 : vector<2x128xf32>
    %476 = arith.mulf %467, %416 : vector<2x128xf32>
    %477 = arith.addf %475, %476 : vector<2x128xf32>
    %478 = arith.addf %477, %443 : vector<2x128xf32>
    %c0_142 = arith.constant 0 : index
    %c0_143 = arith.constant 0 : index
    %479 = vector.load %arg6[%c0_142, %c0_143] : memref<128x512xf32, #tpu.memory_space<vmem>>, vector<128x512xf32>
    %cst_144 = arith.constant dense<0.000000e+00> : vector<2x512xf32>
    %480 = tpu.matmul %478, %479, %cst_144 {dimension_numbers = #tpu.dot_dimension_numbers<[1], [0], [0], [1], [0, 0, 1, 1], [], []>} : vector<2x128xf32>, vector<128x512xf32>, vector<2x512xf32> -> vector<2x512xf32>
    %481 = arith.addf %480, %11 : vector<2x512xf32>
    %482 = vector.extract_strided_slice %481 {offsets = [0, 0], sizes = [2, 128], strides = [1, 1]} : vector<2x512xf32> to vector<2x128xf32>
    %483 = arith.negf %482 : vector<2x128xf32>
    %484 = math.exp %483 : vector<2x128xf32>
    %cst_145 = arith.constant 1.000000e+00 : f32
    %485 = vector.broadcast %cst_145 : f32 to vector<2x128xf32>
    %486 = arith.addf %485, %484 : vector<2x128xf32>
    %487 = arith.divf %485, %486 : vector<2x128xf32>
    %488 = vector.extract_strided_slice %481 {offsets = [0, 128], sizes = [2, 128], strides = [1, 1]} : vector<2x512xf32> to vector<2x128xf32>
    %489 = arith.negf %488 : vector<2x128xf32>
    %490 = math.exp %489 : vector<2x128xf32>
    %cst_146 = arith.constant 1.000000e+00 : f32
    %491 = vector.broadcast %cst_146 : f32 to vector<2x128xf32>
    %492 = arith.addf %491, %490 : vector<2x128xf32>
    %493 = arith.divf %491, %492 : vector<2x128xf32>
    %494 = vector.extract_strided_slice %481 {offsets = [0, 256], sizes = [2, 128], strides = [1, 1]} : vector<2x512xf32> to vector<2x128xf32>
    %495 = vector.extract_strided_slice %481 {offsets = [0, 384], sizes = [2, 128], strides = [1, 1]} : vector<2x512xf32> to vector<2x128xf32>
    %496 = arith.addf %495, %14 : vector<2x128xf32>
    %497 = arith.mulf %487, %496 : vector<2x128xf32>
    %498 = arith.addf %494, %497 : vector<2x128xf32>
    %499 = math.tanh %498 : vector<2x128xf32>
    %cst_147 = arith.constant 1.000000e+00 : f32
    %500 = vector.broadcast %cst_147 : f32 to vector<2x128xf32>
    %501 = arith.subf %500, %493 : vector<2x128xf32>
    %502 = arith.mulf %501, %499 : vector<2x128xf32>
    %503 = arith.mulf %493, %443 : vector<2x128xf32>
    %504 = arith.addf %502, %503 : vector<2x128xf32>
    %c0_148 = arith.constant 0 : index
    %c0_149 = arith.constant 0 : index
    %505 = vector.load %arg12[%c0_148, %c0_149] : memref<2x128xf32, #tpu.memory_space<vmem>>, vector<2x128xf32>
    tpu.vector_store %arg12[%c0_148, %c0_149], %477 {strides = array<i32>} : memref<2x128xf32, #tpu.memory_space<vmem>>, vector<2x128xf32>,
    %c0_150 = arith.constant 0 : index
    %c0_151 = arith.constant 0 : index
    %506 = vector.load %arg13[%c0_150, %c0_151] : memref<2x128xf32, #tpu.memory_space<vmem>>, vector<2x128xf32>
    tpu.vector_store %arg13[%c0_150, %c0_151], %504 {strides = array<i32>} : memref<2x128xf32, #tpu.memory_space<vmem>>, vector<2x128xf32>,
    %c0_i32_152 = arith.constant 0 : i32
    %507 = arith.cmpi eq, %arg0, %c0_i32_152 : i32
    %508 = arith.extui %507 : i1 to i32
    %c0_i32_153 = arith.constant 0 : i32
    %509 = arith.cmpi ne, %508, %c0_i32_153 : i32
    scf.if %509 {
      %c0_154 = arith.constant 0 : index
      %c0_155 = arith.constant 0 : index
      %510 = vector.load %arg9[%c0_154, %c0_155] : memref<128x128xf32, #tpu.memory_space<vmem>>, vector<128x128xf32>
      %cst_156 = arith.constant dense<0.000000e+00> : vector<2x128xf32>
      %511 = tpu.matmul %504, %510, %cst_156 {dimension_numbers = #tpu.dot_dimension_numbers<[1], [0], [0], [1], [0, 0, 1, 1], [], []>} : vector<2x128xf32>, vector<128x128xf32>, vector<2x128xf32> -> vector<2x128xf32>
      %c0_157 = arith.constant 0 : index
      %c0_158 = arith.constant 0 : index
      %512 = vector.load %arg10[%c0_157, %c0_158] : memref<1x128xf32, #tpu.memory_space<vmem>>, vector<1x128xf32>
      %513 = vector.broadcast %512 : vector<1x128xf32> to vector<2x128xf32>
      %514 = arith.addf %511, %513 : vector<2x128xf32>
      %c0_159 = arith.constant 0 : index
      %c0_160 = arith.constant 0 : index
      %515 = vector.load %arg11[%c0_159, %c0_160] : memref<2x128xf32, #tpu.memory_space<vmem>>, vector<2x128xf32>
      tpu.vector_store %arg11[%c0_159, %c0_160], %514 {strides = array<i32>} : memref<2x128xf32, #tpu.memory_space<vmem>>, vector<2x128xf32>,
    } else {
    }
    return
  }
  func.func @transform_0(%arg0: i32) -> (i32, i32, i32) {
    %c0_i32 = arith.constant 0 : i32
    %c0_i32_0 = arith.constant 0 : i32
    %c0_i32_1 = arith.constant 0 : i32
    return %arg0, %c0_i32, %c0_i32_0 : i32, i32, i32
  }
  func.func @transform_1(%arg0: i32) -> (i32, i32) {
    %c0_i32 = arith.constant 0 : i32
    %c0_i32_0 = arith.constant 0 : i32
    %c0_i32_1 = arith.constant 0 : i32
    return %c0_i32, %c0_i32_0 : i32, i32
  }
  func.func @transform_2(%arg0: i32) -> (i32, i32) {
    %c0_i32 = arith.constant 0 : i32
    %c0_i32_0 = arith.constant 0 : i32
    %c0_i32_1 = arith.constant 0 : i32
    return %c0_i32, %c0_i32_0 : i32, i32
  }
  func.func @transform_3(%arg0: i32) -> (i32, i32) {
    %c0_i32 = arith.constant 0 : i32
    %c0_i32_0 = arith.constant 0 : i32
    %c0_i32_1 = arith.constant 0 : i32
    return %c0_i32, %c0_i32_0 : i32, i32
  }
  func.func @transform_4(%arg0: i32) -> (i32, i32) {
    %c0_i32 = arith.constant 0 : i32
    %c0_i32_0 = arith.constant 0 : i32
    %c0_i32_1 = arith.constant 0 : i32
    return %c0_i32, %c0_i32_0 : i32, i32
  }
  func.func @transform_5(%arg0: i32) -> (i32, i32) {
    %c0_i32 = arith.constant 0 : i32
    %c0_i32_0 = arith.constant 0 : i32
    %c0_i32_1 = arith.constant 0 : i32
    return %c0_i32, %c0_i32_0 : i32, i32
  }
  func.func @transform_6(%arg0: i32) -> (i32, i32) {
    %c0_i32 = arith.constant 0 : i32
    %c0_i32_0 = arith.constant 0 : i32
    %c0_i32_1 = arith.constant 0 : i32
    return %c0_i32, %c0_i32_0 : i32, i32
  }
  func.func @transform_7(%arg0: i32) -> (i32, i32) {
    %c0_i32 = arith.constant 0 : i32
    %c0_i32_0 = arith.constant 0 : i32
    %c0_i32_1 = arith.constant 0 : i32
    return %c0_i32, %c0_i32_0 : i32, i32
  }
  func.func @transform_8(%arg0: i32) -> (i32, i32) {
    %c0_i32 = arith.constant 0 : i32
    %c0_i32_0 = arith.constant 0 : i32
    %c0_i32_1 = arith.constant 0 : i32
    return %c0_i32, %c0_i32_0 : i32, i32
  }
  func.func @transform_9(%arg0: i32) -> (i32, i32) {
    %c0_i32 = arith.constant 0 : i32
    %c0_i32_0 = arith.constant 0 : i32
    %c0_i32_1 = arith.constant 0 : i32
    return %c0_i32, %c0_i32_0 : i32, i32
  }
  func.func @transform_10(%arg0: i32) -> (i32, i32) {
    %c0_i32 = arith.constant 0 : i32
    %c0_i32_0 = arith.constant 0 : i32
    %c0_i32_1 = arith.constant 0 : i32
    return %c0_i32, %c0_i32_0 : i32, i32
  }
}

</mosaic_0001>

<bundles_post_ra>
// kernel: tpu_custom_call.1
= control target key start
LH: loop header
LB: loop body
LE: loop exit
PB: predicated region body
PF: predicated region fallthrough
CT: control target
= control target key end

     0   :  { %15 = vsyncpa [#allocation5], 0  ;;  %s5573_s0 = inlined_call_operand.hbm [shape: f32[8,2,8], index: 0, kind: input, shape index: {}]   ;;  %s5574_s1 = inlined_call_operand.hbm [shape: f32[8,384], index: 1, kind: input, shape index: {}]   ;;  %s5575_s2 = inlined_call_operand.hbm [shape: f32[1,384], index: 2, kind: input, shape index: {}]   ;;  %s5576_s3 = inlined_call_operand.hbm [shape: f32[128,384], index: 3, kind: input, shape index: {}]   ;;  %s5577_s4 = inlined_call_operand.hbm [shape: f32[1,384], index: 4, kind: input, shape index: {}]   ;;  %s5578_s5 = inlined_call_operand.hbm [shape: f32[128,512], index: 5, kind: input, shape index: {}]   ;;  %s5579_s6 = inlined_call_operand.vmem [shape: f32[1,512], index: 6, kind: input, shape index: {}]   ;;  %s5580_s7 = inlined_call_operand.vmem [shape: f32[1,128], index: 7, kind: input, shape index: {}]   ;;  %s5581_s8 = inlined_call_operand.hbm [shape: f32[128,128], index: 8, kind: input, shape index: {}]   ;;  %s5582_s9 = inlined_call_operand.vmem [shape: f32[1,128], index: 9, kind: input, shape index: {}]   ;;  %s5583_s10 = inlined_call_operand.hbm [shape: f32[2,128], index: 10, kind: output, shape index: {}]  }
   0x1   :  { %16 = vsyncpa [#allocation8], 0 }
   0x2   :  { %17 = vsyncpa [#allocation11], 0 }
   0x3   :  { %18 = vsyncpa [#allocation14], 0  ;;  %s38_s15 = sshll.u32 %s5574_s1, 4  ;;  %s39_s15 = int_to_ptr.hbm [resolvable:$true] %s38_s15 }
   0x4   :  { %19 = vsyncpa [#allocation6], 0  ;;  %s3418_s16 = smov [#allocation7]   ;;  %s59_s20 = sshll.u32 %s5576_s3, 4  ;;  %s60_s20 = int_to_ptr.hbm [resolvable:$true] %s59_s20 }
   0x5   :  { %s40_s17 = sshll.u32 %s3418_s16, 4  ;;  %s3419_s21 = smov [#allocation10]   ;;  %s41_s17 = int_to_ptr.vmem [resolvable:$true] %s40_s17 }
   0x6   :  { %43 = dma.hbm_to_vmem [thread:$0]  %s39_s15, 384, %s41_s17, [#allocation8]  }
   0x7   :  { %s61_s22 = sshll.u32 %s3419_s21, 4  ;;  %s3420_s23 = smov 384   ;;  %s62_s22 = int_to_ptr.vmem [resolvable:$true] %s61_s22 }
   0x8   :  { %s3421_s24 = smov 24   ;;  %s83_s1 = sshll.u32 %s5578_s5, 4  ;;  %s84_s1 = int_to_ptr.hbm [resolvable:$true] %s83_s1 }
   0x9   :  { %67 = dma.hbm_to_vmem [thread:$0]  %s60_s20, 6144, %s62_s22, [#allocation11], %s3420_s23, %s3420_s23, %s3421_s24  }
   0xa   :  { %s3422_s27 = smov [#allocation13]   ;;  %s24_s3 = sshll.u32 %s5573_s0, 4  ;;  %s25_s3 = int_to_ptr.hbm [resolvable:$true] %s24_s3 }
   0xb   :  { %s85_s28 = sshll.u32 %s3422_s27, 4  ;;  %s3423_s11 = smov 512   ;;  %s86_s28 = int_to_ptr.vmem [resolvable:$true] %s85_s28 }
   0xc   :  { %s3424_s12 = smov 32   ;;  %s3425_s13 = smov [#allocation4]  }
   0xd   :  { %91 = dma.hbm_to_vmem [thread:$0]  %s84_s1, 8192, %s86_s28, [#allocation14], %s3423_s11, %s3423_s11, %s3424_s12  }
   0xe   :  { %s26_s14 = sshll.u32 %s3425_s13, 4  ;;  %s49_s17 = sshll.u32 %s5575_s2, 4  ;;  %s27_s14 = int_to_ptr.vmem [resolvable:$true] %s26_s14  ;;  %s50_s17 = int_to_ptr.hbm [resolvable:$true] %s49_s17 }
   0xf   :  { %s3426_s5 = smov 2   ;;  %s3427_s18 = smov [#allocation9]  }
  0x10   :  { %32 = dma.hbm_to_vmem [thread:$0]  %s25_s3, 256, %s27_s14, [#allocation5], %s3424_s12, %s3424_s12, %s3426_s5  }
  0x11   :  { %s51_s19 = sshll.u32 %s3427_s18, 4  ;;  %s73_s0 = sshll.u32 %s5577_s4, 4  ;;  %s52_s19 = int_to_ptr.vmem [resolvable:$true] %s51_s19  ;;  %s74_s0 = int_to_ptr.hbm [resolvable:$true] %s73_s0 }
  0x12   :  { %54 = dma.hbm_to_vmem [thread:$0]  %s50_s17, 48, %s52_s19, [#allocation8]  }
  0x13   :  { %s100_s24 = sshll.u32 %s5581_s8, 4  ;;  %s3428_s25 = smov [#allocation12]   ;;  %s101_s24 = int_to_ptr.hbm [resolvable:$true] %s100_s24 }
  0x14   :  { %s75_s26 = sshll.u32 %s3428_s25, 4  ;;  %s3429_s2 = smov [#allocation15]   ;;  %s76_s26 = int_to_ptr.vmem [resolvable:$true] %s75_s26 }
  0x15   :  { %78 = dma.hbm_to_vmem [thread:$0]  %s74_s0, 48, %s76_s26, [#allocation11]  }
  0x16   :  { %s102_s1 = sshll.u32 %s3429_s2, 4  ;;  %s3430_s27 = smov 128   ;;  %s103_s1 = int_to_ptr.vmem [resolvable:$true] %s102_s1 }
  0x17   :  { %s3431_s28 = smov 8  }
  0x18   :  { %108 = dma.hbm_to_vmem [thread:$0]  %s101_s24, 2048, %s103_s1, [#allocation14], %s3430_s27, %s3430_s27, %s3431_s28  }
  0x19   :  { %3408 = dma.done.wait [#allocation5], 256  }
  0x1a   :  { %3409 = vsyncadd [#allocation5], 4294967040 }
  0x1b   :  { %3410 = dma.done.wait [#allocation8], 432  }
  0x1c   :  { %3411 = vsyncadd [#allocation8], 4294966864 }
  0x1d   :  { %3412 = dma.done.wait [#allocation11], 6192  }
  0x1e   :  { %3413 = vsyncadd [#allocation11], 4294961104 }
  0x1f   :  { %3414 = dma.done.wait [#allocation14], 10240  }
  0x20   :  { %3415 = vsyncadd [#allocation14], 4294957056  ;;  %v3432_v0 = vmov 0.0   ;;  %v3510_v1 = vld [vmem:[#allocation10 + $0x168] sm:$0xff]  ;;  %v3514_v3 = vld [vmem:[#allocation10 + $0x150] sm:$0xff]  ;;  %vm181_vm0 = vcmask 64512  }
  0x21   :  { %143 = vst [vmem:[#allocation2] sm:$0x3] %v3432_v0  ;;  %v3512_v2 = vld [vmem:[#allocation7] sm:$0xff]  ;;  %293 = vmatpush.msra.mxu3 %v3510_v1  ;;  %v3518_v4 = vld [vmem:[#allocation10 + $0x170] sm:$0xff]  ;;  %v3520_v5 = vld [vmem:[#allocation10 + $0x158] sm:$0xff]  ;;  %s3433_s14 = smov [#allocation16]  }
  0x22   :  { %144 = vst [vmem:[#allocation3] sm:$0x3] %v3432_v0  ;;  %200 = vmatpush.msra.mxu0 %v3512_v2  ;;  %v3523_v6 = vld [vmem:[#allocation10 + $0x138] sm:$0xff]  ;;  %v3526_v7 = vld [vmem:[#allocation10 + $0x140] sm:$0xff]  ;;  %v3532_v9 = vld [vmem:[#allocation10 + $0x128] sm:$0xff]  ;;  %s2735_s15 = sshll.u32 %s3433_s14, 4  ;;  %s2736_s15 = int_to_ptr.vmem [resolvable:$true] %s2735_s15 }
  0x23   :  { %5922 = vst [vmem:[#allocation22_spill] sm:$0xff] %v3510_v1  ;;  %294 = vmatpush.msra.mxu3 %v3514_v3  ;;  %v3529_v8 = vld [vmem:[#allocation10 + $0x120] sm:$0xff]  ;;  %v3535_v10 = vld [vmem:[#allocation10 + $0x108] sm:$0xff]  ;;  %v3538_v11 = vld [vmem:[#allocation10 + $0x110] sm:$0xff]  ;;  %s2737_s5 = sshll.u32 %s5583_s10, 4  ;;  %s2738_s5 = int_to_ptr.hbm [resolvable:$true] %s2737_s5 }
  0x24   :  { %5923 = vst [vmem:[#allocation23_spill] sm:$0xff] %v3514_v3  ;;  %313 = vmatpush.msrb.mxu0 %v3518_v4  ;;  %v3541_v12 = vld [vmem:[#allocation10 + $0xf0] sm:$0xff]  ;;  %v3544_v14 = vld [vmem:[#allocation10 + $0xf8] sm:$0xff]  ;;  %v3551_v16 = vld [vmem:[#allocation10 + $0xe0] sm:$0xff] }
  0x25   :  { %5924 = vst [vmem:[#allocation24_spill] sm:$0xff] %v3518_v4  ;;  %295 = vmatpush.msra.mxu3 %v3523_v6  ;;  %v177_v13 = vld [vmem:[#allocation4] sm:$0x3]  ;;  %v3548_v15 = vld [vmem:[#allocation10 + $0xd8] sm:$0xff]  ;;  %v3553_v17 = vld [vmem:[#allocation7 + $0x8] sm:$0xff] }
  0x26   :  { %5925 = vst [vmem:[#allocation25_spill] sm:$0xff] %v3520_v5  ;;  %314 = vmatpush.msrb.mxu0 %v3520_v5  ;;  %v3556_v18 = vld [vmem:[#allocation10 + $0xc0] sm:$0xff]  ;;  %220 = vmatpush.msra.mxu1 %v3553_v17  ;;  %v3559_v19 = vld [vmem:[#allocation10 + $0x178] sm:$0xff]  ;;  %v3562_v20 = vld [vmem:[#allocation10 + $0xc8] sm:$0xff] }
  0x27   :  { %5926 = vst [vmem:[#allocation26_spill] sm:$0xff] %v3523_v6  ;;  %296 = vmatpush.msra.mxu3 %v3529_v8  ;;  %2750 = vmatmul.msk.f32.vlgmr.msra.gmra.mxu0 %vm181_vm0, %v177_v13  ;;  %v3565_v21 = vld [vmem:[#allocation10 + $0x160] sm:$0xff]  ;;  %v3568_v22 = vld [vmem:[#allocation10 + $0xa8] sm:$0xff]  ;;  %v3572_v23 = vld [vmem:[#allocation10 + $0xb0] sm:$0xff] }
  0x28   :  { %5927 = vst [vmem:[#allocation27_spill] sm:$0xff] %v3526_v7  ;;  %315 = vmatpush.msrb.mxu0 %v3526_v7  ;;  %2751 = vmatmul.msk.f32.vlgmr.msra.gmra.mxu1 %vm181_vm0, %v177_v13  ;;  %v3574_v24 = vld [vmem:[#allocation10 + $0x148] sm:$0xff]  ;;  %v3577_v25 = vld [vmem:[#allocation10 + $0x90] sm:$0xff]  ;;  %v3583_v27 = vld [vmem:[#allocation10 + $0x98] sm:$0xff] }
  0x29   :  { %5928 = vst [vmem:[#allocation28_spill] sm:$0xff] %v3529_v8  ;;  %297 = vmatpush.msra.mxu3 %v3535_v10  ;;  %333 = vmatpush.msrb.mxu1 %v3559_v19  ;;  %v3580_v26 = vld [vmem:[#allocation7 + $0x10] sm:$0xff]  ;;  %v3593_v30 = vld [vmem:[#allocation10 + $0x80] sm:$0xff]  ;;  %v3603_v33 = vld [vmem:[#allocation10 + $0x68] sm:$0xff] }
  0x2a   :  { %5929 = vst [vmem:[#allocation29_spill] sm:$0xff] %v3532_v9  ;;  %316 = vmatpush.msrb.mxu0 %v3532_v9  ;;  %v3585_v28 = vld [vmem:[#allocation10 + $0x130] sm:$0xff]  ;;  %240 = vmatpush.msra.mxu2 %v3580_v26  ;;  %v3589_v29 = vld [vmem:[#allocation10 + $0x78] sm:$0xff]  ;;  %v3599_v32 = vld [vmem:[#allocation10 + $0x60] sm:$0xff] }
  0x2b   :  { %5930 = vst [vmem:[#allocation30_spill] sm:$0xff] %v3535_v10  ;;  %298 = vmatpush.msra.mxu3 %v3541_v12  ;;  %334 = vmatpush.msrb.mxu1 %v3565_v21  ;;  %v3595_v31 = vld [vmem:[#allocation10 + $0x118] sm:$0xff]  ;;  %v3605_v34 = vld [vmem:[#allocation10 + $0x100] sm:$0xff]  ;;  %v3608_v35 = vld [vmem:[#allocation10 + $0x48] sm:$0xff] }
  0x2c   :  { %5931 = vst [vmem:[#allocation31_spill] sm:$0xff] %v3538_v11  ;;  %317 = vmatpush.msrb.mxu0 %v3538_v11  ;;  %2752 = vmatmul.msk.f32.vlgmr.msra.gmra.mxu2 %vm181_vm0, %v177_v13  ;;  %v3612_v36 = vld [vmem:[#allocation10 + $0x50] sm:$0xff]  ;;  %v3614_v37 = vld [vmem:[#allocation10 + $0xe8] sm:$0xff]  ;;  %v3621_v39 = vld [vmem:[#allocation10 + $0x38] sm:$0xff] }
  0x2d   :  { %5932 = vst [vmem:[#allocation32_spill] sm:$0xff] %v3541_v12  ;;  %299 = vmatpush.msra.mxu3 %v3548_v15  ;;  %335 = vmatpush.msrb.mxu1 %v3574_v24  ;;  %v3617_v38 = vld [vmem:[#allocation10 + $0x30] sm:$0xff]  ;;  %v3626_v41 = vld [vmem:[#allocation10 + $0x18] sm:$0xff]  ;;  %v3630_v42 = vld [vmem:[#allocation10 + $0x20] sm:$0xff] }
  0x2e   :  { %5933 = vst [vmem:[#allocation33_spill] sm:$0xff] %v3544_v14  ;;  %318 = vmatpush.msrb.mxu0 %v3544_v14  ;;  %v3623_v40 = vld [vmem:[#allocation10 + $0xd0] sm:$0xff]  ;;  %v3632_v43 = vld [vmem:[#allocation10 + $0xb8] sm:$0xff]  ;;  %v3635_v44 = vld [vmem:[#allocation10] sm:$0xff] }
  0x2f   :  { %5934 = vst [vmem:[#allocation34_spill] sm:$0xff] %v3548_v15  ;;  %300 = vmatpush.msra.mxu3 %v3556_v18  ;;  %336 = vmatpush.msrb.mxu1 %v3585_v28  ;;  %v3639_v45 = vld [vmem:[#allocation2] sm:$0x3]  ;;  %v3641_v46 = vld [vmem:[#allocation10 + $0x8] sm:$0xff]  ;;  %v3645_v47 = vld [vmem:[#allocation10 + $0xa0] sm:$0xff] }
  0x30   :  { %5935 = vst [vmem:[#allocation35_spill] sm:$0xff] %v3551_v16  ;;  %319 = vmatpush.msrb.mxu0 %v3551_v16  ;;  %v3650_v48 = vld [vmem:[#allocation10 + $0x88] sm:$0xff]  ;;  %v3654_v49 = vld [vmem:[#allocation10 + $0x70] sm:$0xff]  ;;  %v3657_v50 = vld [vmem:[#allocation10 + $0x58] sm:$0xff] }
  0x31   :  { %5936 = vst [vmem:[#allocation36_spill] sm:$0xff] %v3556_v18  ;;  %301 = vmatpush.msra.mxu3 %v3568_v22  ;;  %337 = vmatpush.msrb.mxu1 %v3595_v31  ;;  %v3660_v51 = vld [vmem:[#allocation10 + $0x40] sm:$0xff]  ;;  %v3663_v52 = vld [vmem:[#allocation10 + $0x28] sm:$0xff]  ;;  %v3666_v53 = vld [vmem:[#allocation10 + $0x10] sm:$0xff] }
  0x32   :  { %5937 = vst [vmem:[#allocation37_spill] sm:$0xff] %v3562_v20  ;;  %320 = vmatpush.msrb.mxu0 %v3562_v20  ;;  %v3671_v54 = vld [vmem:[#allocation13 + $0x1e8] sm:$0xff]  ;;  %v3673_v55 = vld [vmem:[#allocation13 + $0x1f0] sm:$0xff]  ;;  %v3761_v18 = vld [vmem:[#allocation12] sm:$0x7] }
  0x33   :  { %5938 = vst [vmem:[#allocation38_spill] sm:$0xff] %v3568_v22  ;;  %302 = vmatpush.msra.mxu3 %v3577_v25  ;;  %338 = vmatpush.msrb.mxu1 %v3605_v34  ;;  %v3677_v56 = vld [vmem:[#allocation13 + $0x1c8] sm:$0xff]  ;;  %v3679_v57 = vld [vmem:[#allocation13 + $0x1d0] sm:$0xff]  ;;  %v3759_v22 = vld [vmem:[#allocation13 + $0x1d8] sm:$0xff] }
  0x34   :  { %5939 = vst [vmem:[#allocation39_spill] sm:$0xff] %v3572_v23  ;;  %321 = vmatpush.msrb.mxu0 %v3572_v23  ;;  %v3683_v58 = vld [vmem:[#allocation13 + $0x1a8] sm:$0xff]  ;;  %v3685_v59 = vld [vmem:[#allocation13 + $0x1b0] sm:$0xff]  ;;  %v3786_v6 = vld [vmem:[#allocation13 + $0x198] sm:$0xff] }
  0x35   :  { %5940 = vst [vmem:[#allocation40_spill] sm:$0xff] %v3577_v25  ;;  %303 = vmatpush.msra.mxu3 %v3589_v29  ;;  %339 = vmatpush.msrb.mxu1 %v3614_v37  ;;  %v3689_v60 = vld [vmem:[#allocation13 + $0x188] sm:$0xff]  ;;  %v3691_v61 = vld [vmem:[#allocation13 + $0x190] sm:$0xff]  ;;  %v3797_v3 = vld [vmem:[#allocation13 + $0x160] sm:$0xff] }
  0x36   :  { %5941 = vst [vmem:[#allocation41_spill] sm:$0xff] %v3583_v27  ;;  %322 = vmatpush.msrb.mxu0 %v3583_v27  ;;  %v3695_v62 = vld [vmem:[#allocation13 + $0x168] sm:$0xff]  ;;  %v3697_v63 = vld [vmem:[#allocation13 + $0x170] sm:$0xff] }
  0x37   :  { %5942 = vst [vmem:[#allocation42_spill] sm:$0xff] %v3589_v29  ;;  %304 = vmatpush.msra.mxu3 %v3599_v32  ;;  %340 = vmatpush.msrb.mxu1 %v3623_v40  ;;  %v3701_v0 = vld [vmem:[#allocation13 + $0x148] sm:$0xff]  ;;  %v3703_v13 = vld [vmem:[#allocation13 + $0x150] sm:$0xff]  ;;  %v3747_v29 = vld [vmem:[#allocation9] sm:$0x7] }
  0x38   :  { %5943 = vst [vmem:[#allocation43_spill] sm:$0xff] %v3593_v30  ;;  %323 = vmatpush.msrb.mxu0 %v3593_v30  ;;  %v3753_v25 = vld [vmem:[#allocation13 + $0x70] sm:$0xff]  ;;  %v3765_v15 = vld [vmem:[#allocation13 + $0x48] sm:$0xff] }
  0x39   :  { %5944 = vst [vmem:[#allocation44_spill] sm:$0xff] %v3599_v32  ;;  %305 = vmatpush.msra.mxu3 %v3608_v35  ;;  %341 = vmatpush.msrb.mxu1 %v3632_v43  ;;  %v3745_v32 = vld [vmem:[#allocation13 + $0x1f8] sm:$0xff]  ;;  %v3767_v12 = vld [vmem:[#allocation13 + $0x50] sm:$0xff]  ;;  %v3778_v10 = vld [vmem:[#allocation13 + $0x28] sm:$0xff] }
  0x3a   :  { %5945 = vst [vmem:[#allocation45_spill] sm:$0xff] %v3603_v33  ;;  %324 = vmatpush.msrb.mxu0 %v3603_v33  ;;  %v3782_v8 = vld [vmem:[#allocation13 + $0x30] sm:$0xff] }
  0x3b   :  { %5946 = vst [vmem:[#allocation46_spill] sm:$0xff] %v3605_v34  ;;  %306 = vmatpush.msra.mxu3 %v3617_v38  ;;  %342 = vmatpush.msrb.mxu1 %v3645_v47 }
  0x3c   :  { %5947 = vst [vmem:[#allocation47_spill] sm:$0xff] %v3608_v35  ;;  %325 = vmatpush.msrb.mxu0 %v3612_v36  ;;  %v3739_v35 = vld [vmem:[#allocation13 + $0x90] sm:$0xff] }
  0x3d   :  { %5948 = vst [vmem:[#allocation48_spill] sm:$0xff] %v3612_v36  ;;  %307 = vmatpush.msra.mxu3 %v3626_v41  ;;  %343 = vmatpush.msrb.mxu1 %v3650_v48 }
  0x3e   :  { %5949 = vst [vmem:[#allocation49_spill] sm:$0xff] %v3614_v37  ;;  %326 = vmatpush.msrb.mxu0 %v3621_v39 }
  0x3f   :  { %5950 = vst [vmem:[#allocation50_spill] sm:$0xff] %v3617_v38  ;;  %308 = vmatpush.msra.mxu3 %v3635_v44  ;;  %344 = vmatpush.msrb.mxu1 %v3654_v49 }
  0x40   :  { %5951 = vst [vmem:[#allocation51_spill] sm:$0xff] %v3621_v39  ;;  %327 = vmatpush.msrb.mxu0 %v3630_v42  ;;  %309 = vmatmul.f32.vlgmr.msra.gmra.mxu3 %v3639_v45 }
  0x41   :  { %5952 = vst [vmem:[#allocation52_spill] sm:$0xff] %v3623_v40  ;;  %345 = vmatpush.msrb.mxu1 %v3657_v50  ;;  %485 = vmatpush.msrb.mxu3 %v3671_v54 }
  0x42   :  { %5953 = vst [vmem:[#allocation53_spill] sm:$0xff] %v3626_v41  ;;  %328 = vmatpush.msrb.mxu0 %v3641_v46  ;;  %v3731_v41 = vld [vmem:[#allocation13 + $0xa8] sm:$0xff] }
  0x43   :  { %5954 = vst [vmem:[#allocation54_spill] sm:$0xff] %v3630_v42  ;;  %329 = vmatmul.f32.vlgmr.msrb.gmra.mxu0 %v3639_v45  ;;  %346 = vmatpush.msrb.mxu1 %v3660_v51 }
  0x44   :  { %5955 = vst [vmem:[#allocation55_spill] sm:$0xff] %v3632_v43  ;;  %505 = vmatpush.msra.mxu0 %v3673_v55  ;;  %486 = vmatpush.msrb.mxu3 %v3677_v56 }
  0x45   :  { %5956 = vst [vmem:[#allocation56_spill] sm:$0xff] %v3635_v44  ;;  %347 = vmatpush.msrb.mxu1 %v3663_v52  ;;  %v3725_v44 = vld [vmem:[#allocation13 + $0xc8] sm:$0xff] }
  0x46   :  { %5957 = vst [vmem:[#allocation57_spill] sm:$0xff] %v3641_v46  ;;  %506 = vmatpush.msra.mxu0 %v3679_v57  ;;  %487 = vmatpush.msrb.mxu3 %v3683_v58 }
  0x47   :  { %5958 = vst [vmem:[#allocation58_spill] sm:$0xff] %v3645_v47  ;;  %348 = vmatpush.msrb.mxu1 %v3666_v53 }
  0x48   :  { %5959 = vst [vmem:[#allocation59_spill] sm:$0xff] %v3650_v48  ;;  %349 = vmatmul.f32.vlgmr.msrb.gmra.mxu1 %v3639_v45  ;;  %507 = vmatpush.msra.mxu0 %v3685_v59 }
  0x49   :  { %5960 = vst [vmem:[#allocation60_spill] sm:$0xff] %v3654_v49  ;;  %488 = vmatpush.msrb.mxu3 %v3689_v60  ;;  %525 = vmatpush.msra.mxu1 %v3745_v32 }
  0x4a   :  { %5961 = vst [vmem:[#allocation61_spill] sm:$0xff] %v3657_v50  ;;  %508 = vmatpush.msra.mxu0 %v3691_v61 }
  0x4b   :  { %5962 = vst [vmem:[#allocation62_spill] sm:$0xff] %v3660_v51  ;;  %489 = vmatpush.msrb.mxu3 %v3695_v62  ;;  %526 = vmatpush.msra.mxu1 %v3759_v22 }
  0x4c   :  { %5963 = vst [vmem:[#allocation63_spill] sm:$0xff] %v3663_v52  ;;  %509 = vmatpush.msra.mxu0 %v3697_v63 }
  0x4d   :  { %5964 = vst [vmem:[#allocation64_spill] sm:$0xff] %v3666_v53  ;;  %490 = vmatpush.msrb.mxu3 %v3701_v0 }
  0x4e   :  { %5965 = vst [vmem:[#allocation65_spill] sm:$0xff] %v3671_v54  ;;  %510 = vmatpush.msra.mxu0 %v3703_v13  ;;  %v3719_v54 = vld [vmem:[#allocation13 + $0xe8] sm:$0xff] }
  0x4f   :  { %5966 = vst [vmem:[#allocation66_spill] sm:$0xff] %v3677_v56  ;;  %v3713_v56 = vld [vmem:[#allocation13 + $0x108] sm:$0xff] }
  0x50   :  { %5967 = vst [vmem:[#allocation67_spill] sm:$0xff] %v3683_v58  ;;  %v3707_v58 = vld [vmem:[#allocation13 + $0x128] sm:$0xff] }
  0x51   :  { %5968 = vst [vmem:[#allocation68_spill] sm:$0xff] %v3689_v60  ;;  %v3709_v60 = vld [vmem:[#allocation13 + $0x130] sm:$0xff]  ;;  %491 = vmatpush.msrb.mxu3 %v3707_v58 }
  0x52   :  { %5969 = vst [vmem:[#allocation69_spill] sm:$0xff] %v3695_v62  ;;  %511 = vmatpush.msra.mxu0 %v3709_v60  ;;  %v3715_v62 = vld [vmem:[#allocation13 + $0x110] sm:$0xff] }
  0x53   :  { %5970 = vst [vmem:[#allocation70_spill] sm:$0xff] %v3697_v63  ;;  %492 = vmatpush.msrb.mxu3 %v3713_v56 }
  0x54   :  { %5971 = vst [vmem:[#allocation71_spill] sm:$0xff] %v3701_v0  ;;  %512 = vmatpush.msra.mxu0 %v3715_v62  ;;  %v3721_v0 = vld [vmem:[#allocation13 + $0xf0] sm:$0xff] }
  0x55   :  { %5972 = vst [vmem:[#allocation72_spill] sm:$0xff] %v3703_v13  ;;  %493 = vmatpush.msrb.mxu3 %v3719_v54 }
  0x56   :  { %5973 = vst [vmem:[#allocation73_spill] sm:$0xff] %v3707_v58  ;;  %513 = vmatpush.msra.mxu0 %v3721_v0  ;;  %v3727_v58 = vld [vmem:[#allocation13 + $0xd0] sm:$0xff] }
  0x57   :  { %5974 = vst [vmem:[#allocation74_spill] sm:$0xff] %v3709_v60  ;;  %494 = vmatpush.msrb.mxu3 %v3725_v44  ;;  %v3811_v60 = vperm.slane %v3747_v29, 0 }
  0x58   :  { %5975 = vst [vmem:[#allocation75_spill] sm:$0xff] %v3713_v56  ;;  %514 = vmatpush.msra.mxu0 %v3727_v58  ;;  %v3733_v56 = vld [vmem:[#allocation13 + $0xb0] sm:$0xff] }
  0x59   :  { %5976 = vst [vmem:[#allocation76_spill] sm:$0xff] %v3715_v62  ;;  %495 = vmatpush.msrb.mxu3 %v3731_v41  ;;  %v3801_v62 = vld [vmem:[#allocation13 + $0x178] sm:$0xff] }
  0x5a   :  { %5977 = vst [vmem:[#allocation77_spill] sm:$0xff] %v3719_v54  ;;  %515 = vmatpush.msra.mxu0 %v3733_v56  ;;  %v3737_v54 = vld [vmem:[#allocation13 + $0x88] sm:$0xff] }
  0x5b   :  { %5978 = vst [vmem:[#allocation78_spill] sm:$0xff] %v3721_v0  ;;  %496 = vmatpush.msrb.mxu3 %v3737_v54  ;;  %v3795_v0 = vld [vmem:[#allocation13 + $0x10] sm:$0xff] }
  0x5c   :  { %5979 = vst [vmem:[#allocation79_spill] sm:$0xff] %v3725_v44  ;;  %516 = vmatpush.msra.mxu0 %v3739_v35  ;;  %v3743_v44 = vld [vmem:[#allocation13 + $0x1e0] sm:$0xff] }
  0x5d   :  { %5980 = vst [vmem:[#allocation80_spill] sm:$0xff] %v3727_v58  ;;  %465 = vmatpush.msrb.mxu2 %v3743_v44  ;;  %v3784_v58 = vld [vmem:[#allocation13 + $0x180] sm:$0xff] }
  0x5e   :  { %5981 = vst [vmem:[#allocation81_spill] sm:$0xff] %v3731_v41  ;;  %v3751_v41 = vld [vmem:[#allocation13 + $0x68] sm:$0xff]  ;;  %517 = vmatpush.msra.mxu0 %v3753_v25 }
  0x5f   :  { %5982 = vst [vmem:[#allocation82_spill] sm:$0xff] %v3733_v56  ;;  %497 = vmatpush.msrb.mxu3 %v3751_v41 }
  0x60   :  { %5983 = vst [vmem:[#allocation83_spill] sm:$0xff] %v3737_v54  ;;  %v3757_v54 = vld [vmem:[#allocation13 + $0x1c0] sm:$0xff]  ;;  %518 = vmatpush.msra.mxu0 %v3767_v12 }
  0x61   :  { %5984 = vst [vmem:[#allocation84_spill] sm:$0xff] %v3739_v35  ;;  %466 = vmatpush.msrb.mxu2 %v3757_v54  ;;  %v3770_v35 = vperm.slane %v3747_v29, 1  ;;  %498 = vmatpush.msrb.mxu3 %v3765_v15 }
  0x62   :  { %5985 = vst [vmem:[#allocation85_spill] sm:$0xff] %v3743_v44  ;;  %519 = vmatpush.msra.mxu0 %v3782_v8 }
  0x63   :  { %5986 = vst [vmem:[#allocation86_spill] sm:$0xff] %v3751_v41  ;;  %v3774_v41 = vld [vmem:[#allocation13 + $0x1a0] sm:$0xff]  ;;  %499 = vmatpush.msrb.mxu3 %v3778_v10 }
  0x64   :  { %5987 = vst [vmem:[#allocation87_spill] sm:$0xff] %v3753_v25  ;;  %v3776_v25 = vld [vmem:[#allocation13 + $0x1b8] sm:$0xff]  ;;  %467 = vmatpush.msrb.mxu2 %v3774_v41  ;;  %520 = vmatpush.msra.mxu0 %v3795_v0 }
  0x65   :  { %5988 = vst [vmem:[#allocation88_spill] sm:$0xff] %v3757_v54  ;;  %527 = vmatpush.msra.mxu1 %v3776_v25 }
  0x66   :  { %5989 = vst [vmem:[#allocation89_spill] sm:$0xff] %v3765_v15  ;;  %v3789_v15 = vperm.slane %v3761_v18, 1  ;;  %468 = vmatpush.msrb.mxu2 %v3784_v58  ;;  %696 = vmatpush.msrb.mxu0 %v3559_v19 }
  0x67   :  { %5990 = vst [vmem:[#allocation90_spill] sm:$0xff] %v3767_v12  ;;  %v3793_v12 = vld [vmem:[#allocation13 + $0x8] sm:$0xff]  ;;  %528 = vmatpush.msra.mxu1 %v3786_v6 }
  0x68   :  { %5991 = vst [vmem:[#allocation91_spill] sm:$0xff] %v3770_v35  ;;  %500 = vmatpush.msrb.mxu3 %v3793_v12  ;;  %469 = vmatpush.msrb.mxu2 %v3797_v3 }
  0x69   :  { %5992 = vst [vmem:[#allocation92_spill] sm:$0xff] %v3774_v41  ;;  %529 = vmatpush.msra.mxu1 %v3801_v62  ;;  %697 = vmatpush.msrb.mxu0 %v3565_v21 }
  0x6a   :  { %5993 = vst [vmem:[#allocation93_spill] sm:$0xff] %v3778_v10  ;;  %v3806_v10 = vld [vmem:[#allocation13 + $0x140] sm:$0xff]  ;;  %676 = vmatpush.msra.mxu3 %v3518_v4 }
  0x6b   :  { %5994 = vst [vmem:[#allocation94_spill] sm:$0xff] %v3782_v8  ;;  %v3808_v8 = vld [vmem:[#allocation13 + $0x158] sm:$0xff]  ;;  %470 = vmatpush.msrb.mxu2 %v3806_v10  ;;  %698 = vmatpush.msrb.mxu0 %v3574_v24 }
  0x6c   :  { %5995 = vst [vmem:[#allocation95_spill] sm:$0xff] %v3784_v58  ;;  %530 = vmatpush.msra.mxu1 %v3808_v8  ;;  %677 = vmatpush.msra.mxu3 %v3520_v5 }
  0x6d   :  { %5996 = vst [vmem:[#allocation96_spill] sm:$0xff] %v3789_v15  ;;  %699 = vmatpush.msrb.mxu0 %v3585_v28 }
  0x6e   :  { %5997 = vst [vmem:[#allocation97_spill] sm:$0xff] %v3793_v12  ;;  %v3825_v12 = vld [vmem:[#allocation13 + $0x120] sm:$0xff]  ;;  %678 = vmatpush.msra.mxu3 %v3526_v7  ;;  %v3879_v7 = vld [vmem:[#allocation13 + $0x78] sm:$0xff] }
  0x6f   :  { %5998 = vst [vmem:[#allocation98_spill] sm:$0xff] %v3795_v0  ;;  %v3827_v0 = vld [vmem:[#allocation13 + $0x138] sm:$0xff]  ;;  %471 = vmatpush.msrb.mxu2 %v3825_v12  ;;  %700 = vmatpush.msrb.mxu0 %v3595_v31 }
  0x70   :  { %5999 = vst [vmem:[#allocation99_spill] sm:$0xff] %v3797_v3  ;;  %531 = vmatpush.msra.mxu1 %v3827_v0  ;;  %679 = vmatpush.msra.mxu3 %v3532_v9  ;;  %v3869_v9 = vld [vmem:[#allocation13 + $0x98] sm:$0xff] }
  0x71   :  { %6000 = vst [vmem:[#allocation100_spill] sm:$0xff] %v3806_v10  ;;  %701 = vmatpush.msrb.mxu0 %v3605_v34  ;;  %v3896_v34 = vld [vmem:[#allocation13 + $0x38] sm:$0xff] }
  0x72   :  { %6001 = vst [vmem:[#allocation101_spill] sm:$0xff] %v3811_v60  ;;  %680 = vmatpush.msra.mxu3 %v3538_v11 }
  0x73   :  { %6003 = vst [vmem:[#allocation103_spill] sm:$0xff] %v3825_v12  ;;  %702 = vmatpush.msrb.mxu0 %v3614_v37  ;;  %v3894_v37 = vld [vmem:[#allocation13 + $0x20] sm:$0xff] }
  0x74   :  { %681 = vmatpush.msra.mxu3 %v3544_v14  ;;  %6011 = vst [vmem:[#allocation111_spill] sm:$0xff] %v3894_v37 }
  0x75   :  { %703 = vmatpush.msrb.mxu0 %v3623_v40 }
  0x76   :  { %682 = vmatpush.msra.mxu3 %v3551_v16  ;;  %v3888_v16 = vld [vmem:[#allocation13 + $0x58] sm:$0xff] }
  0x77   :  { %704 = vmatpush.msrb.mxu0 %v3632_v43  ;;  %v3902_v43 = vld [vmem:[#allocation13 + $0x18] sm:$0xff] }
  0x78   :  { %683 = vmatpush.msra.mxu3 %v3562_v20  ;;  %6013 = vst [vmem:[#allocation113_spill] sm:$0xff] %v3902_v43 }
  0x79   :  { %705 = vmatpush.msrb.mxu0 %v3645_v47 }
  0x7a   :  { %684 = vmatpush.msra.mxu3 %v3572_v23  ;;  %v3898_v23 = vld [vmem:[#allocation13] sm:$0xff] }
  0x7b   :  { %6012 = vst [vmem:[#allocation112_spill] sm:$0xff] %v3898_v23  ;;  %706 = vmatpush.msrb.mxu0 %v3650_v48  ;;  %v3922_v48 = vperm.slane %v3761_v18, 2 }
  0x7c   :  { %685 = vmatpush.msra.mxu3 %v3583_v27 }
  0x7d   :  { %707 = vmatpush.msrb.mxu0 %v3654_v49  ;;  %6014 = vst [vmem:[#allocation114_spill] sm:$0xff] %v3922_v48 }
  0x7e   :  { %686 = vmatpush.msra.mxu3 %v3593_v30 }
  0x7f   :  { %708 = vmatpush.msrb.mxu0 %v3657_v50 }
  0x80   :  { %687 = vmatpush.msra.mxu3 %v3603_v33 }
  0x81   :  { %709 = vmatpush.msrb.mxu0 %v3660_v51 }
  0x82   :  { %688 = vmatpush.msra.mxu3 %v3612_v36 }
  0x83   :  { %710 = vmatpush.msrb.mxu0 %v3663_v52 }
  0x84   :  { %689 = vmatpush.msra.mxu3 %v3621_v39 }
  0x85   :  { %711 = vmatpush.msrb.mxu0 %v3666_v53 }
  0x86   :  { %690 = vmatpush.msra.mxu3 %v3630_v42 }
  0x88   :  { %691 = vmatpush.msra.mxu3 %v3641_v46 }
  0xa4   :  { %v202_v38 = vpop.f32.mrf.mxu0 }
  0xa5   :  { %v222_v56 = vpop.f32.mrf.mxu1 }
  0xa6   :  { %v223_v1 = vadd.f32 %v222_v56, %v3770_v35  ;;  %v3819_v56 = vperm.slane %v3761_v18, 0 }
  0xa8   :  { %6002 = vst [vmem:[#allocation102_spill] sm:$0xff] %v3819_v56 }
  0xaf   :  { %v242_v18 = vpop.f32.mrf.mxu2 }
  0xc0   :  { %v330_v13 = vpop.f32.mrf.mxu0 }
  0xc1   :  { %v331_v63 = vadd.f32 %v330_v13, %v3789_v15  ;;  %v203_v13 = vadd.f32 %v202_v38, %v3811_v60  ;;  %v3845_v38 = vld [vmem:[#allocation13 + $0xf8] sm:$0xff] }
  0xc3   :  { %v373_v35 = vadd.f32 %v331_v63, %v223_v1  ;;  %v310_v4 = vpop.f32.mrf.mxu3  ;;  %v3834_v1 = vld [vmem:[#allocation13 + $0x100] sm:$0xff]  ;;  %v3836_v63 = vld [vmem:[#allocation13 + $0x118] sm:$0xff] }
  0xc4   :  { %6004 = vst [vmem:[#allocation104_spill] sm:$0xff] %v3834_v1  ;;  %v311_v5 = vadd.f32 %v310_v4, %v3819_v56  ;;  %472 = vmatpush.msrb.mxu2 %v3834_v1  ;;  %532 = vmatpush.msra.mxu1 %v3836_v63  ;;  %v3851_v4 = vld [vmem:[#allocation13 + $0xc0] sm:$0xff] }
  0xc5   :  { %v2754_v15 = vmul.f32 -1.442695, %v373_v35  ;;  %v3843_v35 = vld [vmem:[#allocation13 + $0xe0] sm:$0xff]  ;;  %6006 = vst [vmem:[#allocation106_spill] sm:$0xff] %v3851_v4  ;;  %v350_v50 = vpop.f32.mrf.mxu1 }
  0xc6   :  { %6005 = vst [vmem:[#allocation105_spill] sm:$0xff] %v3843_v35  ;;  %v353_v60 = vadd.f32 %v311_v5, %v203_v13  ;;  %473 = vmatpush.msrb.mxu2 %v3843_v35  ;;  %533 = vmatpush.msra.mxu1 %v3845_v38  ;;  %v3859_v5 = vld [vmem:[#allocation13 + $0xa0] sm:$0xff]  ;;  %v3861_v13 = vld [vmem:[#allocation13 + $0xb8] sm:$0xff] }
  0xc7   :  { %2824 = vpow2.f32 %v2754_v15  ;;  %v3853_v15 = vld [vmem:[#allocation13 + $0xd8] sm:$0xff]  ;;  %6007 = vst [vmem:[#allocation107_spill] sm:$0xff] %v3859_v5 }
  0xc8   :  { %v2753_v56 = vmul.f32 -1.442695, %v353_v60  ;;  %474 = vmatpush.msrb.mxu2 %v3851_v4  ;;  %534 = vmatpush.msra.mxu1 %v3853_v15  ;;  %v3867_v60 = vld [vmem:[#allocation13 + $0x80] sm:$0xff] }
  0xc9   :  { %6008 = vst [vmem:[#allocation108_spill] sm:$0xff] %v3867_v60 }
  0xca   :  { %2826 = vpow2.f32 %v2753_v56  ;;  %475 = vmatpush.msrb.mxu2 %v3859_v5  ;;  %535 = vmatpush.msra.mxu1 %v3861_v13  ;;  %v3877_v56 = vld [vmem:[#allocation13 + $0x60] sm:$0xff] }
  0xcb   :  { %6009 = vst [vmem:[#allocation109_spill] sm:$0xff] %v3877_v56 }
  0xcc   :  { %476 = vmatpush.msrb.mxu2 %v3867_v60  ;;  %536 = vmatpush.msra.mxu1 %v3869_v9 }
  0xcd   :  { %v2825_v11 = vpop.eup %2824 }
  0xce   :  { %v3871_v14 = vadd.f32 1.0, %v2825_v11  ;;  %477 = vmatpush.msrb.mxu2 %v3877_v56  ;;  %537 = vmatpush.msra.mxu1 %v3879_v7  ;;  %v3886_v11 = vld [vmem:[#allocation13 + $0x40] sm:$0xff] }
  0xcf   :  { %6010 = vst [vmem:[#allocation110_spill] sm:$0xff] %v3886_v11 }
  0xd0   :  { %2828 = vrcp.f32 %v3871_v14  ;;  %v2827_v20 = vpop.eup %2826  ;;  %478 = vmatpush.msrb.mxu2 %v3886_v11  ;;  %538 = vmatpush.msra.mxu1 %v3888_v16  ;;  %vm383_vm3 = vweird.f32 %v3871_v14 }
  0xd1   :  { %v357_v40 = vadd.f32 1.0, %v2827_v20 }
  0xd2   :  { %479 = vmatpush.msrb.mxu2 %v3894_v37  ;;  %539 = vmatpush.msra.mxu1 %v3896_v34 }
  0xd3   :  { %2830 = vrcp.f32 %v357_v40  ;;  %v369_v47 = vand.u32 2147483648, %v357_v40  ;;  %v367_v51 = vand.u32 2147483647, %v357_v40  ;;  %vm363_vm2 = vweird.f32 %v357_v40 }
  0xd4   :  { %480 = vmatpush.msrb.mxu2 %v3898_v23  ;;  %540 = vmatpush.msra.mxu1 %v3902_v43 }
  0xd5   :  { %v370_v46 = vor.u32 1.1754944e-38, %v369_v47  ;;  %vm368_vm6 = vcmp.eq.f32.partialorder %v367_v51, 8.507059e+37 }
  0xd6   :  { %v2829_v20 = vpop.eup %2828  ;;  %611 = vmatpush.msra.mxu2 %v3512_v2  ;;  %764 = vmatpush.msrb.mxu1 %v3743_v44 }
  0xd7   :  { %v379_v27 = vmul.f32 %v2829_v20, %v3871_v14  ;;  %vm384_vm5 = vweird.f32 %v2829_v20 }
  0xd8   :  { %765 = vmatpush.msrb.mxu1 %v3757_v54  ;;  %vm385_vm7 = vmor %vm383_vm3, %vm384_vm5 }
  0xd9   :  { %v2831_v30 = vpop.eup %2830  ;;  %v380_v49 = vsub.f32 1.0, %v379_v27  ;;  %v3928_v27 = vperm.slane %v3747_v29, 2 }
  0xda   :  { %v359_v33 = vmul.f32 %v2831_v30, %v357_v40  ;;  %766 = vmatpush.msrb.mxu1 %v3774_v41  ;;  %vm364_vm1 = vweird.f32 %v2831_v30 }
  0xdb   :  { %v381_v42 = vmul.f32 %v2829_v20, %v380_v49  ;;  %vm365_vm4 = vmor %vm363_vm2, %vm364_vm1  ;;  %v243_v29 = vadd.f32 %v242_v18, %v3928_v27  ;;  %v6020_v18 = vld [vmem:[#allocation23_spill] sm:$0xff] }
  0xdc   :  { %v360_v36 = vsub.f32 1.0, %v359_v33  ;;  %767 = vmatpush.msrb.mxu1 %v3784_v58  ;;  %v351_v33 = vadd.f32 %v350_v50, %v3922_v48 }
  0xde   :  { %v361_v39 = vmul.f32 %v2831_v30, %v360_v36  ;;  %768 = vmatpush.msrb.mxu1 %v3797_v3  ;;  %v389_v36 = vand.u32 2147483648, %v3871_v14  ;;  %v382_v3 = vadd.f32 %v2829_v20, %v381_v42 }
  0xe0   :  { %v362_v52 = vadd.f32 %v2831_v30, %v361_v39  ;;  %769 = vmatpush.msrb.mxu1 %v3806_v10  ;;  %v387_v39 = vand.u32 2147483647, %v3871_v14  ;;  %v390_v50 = vor.u32 1.1754944e-38, %v389_v36  ;;  %v386_v47 = vsel %vm385_vm7, %v2829_v20, %v382_v3  ;;  %v6018_v20 = vld [vmem:[#allocation22_spill] sm:$0xff] }
  0xe1   :  { %v6022_v36 = vld [vmem:[#allocation26_spill] sm:$0xff] }
  0xe2   :  { %v366_v53 = vsel %vm365_vm4, %v2831_v30, %v362_v52  ;;  %770 = vmatpush.msrb.mxu1 %v3825_v12  ;;  %vm388_vm8 = vcmp.eq.f32.partialorder %v387_v39, 8.507059e+37  ;;  %v3945_v52 = vld [vmem:[#allocation3] sm:$0x3]  ;;  %v6025_v39 = vld [vmem:[#allocation82_spill] sm:$0xff] }
  0xe3   :  { %v371_v49 = vsel %vm368_vm6, %v370_v46, %v366_v53  ;;  %v391_v30 = vsel %vm388_vm8, %v390_v50, %v386_v47  ;;  %v6017_v53 = vld [vmem:[#allocation74_spill] sm:$0xff]  ;;  %v6027_v50 = vld [vmem:[#allocation84_spill] sm:$0xff] }
  0xe4   :  { %v393_v40 = vmul.f32 %v371_v49, %v351_v33  ;;  %771 = vmatpush.msrb.mxu1 %v3834_v1  ;;  %v396_v42 = vsub.f32 1.0, %v391_v30  ;;  %v398_v51 = vmul.f32 %v391_v30, %v3639_v45  ;;  %v592_v45 = vld [vmem:[#allocation4 + $0x2] sm:$0x3]  ;;  %v6021_v33 = vld [vmem:[#allocation78_spill] sm:$0xff]  ;;  %v6029_v30 = vld [vmem:[#allocation87_spill] sm:$0xff] }
  0xe5   :  { %v6024_v49 = vld [vmem:[#allocation28_spill] sm:$0xff] }
  0xe6   :  { %v394_v48 = vadd.f32 %v393_v40, %v243_v29  ;;  %772 = vmatpush.msrb.mxu1 %v3843_v35  ;;  %v6023_v29 = vld [vmem:[#allocation80_spill] sm:$0xff]  ;;  %v6026_v40 = vld [vmem:[#allocation30_spill] sm:$0xff] }
  0xe7   :  { %v6028_v47 = vld [vmem:[#allocation32_spill] sm:$0xff] }
  0xe8   :  { %2832 = vtanh.f32 %v394_v48  ;;  %773 = vmatpush.msrb.mxu1 %v3851_v4 }
  0xea   :  { %774 = vmatpush.msrb.mxu1 %v3859_v5 }
  0xec   :  { %775 = vmatpush.msrb.mxu1 %v3867_v60 }
  0xee   :  { %v2833_v14 = vpop.eup %2832  ;;  %776 = vmatpush.msrb.mxu1 %v3877_v56 }
  0xef   :  { %v397_v46 = vmul.f32 %v2833_v14, %v396_v42  ;;  %v6030_v42 = vld [vmem:[#allocation34_spill] sm:$0xff] }
  0xf0   :  { %777 = vmatpush.msrb.mxu1 %v3886_v11  ;;  %v6031_v14 = vld [vmem:[#allocation90_spill] sm:$0xff] }
  0xf1   :  { %v3948_v3 = vadd.f32 %v398_v51, %v397_v46  ;;  %v6032_v46 = vld [vmem:[#allocation36_spill] sm:$0xff]  ;;  %v6033_v51 = vld [vmem:[#allocation94_spill] sm:$0xff] }
  0xf2   :  { %778 = vmatpush.msrb.mxu1 %v3894_v37 }
  0xf3   :  { %v400_v48 = vadd.f32 %v3948_v3, %v3945_v52 }
  0xf4   :  { %779 = vmatpush.msrb.mxu1 %v3898_v23 }
  0xf5   :  { %481 = vmatmul.f32.vlgmr.msrb.gmra.mxu2 %v400_v48  ;;  %501 = vmatmul.f32.vlgmr.msrb.gmra.mxu3 %v400_v48 }
  0xf6   :  { %521 = vmatmul.f32.vlgmr.msra.gmra.mxu0 %v400_v48  ;;  %541 = vmatmul.f32.vlgmr.msra.gmra.mxu1 %v400_v48  ;;  %v6034_v48 = vld [vmem:[#allocation38_spill] sm:$0xff] }
  0xf7   :  { %631 = vmatpush.msrb.mxu2 %v3553_v17  ;;  %804 = vmatpush.msrb.mxu3 %v3673_v55  ;;  %v6016_v17 = vld [vmem:[#allocation72_spill] sm:$0xff] }
  0xf8   :  { %824 = vmatpush.msra.mxu0 %v3745_v32  ;;  %910 = vmatpush.msra.mxu1 %v3512_v2  ;;  %v6015_v2 = vld [vmem:[#allocation70_spill] sm:$0xff] }
  0xf9   :  { %805 = vmatpush.msrb.mxu3 %v3679_v57 }
  0xfa   :  { %825 = vmatpush.msra.mxu0 %v3759_v22 }
  0xfb   :  { %806 = vmatpush.msrb.mxu3 %v3685_v59 }
  0xfc   :  { %826 = vmatpush.msra.mxu0 %v3776_v25 }
  0xfd   :  { %2757 = vmatmul.msk.f32.vlgmr.msra.gmra.mxu2 %vm181_vm0, %v592_v45  ;;  %692 = vmatmul.f32.vlgmr.msra.gmra.mxu3 %v3948_v3 }
  0xfe   :  { %712 = vmatmul.f32.vlgmr.msrb.gmra.mxu0 %v3948_v3  ;;  %651 = vmatpush.msra.mxu2 %v3580_v26  ;;  %v6019_v26 = vld [vmem:[#allocation76_spill] sm:$0xff] }
  0xff   :  { %807 = vmatpush.msrb.mxu3 %v3691_v61  ;;  %827 = vmatpush.msra.mxu0 %v3786_v6 }
 0x101   :  { %808 = vmatpush.msrb.mxu3 %v6015_v2  ;;  %828 = vmatpush.msra.mxu0 %v3801_v62 }
 0x103   :  { %809 = vmatpush.msrb.mxu3 %v6016_v17  ;;  %829 = vmatpush.msra.mxu0 %v3808_v8 }
 0x105   :  { %2758 = vmatmul.msk.f32.vlgmr.msrb.gmra.mxu2 %vm181_vm0, %v592_v45  ;;  %810 = vmatpush.msrb.mxu3 %v6017_v53 }
 0x106   :  { %656 = vmatpush.msrb.mxu2 %v6018_v20  ;;  %830 = vmatpush.msra.mxu0 %v3827_v0  ;;  %v6036_v20 = vld [vmem:[#allocation40_spill] sm:$0xff] }
 0x107   :  { %811 = vmatpush.msrb.mxu3 %v6019_v26 }
 0x108   :  { %657 = vmatpush.msrb.mxu2 %v6020_v18  ;;  %831 = vmatpush.msra.mxu0 %v3836_v63  ;;  %v6037_v18 = vld [vmem:[#allocation42_spill] sm:$0xff] }
 0x109   :  { %812 = vmatpush.msrb.mxu3 %v6021_v33 }
 0x10a   :  { %658 = vmatpush.msrb.mxu2 %v6022_v36  ;;  %832 = vmatpush.msra.mxu0 %v3845_v38  ;;  %v6038_v36 = vld [vmem:[#allocation44_spill] sm:$0xff] }
 0x10b   :  { %813 = vmatpush.msrb.mxu3 %v6023_v29 }
 0x10c   :  { %659 = vmatpush.msrb.mxu2 %v6024_v49  ;;  %833 = vmatpush.msra.mxu0 %v3853_v15  ;;  %v6039_v49 = vld [vmem:[#allocation47_spill] sm:$0xff] }
 0x10d   :  { %2759 = vmatmul.msk.f32.vlgmr.msra.gmra.mxu2 %vm181_vm0, %v592_v45  ;;  %814 = vmatpush.msrb.mxu3 %v6025_v39  ;;  %v6035_v45 = vld [vmem:[#allocation98_spill] sm:$0xff] }
 0x10e   :  { %660 = vmatpush.msrb.mxu2 %v6026_v40  ;;  %834 = vmatpush.msra.mxu0 %v3861_v13  ;;  %v6042_v40 = vld [vmem:[#allocation46_spill] sm:$0xff] }
 0x10f   :  { %815 = vmatpush.msrb.mxu3 %v6027_v50 }
 0x110   :  { %661 = vmatpush.msrb.mxu2 %v6028_v47  ;;  %835 = vmatpush.msra.mxu0 %v3869_v9  ;;  %v6043_v47 = vld [vmem:[#allocation99_spill] sm:$0xff] }
 0x111   :  { %816 = vmatpush.msrb.mxu3 %v6029_v30 }
 0x112   :  { %662 = vmatpush.msrb.mxu2 %v6030_v42  ;;  %836 = vmatpush.msra.mxu0 %v3879_v7  ;;  %v6045_v42 = vld [vmem:[#allocation49_spill] sm:$0xff] }
 0x113   :  { %817 = vmatpush.msrb.mxu3 %v6031_v14 }
 0x114   :  { %663 = vmatpush.msrb.mxu2 %v6032_v46  ;;  %837 = vmatpush.msra.mxu0 %v3888_v16  ;;  %v6047_v46 = vld [vmem:[#allocation52_spill] sm:$0xff] }
 0x115   :  { %818 = vmatpush.msrb.mxu3 %v6033_v51 }
 0x116   :  { %664 = vmatpush.msrb.mxu2 %v6034_v48  ;;  %838 = vmatpush.msra.mxu0 %v3896_v34  ;;  %v6049_v48 = vld [vmem:[#allocation55_spill] sm:$0xff] }
 0x117   :  { %819 = vmatpush.msrb.mxu3 %v6035_v45 }
 0x118   :  { %665 = vmatpush.msrb.mxu2 %v6036_v20  ;;  %839 = vmatpush.msra.mxu0 %v3902_v43  ;;  %v6050_v20 = vld [vmem:[#allocation67_spill] sm:$0xff] }
 0x119   :  { %995 = vmatpush.msra.mxu3 %v3559_v19  ;;  %v6040_v19 = vld [vmem:[#allocation50_spill] sm:$0xff] }
 0x11a   :  { %666 = vmatpush.msrb.mxu2 %v6037_v18  ;;  %1063 = vmatpush.msrb.mxu0 %v3743_v44  ;;  %v6051_v18 = vld [vmem:[#allocation58_spill] sm:$0xff] }
 0x11b   :  { %996 = vmatpush.msra.mxu3 %v3565_v21  ;;  %v6041_v21 = vld [vmem:[#allocation53_spill] sm:$0xff] }
 0x11c   :  { %667 = vmatpush.msrb.mxu2 %v6038_v36  ;;  %1064 = vmatpush.msrb.mxu0 %v3757_v54  ;;  %v6052_v36 = vld [vmem:[#allocation68_spill] sm:$0xff] }
 0x11d   :  { %997 = vmatpush.msra.mxu3 %v3574_v24  ;;  %v6044_v24 = vld [vmem:[#allocation56_spill] sm:$0xff] }
 0x11e   :  { %668 = vmatpush.msrb.mxu2 %v6039_v49  ;;  %1065 = vmatpush.msrb.mxu0 %v3774_v41  ;;  %v6053_v49 = vld [vmem:[#allocation59_spill] sm:$0xff] }
 0x11f   :  { %998 = vmatpush.msra.mxu3 %v3585_v28  ;;  %v6046_v28 = vld [vmem:[#allocation65_spill] sm:$0xff] }
 0x120   :  { %669 = vmatpush.msrb.mxu2 %v6040_v19  ;;  %1066 = vmatpush.msrb.mxu0 %v3784_v58  ;;  %v6054_v19 = vld [vmem:[#allocation69_spill] sm:$0xff] }
 0x121   :  { %999 = vmatpush.msra.mxu3 %v3595_v31  ;;  %v6048_v31 = vld [vmem:[#allocation66_spill] sm:$0xff] }
 0x122   :  { %670 = vmatpush.msrb.mxu2 %v6041_v21  ;;  %1067 = vmatpush.msrb.mxu0 %v6043_v47  ;;  %v6055_v21 = vld [vmem:[#allocation60_spill] sm:$0xff] }
 0x123   :  { %1000 = vmatpush.msra.mxu3 %v6042_v40  ;;  %v6056_v40 = vld [vmem:[#allocation71_spill] sm:$0xff] }
 0x124   :  { %671 = vmatpush.msrb.mxu2 %v6044_v24  ;;  %1068 = vmatpush.msrb.mxu0 %v3806_v10  ;;  %v6057_v24 = vld [vmem:[#allocation61_spill] sm:$0xff] }
 0x125   :  { %1001 = vmatpush.msra.mxu3 %v6045_v42  ;;  %672 = vmatmul.f32.vlgmr.msrb.gmra.mxu2 %v3948_v3  ;;  %v6058_v42 = vld [vmem:[#allocation73_spill] sm:$0xff] }
 0x126   :  { %784 = vmatpush.msra.mxu2 %v6046_v28  ;;  %1069 = vmatpush.msrb.mxu0 %v3825_v12  ;;  %v6059_v28 = vld [vmem:[#allocation62_spill] sm:$0xff] }
 0x127   :  { %1002 = vmatpush.msra.mxu3 %v6047_v46  ;;  %v6060_v46 = vld [vmem:[#allocation75_spill] sm:$0xff] }
 0x128   :  { %785 = vmatpush.msra.mxu2 %v6048_v31  ;;  %1070 = vmatpush.msrb.mxu0 %v3834_v1  ;;  %v6061_v31 = vld [vmem:[#allocation63_spill] sm:$0xff]  ;;  %v6092_v1 = vld [vmem:[#allocation102_spill] sm:$0xff] }
 0x129   :  { %1003 = vmatpush.msra.mxu3 %v6049_v48  ;;  %v6062_v48 = vld [vmem:[#allocation77_spill] sm:$0xff] }
 0x12a   :  { %786 = vmatpush.msra.mxu2 %v6050_v20  ;;  %1071 = vmatpush.msrb.mxu0 %v3843_v35  ;;  %v6063_v20 = vld [vmem:[#allocation64_spill] sm:$0xff] }
 0x12b   :  { %1004 = vmatpush.msra.mxu3 %v6051_v18  ;;  %v6064_v18 = vld [vmem:[#allocation79_spill] sm:$0xff] }
 0x12c   :  { %787 = vmatpush.msra.mxu2 %v6052_v36  ;;  %1072 = vmatpush.msrb.mxu0 %v3851_v4  ;;  %v6065_v36 = vld [vmem:[#allocation81_spill] sm:$0xff] }
 0x12d   :  { %1005 = vmatpush.msra.mxu3 %v6053_v49  ;;  %v6066_v49 = vld [vmem:[#allocation83_spill] sm:$0xff] }
 0x12e   :  { %788 = vmatpush.msra.mxu2 %v6054_v19  ;;  %1073 = vmatpush.msrb.mxu0 %v3859_v5  ;;  %v6067_v19 = vld [vmem:[#allocation86_spill] sm:$0xff] }
 0x12f   :  { %1006 = vmatpush.msra.mxu3 %v6055_v21  ;;  %v6068_v21 = vld [vmem:[#allocation89_spill] sm:$0xff] }
 0x130   :  { %789 = vmatpush.msra.mxu2 %v6056_v40  ;;  %1074 = vmatpush.msrb.mxu0 %v3867_v60  ;;  %v6069_v40 = vld [vmem:[#allocation93_spill] sm:$0xff] }
 0x131   :  { %1007 = vmatpush.msra.mxu3 %v6057_v24  ;;  %v6070_v24 = vld [vmem:[#allocation97_spill] sm:$0xff] }
 0x132   :  { %790 = vmatpush.msra.mxu2 %v6058_v42  ;;  %1075 = vmatpush.msrb.mxu0 %v3877_v56  ;;  %v6071_v42 = vld [vmem:[#allocation24_spill] sm:$0xff] }
 0x133   :  { %1008 = vmatpush.msra.mxu3 %v6059_v28  ;;  %v6072_v28 = vld [vmem:[#allocation25_spill] sm:$0xff] }
 0x134   :  { %791 = vmatpush.msra.mxu2 %v6060_v46  ;;  %1076 = vmatpush.msrb.mxu0 %v3886_v11  ;;  %v6073_v46 = vld [vmem:[#allocation27_spill] sm:$0xff] }
 0x135   :  { %1009 = vmatpush.msra.mxu3 %v6061_v31  ;;  %v6074_v31 = vld [vmem:[#allocation29_spill] sm:$0xff] }
 0x136   :  { %792 = vmatpush.msra.mxu2 %v6062_v48  ;;  %1077 = vmatpush.msrb.mxu0 %v3894_v37  ;;  %v6075_v48 = vld [vmem:[#allocation31_spill] sm:$0xff]  ;;  %v6090_v37 = vld [vmem:[#allocation96_spill] sm:$0xff] }
 0x137   :  { %1010 = vmatpush.msra.mxu3 %v6063_v20  ;;  %v6076_v20 = vld [vmem:[#allocation33_spill] sm:$0xff] }
 0x138   :  { %793 = vmatpush.msra.mxu2 %v6064_v18  ;;  %1078 = vmatpush.msrb.mxu0 %v3898_v23  ;;  %v6077_v18 = vld [vmem:[#allocation35_spill] sm:$0xff] }
 0x13a   :  { %794 = vmatpush.msra.mxu2 %v6065_v36  ;;  %v6078_v36 = vld [vmem:[#allocation37_spill] sm:$0xff] }
 0x13c   :  { %795 = vmatpush.msra.mxu2 %v6066_v49  ;;  %v6079_v49 = vld [vmem:[#allocation39_spill] sm:$0xff] }
 0x13e   :  { %796 = vmatpush.msra.mxu2 %v6067_v19  ;;  %v6080_v19 = vld [vmem:[#allocation41_spill] sm:$0xff] }
 0x140   :  { %797 = vmatpush.msra.mxu2 %v6068_v21  ;;  %v6081_v21 = vld [vmem:[#allocation43_spill] sm:$0xff] }
 0x142   :  { %798 = vmatpush.msra.mxu2 %v6069_v40  ;;  %v6082_v40 = vld [vmem:[#allocation45_spill] sm:$0xff] }
 0x144   :  { %799 = vmatpush.msra.mxu2 %v6070_v24  ;;  %v6083_v24 = vld [vmem:[#allocation48_spill] sm:$0xff] }
 0x146   :  { %975 = vmatpush.msrb.mxu2 %v6071_v42  ;;  %v6084_v42 = vld [vmem:[#allocation51_spill] sm:$0xff] }
 0x148   :  { %976 = vmatpush.msrb.mxu2 %v6072_v28  ;;  %v6085_v28 = vld [vmem:[#allocation54_spill] sm:$0xff] }
 0x14a   :  { %977 = vmatpush.msrb.mxu2 %v6073_v46  ;;  %v6086_v46 = vld [vmem:[#allocation57_spill] sm:$0xff] }
 0x14c   :  { %978 = vmatpush.msrb.mxu2 %v6074_v31 }
 0x14e   :  { %979 = vmatpush.msrb.mxu2 %v6075_v48  ;;  %v161_v48 = vld [vmem:[%s5579_s6] sm:$0xf] }
 0x14f   :  { %v4112_v10 = vperm.slane %v161_v48, 2 }
 0x150   :  { %980 = vmatpush.msrb.mxu2 %v6076_v20  ;;  %v4078_v20 = vperm.slane %v161_v48, 0 }
 0x152   :  { %981 = vmatpush.msrb.mxu2 %v6077_v18  ;;  %6087 = vst [vmem:[#allocation70_spill] sm:$0xff] %v4078_v20 }
 0x154   :  { %982 = vmatpush.msrb.mxu2 %v6078_v36 }
 0x156   :  { %983 = vmatpush.msrb.mxu2 %v6079_v49 }
 0x158   :  { %984 = vmatpush.msrb.mxu2 %v6080_v19 }
 0x15a   :  { %985 = vmatpush.msrb.mxu2 %v6081_v21 }
 0x15c   :  { %986 = vmatpush.msrb.mxu2 %v6082_v40  ;;  %v4081_v40 = vperm.slane %v161_v48, 1 }
 0x15e   :  { %987 = vmatpush.msrb.mxu2 %v6083_v24  ;;  %6088 = vst [vmem:[#allocation72_spill] sm:$0xff] %v4081_v40 }
 0x160   :  { %988 = vmatpush.msrb.mxu2 %v6084_v42  ;;  %v6089_v42 = vld [vmem:[#allocation91_spill] sm:$0xff] }
 0x162   :  { %989 = vmatpush.msrb.mxu2 %v6085_v28 }
 0x164   :  { %990 = vmatpush.msrb.mxu2 %v6086_v46 }
 0x178   :  { %v482_v31 = vpop.f32.mrf.mxu2  ;;  %v502_v49 = vpop.f32.mrf.mxu3 }
 0x179   :  { %v483_v36 = vadd.f32 %v482_v31, %v4078_v20  ;;  %v503_v23 = vadd.f32 %v502_v49, %v4081_v40  ;;  %v6091_v20 = vld [vmem:[#allocation101_spill] sm:$0xff] }
 0x17b   :  { %v2755_v19 = vmul.f32 -1.442695, %v483_v36  ;;  %v2756_v4 = vmul.f32 -1.442695, %v503_v23 }
 0x17d   :  { %2834 = vpow2.f32 %v2755_v19 }
 0x180   :  { %v613_v18 = vpop.f32.mrf.mxu2  ;;  %v693_v24 = vpop.f32.mrf.mxu3 }
 0x181   :  { %v694_v11 = vadd.f32 %v693_v24, %v6090_v37  ;;  %v614_v35 = vadd.f32 %v613_v18, %v6091_v20 }
 0x183   :  { %v2835_v46 = vpop.eup %2834 }
 0x184   :  { %v548_v56 = vadd.f32 1.0, %v2835_v46 }
 0x186   :  { %2836 = vrcp.f32 %v548_v56  ;;  %vm554_vm10 = vweird.f32 %v548_v56 }
 0x187   :  { %2838 = vpow2.f32 %v2756_v4 }
 0x188   :  { %v633_v21 = vpop.f32.mrf.mxu2 }
 0x189   :  { %v634_v28 = vadd.f32 %v633_v21, %v6089_v42 }
 0x18b   :  { %v736_v60 = vadd.f32 %v694_v11, %v634_v28 }
 0x18c   :  { %v2837_v36 = vpop.eup %2836 }
 0x18d   :  { %v2761_v31 = vmul.f32 -1.442695, %v736_v60  ;;  %v2839_v42 = vpop.eup %2838  ;;  %v550_v12 = vmul.f32 %v2837_v36, %v548_v56  ;;  %vm555_vm9 = vweird.f32 %v2837_v36 }
 0x18e   :  { %v4090_v24 = vadd.f32 1.0, %v2839_v42  ;;  %v542_v42 = vpop.f32.mrf.mxu1  ;;  %vm556_vm11 = vmor %vm554_vm10, %vm555_vm9 }
 0x18f   :  { %2840 = vpow2.f32 %v2761_v31  ;;  %v551_v28 = vsub.f32 1.0, %v550_v12  ;;  %v4098_v31 = vperm.slane %v161_v48, 3 }
 0x190   :  { %v4086_v5 = vpop.f32.mrf.mxu2  ;;  %vm573_vm2 = vweird.f32 %v4090_v24 }
 0x191   :  { %v552_v23 = vmul.f32 %v2837_v36, %v551_v28  ;;  %6093 = vst [vmem:[#allocation74_spill] sm:$0xff] %v4098_v31  ;;  %v543_v28 = vadd.f32 %v542_v42, %v4098_v31 }
 0x195   :  { %v2841_v40 = vpop.eup %2840 }
 0x196   :  { %v4092_v46 = vadd.f32 1.0, %v2841_v40  ;;  %v522_v40 = vpop.f32.mrf.mxu0 }
 0x198   :  { %vm746_vm6 = vweird.f32 %v4092_v46 }
 0x1a8   :  { %v673_v19 = vpop.f32.mrf.mxu2 }
 0x1a9   :  { %v674_v21 = vadd.f32 %v673_v19, %v6092_v1  ;;  %v560_v19 = vand.u32 2147483648, %v548_v56 }
 0x1ab   :  { %v716_v49 = vadd.f32 %v674_v21, %v614_v35  ;;  %v553_v35 = vadd.f32 %v2837_v36, %v552_v23  ;;  %v558_v21 = vand.u32 2147483647, %v548_v56 }
 0x1ad   :  { %v2760_v11 = vmul.f32 -1.442695, %v716_v49  ;;  %v557_v23 = vsel %vm556_vm11, %v2837_v36, %v553_v35  ;;  %vm559_vm12 = vcmp.eq.f32.partialorder %v558_v21, 8.507059e+37  ;;  %v523_v36 = vadd.f32 %v522_v40, %v4112_v10  ;;  %v713_v35 = vpop.f32.mrf.mxu0 }
 0x1af   :  { %2842 = vpow2.f32 %v2760_v11  ;;  %v4107_v11 = vld [vmem:[%s5580_s7] ss:$0 sm:$0xff] }
 0x1b0   :  { %2844 = vrcp.f32 %v4090_v24  ;;  %v583_v47 = vadd.f32 %v4107_v11, %v543_v28  ;;  %v6094_v28 = vld [vmem:[#allocation114_spill] sm:$0xff] }
 0x1b1   :  { %2846 = vrcp.f32 %v4092_v46 }
 0x1b5   :  { %v2843_v4 = vpop.eup %2842 }
 0x1b6   :  { %v720_v60 = vadd.f32 1.0, %v2843_v4  ;;  %v4096_v18 = vpop.eup %2844  ;;  %v561_v4 = vor.u32 1.1754944e-38, %v560_v19 }
 0x1b7   :  { %v4100_v12 = vpop.eup %2846  ;;  %v569_v49 = vmul.f32 %v4096_v18, %v4090_v24  ;;  %vm574_vm15 = vweird.f32 %v4096_v18 }
 0x1b8   :  { %2848 = vrcp.f32 %v720_v60  ;;  %v742_v1 = vmul.f32 %v4100_v12, %v4092_v46  ;;  %v562_v37 = vsel %vm559_vm12, %v561_v4, %v557_v23  ;;  %v732_v42 = vand.u32 2147483648, %v720_v60  ;;  %vm4126_vm5 = vmor %vm573_vm2, %vm574_vm15 }
 0x1b9   :  { %v570_v56 = vsub.f32 1.0, %v569_v49  ;;  %v584_v54 = vmul.f32 %v583_v47, %v562_v37  ;;  %v730_v21 = vand.u32 2147483647, %v720_v60  ;;  %vm726_vm14 = vweird.f32 %v720_v60 }
 0x1ba   :  { %v743_v41 = vsub.f32 1.0, %v742_v1  ;;  %v714_v1 = vadd.f32 %v713_v35, %v6094_v28  ;;  %v733_v37 = vor.u32 1.1754944e-38, %v732_v42  ;;  %v579_v47 = vand.u32 2147483648, %v4090_v24 }
 0x1bb   :  { %v571_v43 = vmul.f32 %v4096_v18, %v570_v56  ;;  %v585_v48 = vadd.f32 %v584_v54, %v523_v36  ;;  %vm731_vm3 = vcmp.eq.f32.partialorder %v730_v21, 8.507059e+37  ;;  %vm747_vm4 = vweird.f32 %v4100_v12 }
 0x1bc   :  { %v744_v23 = vmul.f32 %v4100_v12, %v743_v41  ;;  %v577_v54 = vand.u32 2147483647, %v4090_v24  ;;  %v752_v4 = vand.u32 2147483648, %v4092_v46  ;;  %v580_v24 = vor.u32 1.1754944e-38, %v579_v47  ;;  %vm748_vm7 = vmor %vm746_vm6, %vm747_vm4 }
 0x1bd   :  { %2850 = vtanh.f32 %v585_v48 }
 0x1be   :  { %v2849_v20 = vpop.eup %2848  ;;  %v745_v40 = vadd.f32 %v4100_v12, %v744_v23  ;;  %vm578_vm8 = vcmp.eq.f32.partialorder %v577_v54, 8.507059e+37  ;;  %v4272_v54 = vld [vmem:[#allocation10 + $0xd0] sm:$0xff] }
 0x1bf   :  { %v722_v58 = vmul.f32 %v2849_v20, %v720_v60  ;;  %vm727_vm13 = vweird.f32 %v2849_v20  ;;  %6123 = vst [vmem:[#allocation42_spill] sm:$0xff] %v4272_v54  ;;  %v6124_v60 = vld [vmem:[#allocation103_spill] sm:$0xff] }
 0x1c0   :  { %vm728_vm1 = vmor %vm726_vm14, %vm727_vm13  ;;  %v749_v35 = vsel %vm748_vm7, %v4100_v12, %v745_v40  ;;  %v4147_v40 = vld [vmem:[#allocation7 + $0x8] sm:$0xff] }
 0x1c1   :  { %v723_v44 = vsub.f32 1.0, %v722_v58  ;;  %v572_v58 = vadd.f32 %v4096_v18, %v571_v43  ;;  %v654_v43 = vadd.f32 %v4086_v5, %v3928_v27 }
 0x1c3   :  { %v724_v19 = vmul.f32 %v2849_v20, %v723_v44  ;;  %v576_v42 = vsel %vm4126_vm5, %v4096_v18, %v572_v58  ;;  %v2851_v5 = vpop.eup %2850 }
 0x1c4   :  { %v581_v21 = vsel %vm578_vm8, %v580_v24, %v576_v42  ;;  %v4286_v42 = vld [vmem:[#allocation10 + $0xa0] sm:$0xff] }
 0x1c5   :  { %v725_v49 = vadd.f32 %v2849_v20, %v724_v19  ;;  %v753_v19 = vor.u32 1.1754944e-38, %v752_v4  ;;  %v589_v18 = vmul.f32 %v581_v21, %v3945_v52  ;;  %v4152_v52 = vld [vmem:[#allocation7] sm:$0xff]  ;;  %v4276_v4 = vld [vmem:[#allocation13 + $0x1c8] sm:$0xff]  ;;  %6129 = vst [vmem:[#allocation53_spill] sm:$0xff] %v4286_v42 }
 0x1c6   :  { %6125 = vst [vmem:[#allocation44_spill] sm:$0xff] %v4276_v4  ;;  %v6130_v24 = vld [vmem:[#allocation105_spill] sm:$0xff] }
 0x1c7   :  { %v729_v44 = vsel %vm728_vm1, %v2849_v20, %v725_v49  ;;  %v750_v20 = vand.u32 2147483647, %v4092_v46  ;;  %v587_v49 = vsub.f32 1.0, %v581_v21  ;;  %v4297_v21 = vld [vmem:[#allocation13 + $0x168] sm:$0xff] }
 0x1c8   :  { %v734_v41 = vsel %vm731_vm3, %v733_v37, %v729_v44  ;;  %6134 = vst [vmem:[#allocation49_spill] sm:$0xff] %v4297_v21 }
 0x1c9   :  { %v756_v56 = vmul.f32 %v734_v41, %v714_v1  ;;  %vm751_vm9 = vcmp.eq.f32.partialorder %v750_v20, 8.507059e+37  ;;  %v588_v1 = vmul.f32 %v2851_v5, %v587_v49  ;;  %v4269_v41 = vld [vmem:[#allocation13 + $0x1e8] sm:$0xff] }
 0x1ca   :  { %v754_v23 = vsel %vm751_vm9, %v753_v19, %v749_v35  ;;  %6122 = vst [vmem:[#allocation40_spill] sm:$0xff] %v4269_v41  ;;  %v4283_v20 = vld [vmem:[#allocation13 + $0x1a8] sm:$0xff] }
 0x1cb   :  { %v757_v36 = vadd.f32 %v756_v56, %v654_v43  ;;  %v759_v48 = vsub.f32 1.0, %v754_v23  ;;  %v761_v37 = vmul.f32 %v754_v23, %v3948_v3  ;;  %v4141_v47 = vadd.f32 %v589_v18, %v588_v1  ;;  %v891_v3 = vld [vmem:[#allocation4 + $0x4] sm:$0x3]  ;;  %6128 = vst [vmem:[#allocation50_spill] sm:$0xff] %v4283_v20  ;;  %v4293_v35 = vld [vmem:[#allocation10 + $0x88] sm:$0xff]  ;;  %v4300_v5 = vld [vmem:[#allocation10 + $0x70] sm:$0xff] }
 0x1cc   :  { %v4279_v43 = vld [vmem:[#allocation10 + $0xb8] sm:$0xff]  ;;  %6132 = vst [vmem:[#allocation56_spill] sm:$0xff] %v4293_v35  ;;  %v6133_v19 = vld [vmem:[#allocation106_spill] sm:$0xff]  ;;  %v6136_v23 = vld [vmem:[#allocation107_spill] sm:$0xff] }
 0x1cd   :  { %2852 = vtanh.f32 %v757_v36  ;;  %6126 = vst [vmem:[#allocation47_spill] sm:$0xff] %v4279_v43  ;;  %v6127_v56 = vld [vmem:[#allocation104_spill] sm:$0xff]  ;;  %v4290_v36 = vld [vmem:[#allocation13 + $0x188] sm:$0xff]  ;;  %v6142_v18 = vld [vmem:[#allocation109_spill] sm:$0xff] }
 0x1ce   :  { %6131 = vst [vmem:[#allocation46_spill] sm:$0xff] %v4290_v36  ;;  %v4304_v49 = vld [vmem:[#allocation13 + $0x148] sm:$0xff]  ;;  %v6139_v1 = vld [vmem:[#allocation108_spill] sm:$0xff] }
 0x1cf   :  { %6135 = vst [vmem:[#allocation65_spill] sm:$0xff] %v4300_v5 }
 0x1d0   :  { %6137 = vst [vmem:[#allocation52_spill] sm:$0xff] %v4304_v49 }
 0x1d3   :  { %v2853_v46 = vpop.eup %2852 }
 0x1d4   :  { %v760_v58 = vmul.f32 %v2853_v46, %v759_v48  ;;  %v4307_v48 = vld [vmem:[#allocation10 + $0x58] sm:$0xff]  ;;  %v4311_v46 = vld [vmem:[#allocation13 + $0x128] sm:$0xff] }
 0x1d5   :  { %6138 = vst [vmem:[#allocation66_spill] sm:$0xff] %v4307_v48 }
 0x1d6   :  { %v4143_v44 = vadd.f32 %v761_v37, %v760_v58  ;;  %6140 = vst [vmem:[#allocation55_spill] sm:$0xff] %v4311_v46  ;;  %v4314_v37 = vld [vmem:[#allocation10 + $0x40] sm:$0xff]  ;;  %v4318_v58 = vld [vmem:[#allocation13 + $0x108] sm:$0xff] }
 0x1d7   :  { %6141 = vst [vmem:[#allocation67_spill] sm:$0xff] %v4314_v37 }
 0x1d8   :  { %v763_v12 = vadd.f32 %v4143_v44, %v4141_v47  ;;  %6143 = vst [vmem:[#allocation58_spill] sm:$0xff] %v4318_v58 }
 0x1da   :  { %780 = vmatmul.f32.vlgmr.msrb.gmra.mxu1 %v763_v12  ;;  %800 = vmatmul.f32.vlgmr.msra.gmra.mxu2 %v763_v12 }
 0x1db   :  { %820 = vmatmul.f32.vlgmr.msrb.gmra.mxu3 %v763_v12  ;;  %840 = vmatmul.f32.vlgmr.msra.gmra.mxu0 %v763_v12  ;;  %v4321_v12 = vld [vmem:[#allocation10 + $0x28] sm:$0xff] }
 0x1dc   :  { %930 = vmatpush.msrb.mxu1 %v4147_v40  ;;  %1103 = vmatpush.msra.mxu2 %v3673_v55  ;;  %v4194_v55 = vld [vmem:[#allocation10 + $0x108] sm:$0xff]  ;;  %6144 = vst [vmem:[#allocation68_spill] sm:$0xff] %v4321_v12 }
 0x1dd   :  { %1123 = vmatpush.msrb.mxu3 %v3745_v32  ;;  %1209 = vmatpush.msra.mxu0 %v4152_v52  ;;  %v4162_v32 = vld [vmem:[#allocation7 + $0x10] sm:$0xff] }
 0x1de   :  { %1104 = vmatpush.msra.mxu2 %v3679_v57  ;;  %v4199_v57 = vld [vmem:[#allocation10 + $0xf0] sm:$0xff] }
 0x1df   :  { %1124 = vmatpush.msrb.mxu3 %v3759_v22  ;;  %v4173_v22 = vld [vmem:[#allocation10 + $0x168] sm:$0xff]  ;;  %6097 = vst [vmem:[#allocation22_spill] sm:$0xff] %v4199_v57 }
 0x1e0   :  { %1105 = vmatpush.msra.mxu2 %v3685_v59  ;;  %v4204_v59 = vld [vmem:[#allocation10 + $0xd8] sm:$0xff] }
 0x1e1   :  { %1125 = vmatpush.msrb.mxu3 %v3776_v25  ;;  %v4188_v25 = vld [vmem:[#allocation10 + $0x120] sm:$0xff]  ;;  %6098 = vst [vmem:[#allocation76_spill] sm:$0xff] %v4204_v59 }
 0x1e2   :  { %2764 = vmatmul.msk.f32.vlgmr.msra.gmra.mxu1 %vm181_vm0, %v891_v3  ;;  %991 = vmatmul.f32.vlgmr.msrb.gmra.mxu2 %v4143_v44 }
 0x1e3   :  { %1011 = vmatmul.f32.vlgmr.msra.gmra.mxu3 %v4143_v44  ;;  %950 = vmatpush.msra.mxu1 %v4162_v32 }
 0x1e4   :  { %1106 = vmatpush.msra.mxu2 %v3691_v61  ;;  %1126 = vmatpush.msrb.mxu3 %v3786_v6  ;;  %v4178_v6 = vld [vmem:[#allocation10 + $0x150] sm:$0xff]  ;;  %v4209_v61 = vld [vmem:[#allocation10 + $0xc0] sm:$0xff] }
 0x1e5   :  { %6099 = vst [vmem:[#allocation23_spill] sm:$0xff] %v4209_v61 }
 0x1e6   :  { %1107 = vmatpush.msra.mxu2 %v6015_v2  ;;  %1127 = vmatpush.msrb.mxu3 %v3801_v62  ;;  %v4214_v62 = vld [vmem:[#allocation10 + $0xa8] sm:$0xff] }
 0x1e7   :  { %6100 = vst [vmem:[#allocation78_spill] sm:$0xff] %v4214_v62  ;;  %v4240_v2 = vld [vmem:[#allocation10 + $0x48] sm:$0xff] }
 0x1e8   :  { %1108 = vmatpush.msra.mxu2 %v6016_v17  ;;  %1128 = vmatpush.msrb.mxu3 %v3808_v8  ;;  %v4183_v8 = vld [vmem:[#allocation10 + $0x138] sm:$0xff]  ;;  %6110 = vst [vmem:[#allocation32_spill] sm:$0xff] %v4240_v2  ;;  %v4243_v17 = vld [vmem:[#allocation10 + $0x130] sm:$0xff] }
 0x1e9   :  { %6111 = vst [vmem:[#allocation87_spill] sm:$0xff] %v4243_v17 }
 0x1ea   :  { %2765 = vmatmul.msk.f32.vlgmr.msrb.gmra.mxu1 %vm181_vm0, %v891_v3  ;;  %1109 = vmatpush.msra.mxu2 %v6017_v53  ;;  %v6112_v53 = vld [vmem:[#allocation92_spill] sm:$0xff] }
 0x1eb   :  { %955 = vmatpush.msrb.mxu1 %v4173_v22  ;;  %1129 = vmatpush.msrb.mxu3 %v3827_v0  ;;  %v6103_v0 = vld [vmem:[#allocation113_spill] sm:$0xff] }
 0x1ec   :  { %1110 = vmatpush.msra.mxu2 %v6019_v26  ;;  %v4247_v26 = vld [vmem:[#allocation10 + $0x30] sm:$0xff] }
 0x1ed   :  { %956 = vmatpush.msrb.mxu1 %v4178_v6  ;;  %1130 = vmatpush.msrb.mxu3 %v3836_v63  ;;  %v4229_v63 = vld [vmem:[#allocation10 + $0x160] sm:$0xff]  ;;  %6113 = vst [vmem:[#allocation34_spill] sm:$0xff] %v4247_v26 }
 0x1ee   :  { %1111 = vmatpush.msra.mxu2 %v6021_v33  ;;  %6105 = vst [vmem:[#allocation82_spill] sm:$0xff] %v4229_v63  ;;  %v4250_v33 = vld [vmem:[#allocation10 + $0x118] sm:$0xff] }
 0x1ef   :  { %957 = vmatpush.msrb.mxu1 %v4183_v8  ;;  %1131 = vmatpush.msrb.mxu3 %v3845_v38  ;;  %v4233_v38 = vld [vmem:[#allocation10 + $0x60] sm:$0xff]  ;;  %6114 = vst [vmem:[#allocation90_spill] sm:$0xff] %v4250_v33 }
 0x1f0   :  { %1112 = vmatpush.msra.mxu2 %v6023_v29  ;;  %6107 = vst [vmem:[#allocation30_spill] sm:$0xff] %v4233_v38  ;;  %v6115_v29 = vld [vmem:[#allocation95_spill] sm:$0xff] }
 0x1f1   :  { %958 = vmatpush.msrb.mxu1 %v4188_v25  ;;  %1132 = vmatpush.msrb.mxu3 %v3853_v15  ;;  %v4236_v15 = vld [vmem:[#allocation10 + $0x148] sm:$0xff] }
 0x1f2   :  { %2766 = vmatmul.msk.f32.vlgmr.msra.gmra.mxu1 %vm181_vm0, %v891_v3  ;;  %1113 = vmatpush.msra.mxu2 %v6025_v39  ;;  %6108 = vst [vmem:[#allocation84_spill] sm:$0xff] %v4236_v15  ;;  %v4254_v39 = vld [vmem:[#allocation10 + $0x18] sm:$0xff]  ;;  %v6145_v3 = vld [vmem:[#allocation110_spill] sm:$0xff] }
 0x1f3   :  { %959 = vmatpush.msrb.mxu1 %v4194_v55  ;;  %1133 = vmatpush.msrb.mxu3 %v3861_v13  ;;  %v6109_v13 = vld [vmem:[#allocation88_spill] sm:$0xff]  ;;  %6116 = vst [vmem:[#allocation36_spill] sm:$0xff] %v4254_v39 }
 0x1f4   :  { %1114 = vmatpush.msra.mxu2 %v6027_v50  ;;  %v4257_v50 = vld [vmem:[#allocation10 + $0x100] sm:$0xff] }
 0x1f5   :  { %960 = vmatpush.msrb.mxu1 %v4199_v57  ;;  %1134 = vmatpush.msrb.mxu3 %v3869_v9  ;;  %v4219_v9 = vld [vmem:[#allocation10 + $0x90] sm:$0xff]  ;;  %6117 = vst [vmem:[#allocation94_spill] sm:$0xff] %v4257_v50 }
 0x1f6   :  { %1115 = vmatpush.msra.mxu2 %v6029_v30  ;;  %6101 = vst [vmem:[#allocation26_spill] sm:$0xff] %v4219_v9  ;;  %v6118_v30 = vld [vmem:[#allocation99_spill] sm:$0xff] }
 0x1f7   :  { %961 = vmatpush.msrb.mxu1 %v4204_v59  ;;  %1135 = vmatpush.msrb.mxu3 %v3879_v7  ;;  %v4222_v7 = vld [vmem:[#allocation10 + $0x178] sm:$0xff] }
 0x1f8   :  { %1116 = vmatpush.msra.mxu2 %v6031_v14  ;;  %6102 = vst [vmem:[#allocation80_spill] sm:$0xff] %v4222_v7  ;;  %v4261_v14 = vld [vmem:[#allocation10] sm:$0xff] }
 0x1f9   :  { %962 = vmatpush.msrb.mxu1 %v4209_v61  ;;  %1136 = vmatpush.msrb.mxu3 %v3888_v16  ;;  %v4226_v16 = vld [vmem:[#allocation10 + $0x78] sm:$0xff]  ;;  %6119 = vst [vmem:[#allocation38_spill] sm:$0xff] %v4261_v14 }
 0x1fa   :  { %1117 = vmatpush.msra.mxu2 %v6033_v51  ;;  %6104 = vst [vmem:[#allocation28_spill] sm:$0xff] %v4226_v16  ;;  %v4264_v51 = vld [vmem:[#allocation10 + $0xe8] sm:$0xff] }
 0x1fb   :  { %963 = vmatpush.msrb.mxu1 %v4214_v62  ;;  %1137 = vmatpush.msrb.mxu3 %v3896_v34  ;;  %v6106_v34 = vld [vmem:[#allocation85_spill] sm:$0xff]  ;;  %6120 = vst [vmem:[#allocation98_spill] sm:$0xff] %v4264_v51 }
 0x1fc   :  { %1118 = vmatpush.msra.mxu2 %v6035_v45  ;;  %v6121_v45 = vld [vmem:[#allocation100_spill] sm:$0xff] }
 0x1fd   :  { %964 = vmatpush.msrb.mxu1 %v4219_v9  ;;  %1138 = vmatpush.msrb.mxu3 %v6103_v0  ;;  %v4325_v0 = vld [vmem:[#allocation13 + $0xe8] sm:$0xff] }
 0x1fe   :  { %1294 = vmatpush.msrb.mxu2 %v4222_v7  ;;  %6146 = vst [vmem:[#allocation59_spill] sm:$0xff] %v4325_v0 }
 0x1ff   :  { %965 = vmatpush.msrb.mxu1 %v4226_v16  ;;  %1362 = vmatpush.msra.mxu3 %v6106_v34  ;;  %v4328_v34 = vld [vmem:[#allocation10 + $0x10] sm:$0xff] }
 0x200   :  { %1295 = vmatpush.msrb.mxu2 %v4229_v63  ;;  %6147 = vst [vmem:[#allocation69_spill] sm:$0xff] %v4328_v34 }
 0x201   :  { %966 = vmatpush.msrb.mxu1 %v4233_v38  ;;  %1363 = vmatpush.msra.mxu3 %v6109_v13  ;;  %v6148_v13 = vld [vmem:[#allocation111_spill] sm:$0xff] }
 0x202   :  { %1296 = vmatpush.msrb.mxu2 %v4236_v15 }
 0x203   :  { %967 = vmatpush.msrb.mxu1 %v4240_v2  ;;  %1364 = vmatpush.msra.mxu3 %v6112_v53  ;;  %v4332_v53 = vld [vmem:[#allocation13 + $0xc8] sm:$0xff] }
 0x204   :  { %1297 = vmatpush.msrb.mxu2 %v4243_v17  ;;  %6149 = vst [vmem:[#allocation60_spill] sm:$0xff] %v4332_v53 }
 0x205   :  { %968 = vmatpush.msrb.mxu1 %v4247_v26  ;;  %1365 = vmatpush.msra.mxu3 %v6115_v29  ;;  %v6150_v29 = vld [vmem:[#allocation112_spill] sm:$0xff] }
 0x206   :  { %1298 = vmatpush.msrb.mxu2 %v4250_v33 }
 0x207   :  { %969 = vmatpush.msrb.mxu1 %v4254_v39  ;;  %1366 = vmatpush.msra.mxu3 %v6118_v30  ;;  %v4336_v30 = vld [vmem:[#allocation13 + $0xa8] sm:$0xff] }
 0x208   :  { %1299 = vmatpush.msrb.mxu2 %v4257_v50  ;;  %6151 = vst [vmem:[#allocation71_spill] sm:$0xff] %v4336_v30 }
 0x209   :  { %970 = vmatpush.msrb.mxu1 %v4261_v14  ;;  %1367 = vmatpush.msra.mxu3 %v6121_v45  ;;  %v4339_v45 = vld [vmem:[#allocation13 + $0x88] sm:$0xff] }
 0x20a   :  { %1300 = vmatpush.msrb.mxu2 %v4264_v51  ;;  %971 = vmatmul.f32.vlgmr.msrb.gmra.mxu1 %v4143_v44  ;;  %6152 = vst [vmem:[#allocation61_spill] sm:$0xff] %v4339_v45 }
 0x20b   :  { %1083 = vmatpush.msra.mxu1 %v4269_v41  ;;  %1368 = vmatpush.msra.mxu3 %v6124_v60  ;;  %v4342_v60 = vld [vmem:[#allocation13 + $0x68] sm:$0xff] }
 0x20c   :  { %1301 = vmatpush.msrb.mxu2 %v4272_v54  ;;  %6153 = vst [vmem:[#allocation73_spill] sm:$0xff] %v4342_v60 }
 0x20d   :  { %1084 = vmatpush.msra.mxu1 %v4276_v4  ;;  %1369 = vmatpush.msra.mxu3 %v6127_v56  ;;  %v4345_v56 = vld [vmem:[#allocation13 + $0x48] sm:$0xff] }
 0x20e   :  { %1302 = vmatpush.msrb.mxu2 %v4279_v43  ;;  %6154 = vst [vmem:[#allocation62_spill] sm:$0xff] %v4345_v56 }
 0x20f   :  { %1085 = vmatpush.msra.mxu1 %v4283_v20  ;;  %1370 = vmatpush.msra.mxu3 %v6130_v24  ;;  %v4348_v24 = vld [vmem:[#allocation13 + $0x28] sm:$0xff] }
 0x210   :  { %1303 = vmatpush.msrb.mxu2 %v4286_v42  ;;  %6155 = vst [vmem:[#allocation75_spill] sm:$0xff] %v4348_v24 }
 0x211   :  { %1086 = vmatpush.msra.mxu1 %v4290_v36  ;;  %1371 = vmatpush.msra.mxu3 %v6133_v19  ;;  %v4351_v19 = vld [vmem:[#allocation13 + $0x8] sm:$0xff] }
 0x212   :  { %1304 = vmatpush.msrb.mxu2 %v4293_v35  ;;  %6156 = vst [vmem:[#allocation63_spill] sm:$0xff] %v4351_v19 }
 0x213   :  { %1087 = vmatpush.msra.mxu1 %v4297_v21  ;;  %1372 = vmatpush.msra.mxu3 %v6136_v23  ;;  %v4354_v23 = vld [vmem:[#allocation10 + $0x170] sm:$0xff] }
 0x214   :  { %1305 = vmatpush.msrb.mxu2 %v4300_v5  ;;  %6157 = vst [vmem:[#allocation77_spill] sm:$0xff] %v4354_v23 }
 0x215   :  { %1088 = vmatpush.msra.mxu1 %v4304_v49  ;;  %1373 = vmatpush.msra.mxu3 %v6139_v1  ;;  %v4357_v1 = vld [vmem:[#allocation10 + $0x158] sm:$0xff]  ;;  %v6178_v49 = vld [vmem:[#allocation102_spill] sm:$0xff] }
 0x216   :  { %1306 = vmatpush.msrb.mxu2 %v4307_v48  ;;  %6158 = vst [vmem:[#allocation64_spill] sm:$0xff] %v4357_v1 }
 0x217   :  { %1089 = vmatpush.msra.mxu1 %v4311_v46  ;;  %1374 = vmatpush.msra.mxu3 %v6142_v18  ;;  %v4360_v18 = vld [vmem:[#allocation10 + $0x140] sm:$0xff] }
 0x218   :  { %1307 = vmatpush.msrb.mxu2 %v4314_v37  ;;  %6159 = vst [vmem:[#allocation79_spill] sm:$0xff] %v4360_v18 }
 0x219   :  { %1090 = vmatpush.msra.mxu1 %v4318_v58  ;;  %1375 = vmatpush.msra.mxu3 %v6145_v3  ;;  %v4363_v3 = vld [vmem:[#allocation10 + $0x128] sm:$0xff] }
 0x21a   :  { %1308 = vmatpush.msrb.mxu2 %v4321_v12  ;;  %6160 = vst [vmem:[#allocation81_spill] sm:$0xff] %v4363_v3  ;;  %v6176_v12 = vld [vmem:[#allocation96_spill] sm:$0xff] }
 0x21b   :  { %1091 = vmatpush.msra.mxu1 %v4325_v0  ;;  %1376 = vmatpush.msra.mxu3 %v6148_v13  ;;  %v4366_v13 = vld [vmem:[#allocation10 + $0x110] sm:$0xff] }
 0x21c   :  { %1309 = vmatpush.msrb.mxu2 %v4328_v34  ;;  %6161 = vst [vmem:[#allocation83_spill] sm:$0xff] %v4366_v13  ;;  %v6175_v34 = vld [vmem:[#allocation72_spill] sm:$0xff] }
 0x21d   :  { %1092 = vmatpush.msra.mxu1 %v4332_v53  ;;  %1377 = vmatpush.msra.mxu3 %v6150_v29  ;;  %v4369_v29 = vld [vmem:[#allocation10 + $0xf8] sm:$0xff] }
 0x21e   :  { %6162 = vst [vmem:[#allocation86_spill] sm:$0xff] %v4369_v29 }
 0x21f   :  { %1093 = vmatpush.msra.mxu1 %v4336_v30  ;;  %v6174_v30 = vld [vmem:[#allocation91_spill] sm:$0xff] }
 0x221   :  { %1094 = vmatpush.msra.mxu1 %v4339_v45 }
 0x223   :  { %1095 = vmatpush.msra.mxu1 %v4342_v60 }
 0x225   :  { %1096 = vmatpush.msra.mxu1 %v4345_v56 }
 0x227   :  { %1097 = vmatpush.msra.mxu1 %v4348_v24  ;;  %v6173_v24 = vld [vmem:[#allocation70_spill] sm:$0xff] }
 0x229   :  { %1098 = vmatpush.msra.mxu1 %v4351_v19 }
 0x22b   :  { %1274 = vmatpush.msrb.mxu1 %v4354_v23  ;;  %v4372_v23 = vld [vmem:[#allocation10 + $0xe0] sm:$0xff] }
 0x22c   :  { %6163 = vst [vmem:[#allocation89_spill] sm:$0xff] %v4372_v23 }
 0x22d   :  { %1275 = vmatpush.msrb.mxu1 %v4357_v1  ;;  %v4375_v1 = vld [vmem:[#allocation10 + $0xc8] sm:$0xff] }
 0x22e   :  { %6164 = vst [vmem:[#allocation93_spill] sm:$0xff] %v4375_v1 }
 0x22f   :  { %1276 = vmatpush.msrb.mxu1 %v4360_v18  ;;  %v4378_v18 = vld [vmem:[#allocation10 + $0xb0] sm:$0xff] }
 0x230   :  { %6165 = vst [vmem:[#allocation97_spill] sm:$0xff] %v4378_v18 }
 0x231   :  { %1277 = vmatpush.msrb.mxu1 %v4363_v3  ;;  %v4381_v3 = vld [vmem:[#allocation10 + $0x98] sm:$0xff] }
 0x232   :  { %6166 = vst [vmem:[#allocation24_spill] sm:$0xff] %v4381_v3 }
 0x233   :  { %1278 = vmatpush.msrb.mxu1 %v4366_v13  ;;  %v4384_v13 = vld [vmem:[#allocation10 + $0x80] sm:$0xff] }
 0x234   :  { %6167 = vst [vmem:[#allocation25_spill] sm:$0xff] %v4384_v13 }
 0x235   :  { %1279 = vmatpush.msrb.mxu1 %v4369_v29  ;;  %v4387_v29 = vld [vmem:[#allocation10 + $0x68] sm:$0xff] }
 0x236   :  { %6168 = vst [vmem:[#allocation27_spill] sm:$0xff] %v4387_v29 }
 0x237   :  { %1280 = vmatpush.msrb.mxu1 %v4372_v23  ;;  %v4390_v23 = vld [vmem:[#allocation10 + $0x50] sm:$0xff] }
 0x238   :  { %6169 = vst [vmem:[#allocation29_spill] sm:$0xff] %v4390_v23 }
 0x239   :  { %1281 = vmatpush.msrb.mxu1 %v4375_v1  ;;  %v4393_v1 = vld [vmem:[#allocation10 + $0x38] sm:$0xff] }
 0x23a   :  { %6170 = vst [vmem:[#allocation31_spill] sm:$0xff] %v4393_v1 }
 0x23b   :  { %1282 = vmatpush.msrb.mxu1 %v4378_v18  ;;  %v4396_v18 = vld [vmem:[#allocation10 + $0x20] sm:$0xff] }
 0x23c   :  { %6171 = vst [vmem:[#allocation33_spill] sm:$0xff] %v4396_v18 }
 0x23d   :  { %1283 = vmatpush.msrb.mxu1 %v4381_v3  ;;  %v4399_v3 = vld [vmem:[#allocation10 + $0x8] sm:$0xff] }
 0x23e   :  { %6172 = vst [vmem:[#allocation35_spill] sm:$0xff] %v4399_v3 }
 0x23f   :  { %1284 = vmatpush.msrb.mxu1 %v4384_v13 }
 0x241   :  { %1285 = vmatpush.msrb.mxu1 %v4387_v29 }
 0x243   :  { %1286 = vmatpush.msrb.mxu1 %v4390_v23 }
 0x245   :  { %1287 = vmatpush.msrb.mxu1 %v4393_v1 }
 0x247   :  { %1288 = vmatpush.msrb.mxu1 %v4396_v18 }
 0x249   :  { %1289 = vmatpush.msrb.mxu1 %v4399_v3 }
 0x257   :  { %v781_v13 = vpop.f32.mrf.mxu1 }
 0x258   :  { %v782_v29 = vadd.f32 %v781_v13, %v6173_v24 }
 0x25a   :  { %v2762_v60 = vmul.f32 -1.442695, %v782_v29  ;;  %v6177_v29 = vld [vmem:[#allocation101_spill] sm:$0xff] }
 0x25c   :  { %2854 = vpow2.f32 %v2762_v60 }
 0x25d   :  { %v801_v56 = vpop.f32.mrf.mxu2 }
 0x25e   :  { %v802_v0 = vadd.f32 %v801_v56, %v6175_v34 }
 0x25f   :  { %v912_v19 = vpop.f32.mrf.mxu1 }
 0x260   :  { %v2763_v3 = vmul.f32 -1.442695, %v802_v0  ;;  %v913_v24 = vadd.f32 %v912_v19, %v6177_v29 }
 0x262   :  { %v2855_v1 = vpop.eup %2854 }
 0x263   :  { %v847_v58 = vadd.f32 1.0, %v2855_v1 }
 0x265   :  { %v992_v45 = vpop.f32.mrf.mxu2  ;;  %2856 = vrcp.f32 %v847_v58  ;;  %vm853_vm11 = vweird.f32 %v847_v58 }
 0x266   :  { %v993_v18 = vadd.f32 %v992_v45, %v6176_v12  ;;  %2858 = vpow2.f32 %v2763_v3 }
 0x267   :  { %v932_v23 = vpop.f32.mrf.mxu1 }
 0x268   :  { %v933_v53 = vadd.f32 %v932_v23, %v6174_v30 }
 0x26a   :  { %v1035_v37 = vadd.f32 %v993_v18, %v933_v53 }
 0x26b   :  { %v2857_v13 = vpop.eup %2856 }
 0x26c   :  { %v2768_v48 = vmul.f32 -1.442695, %v1035_v37  ;;  %v2859_v30 = vpop.eup %2858  ;;  %v849_v5 = vmul.f32 %v2857_v13, %v847_v58  ;;  %vm854_vm10 = vweird.f32 %v2857_v13 }
 0x26d   :  { %v4410_v45 = vadd.f32 1.0, %v2859_v30  ;;  %vm855_vm12 = vmor %vm853_vm11, %vm854_vm10 }
 0x26e   :  { %2860 = vpow2.f32 %v2768_v48  ;;  %v850_v1 = vsub.f32 1.0, %v849_v5  ;;  %v821_v5 = vpop.f32.mrf.mxu3 }
 0x26f   :  { %v4406_v46 = vpop.f32.mrf.mxu1  ;;  %vm872_vm3 = vweird.f32 %v4410_v45 }
 0x270   :  { %v851_v48 = vmul.f32 %v2857_v13, %v850_v1 }
 0x272   :  { %v852_v3 = vadd.f32 %v2857_v13, %v851_v48 }
 0x274   :  { %v2861_v34 = vpop.eup %2860 }
 0x275   :  { %v4412_v18 = vadd.f32 1.0, %v2861_v34  ;;  %v857_v34 = vand.u32 2147483647, %v847_v58 }
 0x277   :  { %vm858_vm13 = vcmp.eq.f32.partialorder %v857_v34, 8.507059e+37  ;;  %vm1045_vm7 = vweird.f32 %v4412_v18 }
 0x287   :  { %v972_v60 = vpop.f32.mrf.mxu1 }
 0x288   :  { %v973_v23 = vadd.f32 %v972_v60, %v6178_v49  ;;  %v859_v60 = vand.u32 2147483648, %v847_v58 }
 0x28a   :  { %v1015_v56 = vadd.f32 %v973_v23, %v913_v24  ;;  %v841_v24 = vpop.f32.mrf.mxu0  ;;  %v860_v1 = vor.u32 1.1754944e-38, %v859_v60 }
 0x28c   :  { %v2767_v53 = vmul.f32 -1.442695, %v1015_v56  ;;  %v842_v56 = vadd.f32 %v841_v24, %v4098_v31  ;;  %v822_v24 = vadd.f32 %v821_v5, %v4112_v10 }
 0x28e   :  { %2862 = vpow2.f32 %v2767_v53  ;;  %v856_v53 = vsel %vm855_vm12, %v2857_v13, %v852_v3  ;;  %v882_v12 = vadd.f32 %v4107_v11, %v842_v56  ;;  %v1012_v13 = vpop.f32.mrf.mxu3 }
 0x28f   :  { %2864 = vrcp.f32 %v4410_v45  ;;  %v861_v29 = vsel %vm858_vm13, %v860_v1, %v856_v53  ;;  %v1049_v1 = vand.u32 2147483647, %v4412_v18 }
 0x290   :  { %2866 = vrcp.f32 %v4412_v18  ;;  %v883_v58 = vmul.f32 %v882_v12, %v861_v29  ;;  %v878_v12 = vand.u32 2147483648, %v4410_v45  ;;  %v876_v29 = vand.u32 2147483647, %v4410_v45 }
 0x291   :  { %vm1050_vm10 = vcmp.eq.f32.partialorder %v1049_v1, 8.507059e+37  ;;  %v4491_v1 = vld [vmem:[#allocation13 + $0x158] sm:$0xff] }
 0x292   :  { %v884_v31 = vadd.f32 %v883_v58, %v822_v24  ;;  %vm877_vm9 = vcmp.eq.f32.partialorder %v876_v29, 8.507059e+37  ;;  %v4466_v29 = vld [vmem:[#allocation13 + $0x1b0] sm:$0xff] }
 0x294   :  { %v2863_v37 = vpop.eup %2862 }
 0x295   :  { %v1019_v0 = vadd.f32 1.0, %v2863_v37  ;;  %v4416_v19 = vpop.eup %2864 }
 0x296   :  { %v4418_v30 = vpop.eup %2866  ;;  %v868_v23 = vmul.f32 %v4416_v19, %v4410_v45  ;;  %vm873_vm1 = vweird.f32 %v4416_v19  ;;  %v879_v45 = vor.u32 1.1754944e-38, %v878_v12  ;;  %v1190_v12 = vld [vmem:[#allocation4 + $0x6] sm:$0x3] }
 0x297   :  { %2868 = vrcp.f32 %v1019_v0  ;;  %v1041_v48 = vmul.f32 %v4418_v30, %v4412_v18  ;;  %v1031_v20 = vand.u32 2147483648, %v1019_v0  ;;  %v1029_v60 = vand.u32 2147483647, %v1019_v0  ;;  %vm874_vm6 = vmor %vm872_vm3, %vm873_vm1 }
 0x298   :  { %v869_v49 = vsub.f32 1.0, %v868_v23  ;;  %vm1025_vm15 = vweird.f32 %v1019_v0  ;;  %vm1046_vm5 = vweird.f32 %v4418_v30  ;;  %2870 = vtanh.f32 %v884_v31 }
 0x299   :  { %v1042_v35 = vsub.f32 1.0, %v1041_v48  ;;  %vm1030_vm4 = vcmp.eq.f32.partialorder %v1029_v60, 8.507059e+37  ;;  %vm1047_vm8 = vmor %vm1045_vm7, %vm1046_vm5 }
 0x29a   :  { %v870_v42 = vmul.f32 %v4416_v19, %v869_v49  ;;  %v1032_v49 = vor.u32 1.1754944e-38, %v1031_v20  ;;  %v953_v20 = vadd.f32 %v4406_v46, %v3928_v27 }
 0x29b   :  { %v1043_v34 = vmul.f32 %v4418_v30, %v1042_v35 }
 0x29c   :  { %v871_v56 = vadd.f32 %v4416_v19, %v870_v42  ;;  %v1051_v42 = vand.u32 2147483648, %v4412_v18 }
 0x29d   :  { %v2869_v37 = vpop.eup %2868  ;;  %v1044_v35 = vadd.f32 %v4418_v30, %v1043_v34 }
 0x29e   :  { %v1021_v21 = vmul.f32 %v2869_v37, %v1019_v0  ;;  %vm1026_vm14 = vweird.f32 %v2869_v37  ;;  %v875_v53 = vsel %vm874_vm6, %v4416_v19, %v871_v56  ;;  %v1052_v31 = vor.u32 1.1754944e-38, %v1051_v42  ;;  %v2871_v24 = vpop.eup %2870  ;;  %v4479_v42 = vld [vmem:[#allocation13 + $0x198] sm:$0xff] }
 0x29f   :  { %vm1027_vm2 = vmor %vm1025_vm15, %vm1026_vm14  ;;  %v880_v58 = vsel %vm877_vm9, %v879_v45, %v875_v53  ;;  %v4488_v53 = vld [vmem:[#allocation13 + $0x150] sm:$0xff] }
 0x2a0   :  { %v1022_v36 = vsub.f32 1.0, %v1021_v21  ;;  %v1013_v21 = vadd.f32 %v1012_v13, %v6094_v28  ;;  %v886_v46 = vsub.f32 1.0, %v880_v58  ;;  %v888_v18 = vmul.f32 %v880_v58, %v4141_v47  ;;  %v4460_v47 = vld [vmem:[#allocation13 + $0x1d0] sm:$0xff]  ;;  %v4506_v58 = vld [vmem:[#allocation13 + $0x118] sm:$0xff] }
 0x2a1   :  { %v4495_v45 = vld [vmem:[#allocation13 + $0x130] sm:$0xff] }
 0x2a2   :  { %v1023_v3 = vmul.f32 %v2869_v37, %v1022_v36 }
 0x2a4   :  { %v1024_v23 = vadd.f32 %v2869_v37, %v1023_v3  ;;  %v887_v3 = vmul.f32 %v2871_v24, %v886_v46  ;;  %v4513_v24 = vld [vmem:[#allocation13 + $0xf8] sm:$0xff] }
 0x2a5   :  { %v4520_v46 = vld [vmem:[#allocation13 + $0xd8] sm:$0xff] }
 0x2a6   :  { %v1028_v36 = vsel %vm1027_vm2, %v2869_v37, %v1024_v23  ;;  %v1048_v37 = vsel %vm1047_vm8, %v4418_v30, %v1044_v35  ;;  %v4446_v56 = vadd.f32 %v888_v18, %v887_v3  ;;  %v4469_v35 = vld [vmem:[#allocation13 + $0x1b8] sm:$0xff]  ;;  %v4524_v3 = vld [vmem:[#allocation13 + $0xb0] sm:$0xff] }
 0x2a7   :  { %v1033_v0 = vsel %vm1030_vm4, %v1032_v49, %v1028_v36  ;;  %v1053_v13 = vsel %vm1050_vm10, %v1052_v31, %v1048_v37  ;;  %v4453_v49 = vld [vmem:[#allocation13 + $0x1f0] sm:$0xff]  ;;  %v4463_v36 = vld [vmem:[#allocation13 + $0x1d8] sm:$0xff] }
 0x2a8   :  { %v1055_v5 = vmul.f32 %v1033_v0, %v1013_v21  ;;  %v1058_v60 = vsub.f32 1.0, %v1053_v13  ;;  %v1060_v34 = vmul.f32 %v1053_v13, %v4143_v44  ;;  %v4456_v44 = vld [vmem:[#allocation13 + $0x1f8] sm:$0xff]  ;;  %v4476_v0 = vld [vmem:[#allocation13 + $0x190] sm:$0xff] }
 0x2a9   :  { %v4502_v37 = vld [vmem:[#allocation13 + $0x110] sm:$0xff] }
 0x2aa   :  { %v1056_v48 = vadd.f32 %v1055_v5, %v953_v20  ;;  %v4482_v20 = vld [vmem:[#allocation13 + $0x170] sm:$0xff]  ;;  %v4485_v5 = vld [vmem:[#allocation13 + $0x178] sm:$0xff] }
 0x2ab   :  { %v4509_v31 = vld [vmem:[#allocation13 + $0xf0] sm:$0xff] }
 0x2ac   :  { %2872 = vtanh.f32 %v1056_v48  ;;  %v4499_v48 = vld [vmem:[#allocation13 + $0x138] sm:$0xff]  ;;  %v4516_v13 = vld [vmem:[#allocation13 + $0xd0] sm:$0xff] }
 0x2ad   :  { %v4538_v18 = vld [vmem:[#allocation13 + $0x70] sm:$0xff] }
 0x2ae   :  { %6181 = vst [vmem:[#allocation41_spill] sm:$0xff] %v4538_v18 }
 0x2b2   :  { %v2873_v19 = vpop.eup %2872 }
 0x2b3   :  { %v1059_v23 = vmul.f32 %v2873_v19, %v1058_v60  ;;  %v4528_v60 = vld [vmem:[#allocation13 + $0xb8] sm:$0xff]  ;;  %v4531_v19 = vld [vmem:[#allocation13 + $0x90] sm:$0xff] }
 0x2b4   :  { %6179 = vst [vmem:[#allocation37_spill] sm:$0xff] %v4531_v19 }
 0x2b5   :  { %v4448_v21 = vadd.f32 %v1060_v34, %v1059_v23  ;;  %v4535_v34 = vld [vmem:[#allocation13 + $0x98] sm:$0xff] }
 0x2b6   :  { %6180 = vst [vmem:[#allocation39_spill] sm:$0xff] %v4535_v34  ;;  %v4542_v23 = vld [vmem:[#allocation13 + $0x78] sm:$0xff] }
 0x2b7   :  { %v1062_v30 = vadd.f32 %v4448_v21, %v4446_v56  ;;  %6182 = vst [vmem:[#allocation43_spill] sm:$0xff] %v4542_v23 }
 0x2b9   :  { %1079 = vmatmul.f32.vlgmr.msrb.gmra.mxu0 %v1062_v30  ;;  %1099 = vmatmul.f32.vlgmr.msra.gmra.mxu1 %v1062_v30 }
 0x2ba   :  { %1119 = vmatmul.f32.vlgmr.msra.gmra.mxu2 %v1062_v30  ;;  %1139 = vmatmul.f32.vlgmr.msrb.gmra.mxu3 %v1062_v30  ;;  %v4545_v30 = vld [vmem:[#allocation13 + $0x50] sm:$0xff] }
 0x2bb   :  { %1229 = vmatpush.msrb.mxu0 %v4147_v40  ;;  %1402 = vmatpush.msra.mxu1 %v4453_v49  ;;  %6183 = vst [vmem:[#allocation45_spill] sm:$0xff] %v4545_v30 }
 0x2bc   :  { %1422 = vmatpush.msra.mxu2 %v4456_v44  ;;  %1508 = vmatpush.msrb.mxu3 %v4152_v52 }
 0x2bd   :  { %1403 = vmatpush.msra.mxu1 %v4460_v47 }
 0x2be   :  { %1423 = vmatpush.msra.mxu2 %v4463_v36 }
 0x2bf   :  { %1404 = vmatpush.msra.mxu1 %v4466_v29 }
 0x2c0   :  { %1424 = vmatpush.msra.mxu2 %v4469_v35 }
 0x2c1   :  { %2771 = vmatmul.msk.f32.vlgmr.msra.gmra.mxu0 %vm181_vm0, %v1190_v12  ;;  %1290 = vmatmul.f32.vlgmr.msrb.gmra.mxu1 %v4448_v21 }
 0x2c2   :  { %1310 = vmatmul.f32.vlgmr.msrb.gmra.mxu2 %v4448_v21  ;;  %1249 = vmatpush.msra.mxu0 %v4162_v32 }
 0x2c3   :  { %1405 = vmatpush.msra.mxu1 %v4476_v0  ;;  %1425 = vmatpush.msra.mxu2 %v4479_v42 }
 0x2c5   :  { %1406 = vmatpush.msra.mxu1 %v4482_v20  ;;  %1426 = vmatpush.msra.mxu2 %v4485_v5 }
 0x2c7   :  { %1407 = vmatpush.msra.mxu1 %v4488_v53  ;;  %1427 = vmatpush.msra.mxu2 %v4491_v1 }
 0x2c9   :  { %2772 = vmatmul.msk.f32.vlgmr.msrb.gmra.mxu0 %vm181_vm0, %v1190_v12  ;;  %1408 = vmatpush.msra.mxu1 %v4495_v45 }
 0x2ca   :  { %1254 = vmatpush.msrb.mxu0 %v4173_v22  ;;  %1428 = vmatpush.msra.mxu2 %v4499_v48 }
 0x2cb   :  { %1409 = vmatpush.msra.mxu1 %v4502_v37 }
 0x2cc   :  { %1255 = vmatpush.msrb.mxu0 %v4178_v6  ;;  %1429 = vmatpush.msra.mxu2 %v4506_v58 }
 0x2cd   :  { %1410 = vmatpush.msra.mxu1 %v4509_v31 }
 0x2ce   :  { %1256 = vmatpush.msrb.mxu0 %v4183_v8  ;;  %1430 = vmatpush.msra.mxu2 %v4513_v24 }
 0x2cf   :  { %1411 = vmatpush.msra.mxu1 %v4516_v13 }
 0x2d0   :  { %1257 = vmatpush.msrb.mxu0 %v4188_v25  ;;  %1431 = vmatpush.msra.mxu2 %v4520_v46 }
 0x2d1   :  { %2773 = vmatmul.msk.f32.vlgmr.msra.gmra.mxu0 %vm181_vm0, %v1190_v12  ;;  %1412 = vmatpush.msra.mxu1 %v4524_v3  ;;  %v4549_v12 = vld [vmem:[#allocation13 + $0x58] sm:$0xff] }
 0x2d2   :  { %1258 = vmatpush.msrb.mxu0 %v4194_v55  ;;  %1432 = vmatpush.msra.mxu2 %v4528_v60  ;;  %6184 = vst [vmem:[#allocation48_spill] sm:$0xff] %v4549_v12 }
 0x2d3   :  { %1413 = vmatpush.msra.mxu1 %v4531_v19 }
 0x2d4   :  { %1259 = vmatpush.msrb.mxu0 %v4199_v57  ;;  %1433 = vmatpush.msra.mxu2 %v4535_v34  ;;  %v4552_v34 = vld [vmem:[#allocation13 + $0x30] sm:$0xff] }
 0x2d5   :  { %1414 = vmatpush.msra.mxu1 %v4538_v18  ;;  %6185 = vst [vmem:[#allocation51_spill] sm:$0xff] %v4552_v34 }
 0x2d6   :  { %1260 = vmatpush.msrb.mxu0 %v4204_v59  ;;  %1434 = vmatpush.msra.mxu2 %v4542_v23  ;;  %v4556_v59 = vld [vmem:[#allocation13 + $0x38] sm:$0xff]  ;;  %v4559_v23 = vld [vmem:[#allocation13 + $0x10] sm:$0xff] }
 0x2d7   :  { %1415 = vmatpush.msra.mxu1 %v4545_v30  ;;  %6186 = vst [vmem:[#allocation54_spill] sm:$0xff] %v4556_v59 }
 0x2d8   :  { %1261 = vmatpush.msrb.mxu0 %v4209_v61  ;;  %1435 = vmatpush.msra.mxu2 %v4549_v12  ;;  %6187 = vst [vmem:[#allocation57_spill] sm:$0xff] %v4559_v23  ;;  %v4564_v61 = vld [vmem:[#allocation13 + $0x18] sm:$0xff] }
 0x2d9   :  { %1416 = vmatpush.msra.mxu1 %v4552_v34  ;;  %6188 = vst [vmem:[#allocation114_spill] sm:$0xff] %v4564_v61 }
 0x2da   :  { %1262 = vmatpush.msrb.mxu0 %v4214_v62  ;;  %1436 = vmatpush.msra.mxu2 %v4556_v59  ;;  %v4569_v62 = vld [vmem:[#allocation13 + $0x1e0] sm:$0xff] }
 0x2db   :  { %1417 = vmatpush.msra.mxu1 %v4559_v23  ;;  %6189 = vst [vmem:[#allocation113_spill] sm:$0xff] %v4569_v62  ;;  %v4574_v23 = vld [vmem:[#allocation13 + $0x1c0] sm:$0xff] }
 0x2dc   :  { %1263 = vmatpush.msrb.mxu0 %v4219_v9  ;;  %1437 = vmatpush.msra.mxu2 %v4564_v61  ;;  %6190 = vst [vmem:[#allocation85_spill] sm:$0xff] %v4574_v23  ;;  %v4579_v61 = vld [vmem:[#allocation13 + $0x1a0] sm:$0xff] }
 0x2dd   :  { %1593 = vmatpush.msrb.mxu1 %v4222_v7  ;;  %6191 = vst [vmem:[#allocation88_spill] sm:$0xff] %v4579_v61  ;;  %v6247_v9 = vld [vmem:[#allocation102_spill] sm:$0xff] }
 0x2de   :  { %1264 = vmatpush.msrb.mxu0 %v4226_v16  ;;  %1661 = vmatpush.msrb.mxu2 %v4569_v62  ;;  %v4584_v62 = vld [vmem:[#allocation13 + $0x180] sm:$0xff] }
 0x2df   :  { %1594 = vmatpush.msrb.mxu1 %v4229_v63  ;;  %6192 = vst [vmem:[#allocation92_spill] sm:$0xff] %v4584_v62 }
 0x2e0   :  { %1265 = vmatpush.msrb.mxu0 %v4233_v38  ;;  %1662 = vmatpush.msrb.mxu2 %v4574_v23  ;;  %v4589_v23 = vld [vmem:[#allocation13 + $0x160] sm:$0xff]  ;;  %v6245_v38 = vld [vmem:[#allocation96_spill] sm:$0xff] }
 0x2e1   :  { %1595 = vmatpush.msrb.mxu1 %v4236_v15  ;;  %6193 = vst [vmem:[#allocation95_spill] sm:$0xff] %v4589_v23  ;;  %v6244_v15 = vld [vmem:[#allocation72_spill] sm:$0xff] }
 0x2e2   :  { %1266 = vmatpush.msrb.mxu0 %v4240_v2  ;;  %1663 = vmatpush.msrb.mxu2 %v4579_v61 }
 0x2e3   :  { %1596 = vmatpush.msrb.mxu1 %v4243_v17 }
 0x2e4   :  { %1267 = vmatpush.msrb.mxu0 %v4247_v26  ;;  %1664 = vmatpush.msrb.mxu2 %v4584_v62  ;;  %v4595_v26 = vld [vmem:[#allocation13 + $0x140] sm:$0xff] }
 0x2e5   :  { %1597 = vmatpush.msrb.mxu1 %v4250_v33  ;;  %6194 = vst [vmem:[#allocation99_spill] sm:$0xff] %v4595_v26  ;;  %v6229_v62 = vld [vmem:[#allocation81_spill] sm:$0xff]  ;;  %v6242_v33 = vld [vmem:[#allocation70_spill] sm:$0xff] }
 0x2e6   :  { %1268 = vmatpush.msrb.mxu0 %v4254_v39  ;;  %1665 = vmatpush.msrb.mxu2 %v4589_v23  ;;  %v4600_v39 = vld [vmem:[#allocation13 + $0x120] sm:$0xff] }
 0x2e7   :  { %1598 = vmatpush.msrb.mxu1 %v4257_v50  ;;  %6195 = vst [vmem:[#allocation100_spill] sm:$0xff] %v4600_v39  ;;  %v6198_v23 = vld [vmem:[#allocation53_spill] sm:$0xff] }
 0x2e8   :  { %1269 = vmatpush.msrb.mxu0 %v4261_v14  ;;  %1666 = vmatpush.msrb.mxu2 %v4595_v26  ;;  %v4605_v14 = vld [vmem:[#allocation13 + $0x100] sm:$0xff] }
 0x2e9   :  { %1599 = vmatpush.msrb.mxu1 %v4264_v51  ;;  %1270 = vmatmul.f32.vlgmr.msrb.gmra.mxu0 %v4448_v21  ;;  %6196 = vst [vmem:[#allocation103_spill] sm:$0xff] %v4605_v14  ;;  %v6197_v51 = vld [vmem:[#allocation50_spill] sm:$0xff]  ;;  %v6226_v50 = vld [vmem:[#allocation77_spill] sm:$0xff] }
 0x2ea   :  { %1382 = vmatpush.msra.mxu0 %v4269_v41  ;;  %1667 = vmatpush.msrb.mxu2 %v4600_v39  ;;  %v4610_v26 = vld [vmem:[#allocation13 + $0xe0] sm:$0xff]  ;;  %v6201_v41 = vld [vmem:[#allocation56_spill] sm:$0xff] }
 0x2eb   :  { %1600 = vmatpush.msrb.mxu1 %v4272_v54  ;;  %6199 = vst [vmem:[#allocation104_spill] sm:$0xff] %v4610_v26  ;;  %v6200_v54 = vld [vmem:[#allocation46_spill] sm:$0xff] }
 0x2ec   :  { %1383 = vmatpush.msra.mxu0 %v4276_v4  ;;  %1668 = vmatpush.msrb.mxu2 %v4605_v14  ;;  %v4615_v39 = vld [vmem:[#allocation13 + $0xc0] sm:$0xff] }
 0x2ed   :  { %1601 = vmatpush.msrb.mxu1 %v4279_v43  ;;  %6202 = vst [vmem:[#allocation105_spill] sm:$0xff] %v4615_v39  ;;  %v6203_v43 = vld [vmem:[#allocation49_spill] sm:$0xff] }
 0x2ee   :  { %1384 = vmatpush.msra.mxu0 %v6197_v51  ;;  %1669 = vmatpush.msrb.mxu2 %v4610_v26  ;;  %v6204_v4 = vld [vmem:[#allocation65_spill] sm:$0xff]  ;;  %v6207_v51 = vld [vmem:[#allocation66_spill] sm:$0xff] }
 0x2ef   :  { %1602 = vmatpush.msrb.mxu1 %v6198_v23  ;;  %v4620_v14 = vld [vmem:[#allocation13 + $0xa0] sm:$0xff]  ;;  %v6206_v23 = vld [vmem:[#allocation52_spill] sm:$0xff] }
 0x2f0   :  { %1385 = vmatpush.msra.mxu0 %v6200_v54  ;;  %1670 = vmatpush.msrb.mxu2 %v4615_v39  ;;  %6205 = vst [vmem:[#allocation106_spill] sm:$0xff] %v4620_v14  ;;  %v4625_v26 = vld [vmem:[#allocation13 + $0x80] sm:$0xff]  ;;  %v6210_v54 = vld [vmem:[#allocation67_spill] sm:$0xff] }
 0x2f1   :  { %1603 = vmatpush.msrb.mxu1 %v6201_v41  ;;  %6208 = vst [vmem:[#allocation107_spill] sm:$0xff] %v4625_v26  ;;  %v6209_v41 = vld [vmem:[#allocation55_spill] sm:$0xff]  ;;  %v4630_v39 = vld [vmem:[#allocation13 + $0x60] sm:$0xff] }
 0x2f2   :  { %1386 = vmatpush.msra.mxu0 %v6203_v43  ;;  %1671 = vmatpush.msrb.mxu2 %v4620_v14  ;;  %6211 = vst [vmem:[#allocation108_spill] sm:$0xff] %v4630_v39  ;;  %v6213_v43 = vld [vmem:[#allocation68_spill] sm:$0xff]  ;;  %v4635_v14 = vld [vmem:[#allocation13 + $0x40] sm:$0xff] }
 0x2f3   :  { %1604 = vmatpush.msrb.mxu1 %v6204_v4  ;;  %v6212_v4 = vld [vmem:[#allocation58_spill] sm:$0xff]  ;;  %6214 = vst [vmem:[#allocation109_spill] sm:$0xff] %v4635_v14 }
 0x2f4   :  { %1387 = vmatpush.msra.mxu0 %v6206_v23  ;;  %1672 = vmatpush.msrb.mxu2 %v4625_v26  ;;  %v6216_v23 = vld [vmem:[#allocation69_spill] sm:$0xff] }
 0x2f5   :  { %1605 = vmatpush.msrb.mxu1 %v6207_v51  ;;  %v6215_v51 = vld [vmem:[#allocation59_spill] sm:$0xff]  ;;  %v4640_v26 = vld [vmem:[#allocation13 + $0x20] sm:$0xff] }
 0x2f6   :  { %1388 = vmatpush.msra.mxu0 %v6209_v41  ;;  %1673 = vmatpush.msrb.mxu2 %v4630_v39  ;;  %6217 = vst [vmem:[#allocation110_spill] sm:$0xff] %v4640_v26  ;;  %v4644_v41 = vld [vmem:[#allocation13] sm:$0xff] }
 0x2f7   :  { %1606 = vmatpush.msrb.mxu1 %v6210_v54  ;;  %v6218_v54 = vld [vmem:[#allocation60_spill] sm:$0xff]  ;;  %6219 = vst [vmem:[#allocation111_spill] sm:$0xff] %v4644_v41  ;;  %v6222_v39 = vld [vmem:[#allocation73_spill] sm:$0xff] }
 0x2f8   :  { %1389 = vmatpush.msra.mxu0 %v6212_v4  ;;  %1674 = vmatpush.msrb.mxu2 %v4635_v14  ;;  %v6220_v4 = vld [vmem:[#allocation71_spill] sm:$0xff]  ;;  %v6223_v14 = vld [vmem:[#allocation62_spill] sm:$0xff] }
 0x2f9   :  { %1607 = vmatpush.msrb.mxu1 %v6213_v43  ;;  %v6221_v43 = vld [vmem:[#allocation61_spill] sm:$0xff] }
 0x2fa   :  { %1390 = vmatpush.msra.mxu0 %v6215_v51  ;;  %1675 = vmatpush.msrb.mxu2 %v4640_v26  ;;  %v6224_v51 = vld [vmem:[#allocation75_spill] sm:$0xff]  ;;  %v6227_v26 = vld [vmem:[#allocation64_spill] sm:$0xff] }
 0x2fb   :  { %1608 = vmatpush.msrb.mxu1 %v6216_v23  ;;  %v6225_v23 = vld [vmem:[#allocation63_spill] sm:$0xff] }
 0x2fc   :  { %1391 = vmatpush.msra.mxu0 %v6218_v54  ;;  %1676 = vmatpush.msrb.mxu2 %v4644_v41  ;;  %v6228_v54 = vld [vmem:[#allocation79_spill] sm:$0xff] }
 0x2fd   :  { %v6230_v41 = vld [vmem:[#allocation83_spill] sm:$0xff] }
 0x2fe   :  { %1392 = vmatpush.msra.mxu0 %v6220_v4  ;;  %v6231_v4 = vld [vmem:[#allocation86_spill] sm:$0xff] }
 0x300   :  { %1393 = vmatpush.msra.mxu0 %v6221_v43  ;;  %v6232_v43 = vld [vmem:[#allocation89_spill] sm:$0xff] }
 0x302   :  { %1394 = vmatpush.msra.mxu0 %v6222_v39  ;;  %v6233_v39 = vld [vmem:[#allocation93_spill] sm:$0xff] }
 0x304   :  { %1395 = vmatpush.msra.mxu0 %v6223_v14  ;;  %v6234_v14 = vld [vmem:[#allocation97_spill] sm:$0xff] }
 0x306   :  { %1396 = vmatpush.msra.mxu0 %v6224_v51  ;;  %v6235_v51 = vld [vmem:[#allocation24_spill] sm:$0xff] }
 0x308   :  { %1397 = vmatpush.msra.mxu0 %v6225_v23  ;;  %v6236_v23 = vld [vmem:[#allocation25_spill] sm:$0xff] }
 0x30a   :  { %1573 = vmatpush.msrb.mxu0 %v6226_v50  ;;  %v6237_v50 = vld [vmem:[#allocation27_spill] sm:$0xff] }
 0x30c   :  { %1574 = vmatpush.msrb.mxu0 %v6227_v26  ;;  %v6238_v26 = vld [vmem:[#allocation29_spill] sm:$0xff] }
 0x30e   :  { %1575 = vmatpush.msrb.mxu0 %v6228_v54  ;;  %v6239_v54 = vld [vmem:[#allocation31_spill] sm:$0xff] }
 0x310   :  { %1576 = vmatpush.msrb.mxu0 %v6229_v62  ;;  %v6240_v62 = vld [vmem:[#allocation33_spill] sm:$0xff] }
 0x312   :  { %1577 = vmatpush.msrb.mxu0 %v6230_v41  ;;  %v6241_v41 = vld [vmem:[#allocation35_spill] sm:$0xff] }
 0x314   :  { %1578 = vmatpush.msrb.mxu0 %v6231_v4 }
 0x316   :  { %1579 = vmatpush.msrb.mxu0 %v6232_v43 }
 0x318   :  { %1580 = vmatpush.msrb.mxu0 %v6233_v39 }
 0x31a   :  { %1581 = vmatpush.msrb.mxu0 %v6234_v14 }
 0x31c   :  { %1582 = vmatpush.msrb.mxu0 %v6235_v51 }
 0x31e   :  { %1583 = vmatpush.msrb.mxu0 %v6236_v23  ;;  %v6243_v23 = vld [vmem:[#allocation91_spill] sm:$0xff] }
 0x320   :  { %1584 = vmatpush.msrb.mxu0 %v6237_v50 }
 0x322   :  { %1585 = vmatpush.msrb.mxu0 %v6238_v26 }
 0x324   :  { %1586 = vmatpush.msrb.mxu0 %v6239_v54 }
 0x326   :  { %1587 = vmatpush.msrb.mxu0 %v6240_v62 }
 0x328   :  { %1588 = vmatpush.msrb.mxu0 %v6241_v41 }
 0x336   :  { %v1080_v4 = vpop.f32.mrf.mxu0  ;;  %v1100_v61 = vpop.f32.mrf.mxu1 }
 0x337   :  { %v1081_v39 = vadd.f32 %v1080_v4, %v6242_v33  ;;  %v1101_v26 = vadd.f32 %v1100_v61, %v6244_v15  ;;  %v6246_v4 = vld [vmem:[#allocation101_spill] sm:$0xff] }
 0x339   :  { %v2769_v14 = vmul.f32 -1.442695, %v1081_v39  ;;  %v2770_v41 = vmul.f32 -1.442695, %v1101_v26 }
 0x33b   :  { %2874 = vpow2.f32 %v2769_v14 }
 0x33e   :  { %v1211_v43 = vpop.f32.mrf.mxu0  ;;  %v1291_v17 = vpop.f32.mrf.mxu1 }
 0x33f   :  { %v1292_v54 = vadd.f32 %v1291_v17, %v6245_v38  ;;  %v1212_v33 = vadd.f32 %v1211_v43, %v6246_v4 }
 0x341   :  { %v2875_v50 = vpop.eup %2874 }
 0x342   :  { %v1146_v63 = vadd.f32 1.0, %v2875_v50 }
 0x344   :  { %2876 = vrcp.f32 %v1146_v63  ;;  %vm1152_vm12 = vweird.f32 %v1146_v63 }
 0x345   :  { %2878 = vpow2.f32 %v2770_v41 }
 0x346   :  { %v1231_v51 = vpop.f32.mrf.mxu0 }
 0x347   :  { %v1232_v2 = vadd.f32 %v1231_v51, %v6243_v23 }
 0x349   :  { %v1334_v62 = vadd.f32 %v1292_v54, %v1232_v2 }
 0x34a   :  { %v2877_v39 = vpop.eup %2876 }
 0x34b   :  { %v2775_v7 = vmul.f32 -1.442695, %v1334_v62  ;;  %v2879_v23 = vpop.eup %2878  ;;  %v1148_v59 = vmul.f32 %v2877_v39, %v1146_v63  ;;  %vm1153_vm11 = vweird.f32 %v2877_v39 }
 0x34c   :  { %v4677_v17 = vadd.f32 1.0, %v2879_v23  ;;  %vm1154_vm13 = vmor %vm1152_vm12, %vm1153_vm11 }
 0x34d   :  { %2880 = vpow2.f32 %v2775_v7  ;;  %v1149_v50 = vsub.f32 1.0, %v1148_v59  ;;  %v1156_v59 = vand.u32 2147483647, %v1146_v63 }
 0x34e   :  { %v4673_v16 = vpop.f32.mrf.mxu0  ;;  %vm1171_vm2 = vweird.f32 %v4677_v17 }
 0x34f   :  { %v1150_v62 = vmul.f32 %v2877_v39, %v1149_v50  ;;  %vm1157_vm14 = vcmp.eq.f32.partialorder %v1156_v59, 8.507059e+37 }
 0x351   :  { %v1151_v43 = vadd.f32 %v2877_v39, %v1150_v62 }
 0x353   :  { %v2881_v15 = vpop.eup %2880  ;;  %v1155_v50 = vsel %vm1154_vm13, %v2877_v39, %v1151_v43 }
 0x354   :  { %v4679_v54 = vadd.f32 1.0, %v2881_v15 }
 0x356   :  { %vm1344_vm8 = vweird.f32 %v4679_v54 }
 0x366   :  { %v1271_v14 = vpop.f32.mrf.mxu0 }
 0x367   :  { %v1272_v51 = vadd.f32 %v1271_v14, %v6247_v9  ;;  %v1158_v14 = vand.u32 2147483648, %v1146_v63 }
 0x369   :  { %v1314_v61 = vadd.f32 %v1272_v51, %v1212_v33  ;;  %v1140_v33 = vpop.f32.mrf.mxu3  ;;  %v1120_v51 = vpop.f32.mrf.mxu2 }
 0x36b   :  { %v2774_v2 = vmul.f32 -1.442695, %v1314_v61  ;;  %v6248_v61 = vld [vmem:[#allocation74_spill] sm:$0xff] }
 0x36d   :  { %2882 = vpow2.f32 %v2774_v2  ;;  %v1141_v2 = vadd.f32 %v1140_v33, %v6248_v61  ;;  %v1121_v33 = vadd.f32 %v1120_v51, %v4112_v10  ;;  %v6266_v51 = vld [vmem:[#allocation114_spill] sm:$0xff] }
 0x36e   :  { %2884 = vrcp.f32 %v4677_v17 }
 0x36f   :  { %2886 = vrcp.f32 %v4679_v54  ;;  %v1181_v34 = vadd.f32 %v4107_v11, %v1141_v2 }
 0x373   :  { %v2883_v7 = vpop.eup %2882 }
 0x374   :  { %v1318_v26 = vadd.f32 1.0, %v2883_v7  ;;  %v4683_v41 = vpop.eup %2884  ;;  %v1159_v7 = vor.u32 1.1754944e-38, %v1158_v14  ;;  %v1311_v14 = vpop.f32.mrf.mxu2 }
 0x375   :  { %v4685_v23 = vpop.eup %2886  ;;  %v1167_v15 = vmul.f32 %v4683_v41, %v4677_v17  ;;  %vm1172_vm3 = vweird.f32 %v4683_v41 }
 0x376   :  { %2888 = vrcp.f32 %v1318_v26  ;;  %v1340_v62 = vmul.f32 %v4685_v23, %v4679_v54  ;;  %v1160_v38 = vsel %vm1157_vm14, %v1159_v7, %v1155_v50  ;;  %v1330_v19 = vand.u32 2147483648, %v1318_v26  ;;  %vm4704_vm7 = vmor %vm1171_vm2, %vm1172_vm3 }
 0x377   :  { %v1168_v4 = vsub.f32 1.0, %v1167_v15  ;;  %v1182_v30 = vmul.f32 %v1181_v34, %v1160_v38  ;;  %v1328_v43 = vand.u32 2147483647, %v1318_v26  ;;  %vm1324_vm1 = vweird.f32 %v1318_v26 }
 0x378   :  { %v1341_v63 = vsub.f32 1.0, %v1340_v62  ;;  %v1331_v11 = vor.u32 1.1754944e-38, %v1330_v19  ;;  %v1177_v34 = vand.u32 2147483648, %v4677_v17  ;;  %vm1345_vm6 = vweird.f32 %v4685_v23 }
 0x379   :  { %v1169_v57 = vmul.f32 %v4683_v41, %v1168_v4  ;;  %v1183_v61 = vadd.f32 %v1182_v30, %v1121_v33  ;;  %vm1329_vm5 = vcmp.eq.f32.partialorder %v1328_v43, 8.507059e+37  ;;  %v1252_v19 = vadd.f32 %v4673_v16, %v3928_v27  ;;  %vm1346_vm9 = vmor %vm1344_vm8, %vm1345_vm6 }
 0x37a   :  { %v1342_v59 = vmul.f32 %v4685_v23, %v1341_v63 }
 0x37b   :  { %v1170_v38 = vadd.f32 %v4683_v41, %v1169_v57  ;;  %2890 = vtanh.f32 %v1183_v61  ;;  %v1350_v57 = vand.u32 2147483648, %v4679_v54 }
 0x37c   :  { %v2889_v9 = vpop.eup %2888  ;;  %v1343_v4 = vadd.f32 %v4685_v23, %v1342_v59 }
 0x37d   :  { %v1320_v12 = vmul.f32 %v2889_v9, %v1318_v26  ;;  %vm1325_vm15 = vweird.f32 %v2889_v9  ;;  %v1175_v26 = vand.u32 2147483647, %v4677_v17  ;;  %v1174_v50 = vsel %vm4704_vm7, %v4683_v41, %v1170_v38 }
 0x37e   :  { %vm1326_vm4 = vmor %vm1324_vm1, %vm1325_vm15  ;;  %v1178_v17 = vor.u32 1.1754944e-38, %v1177_v34  ;;  %v1347_v62 = vsel %vm1346_vm9, %v4685_v23, %v1343_v4  ;;  %v1351_v61 = vor.u32 1.1754944e-38, %v1350_v57  ;;  %v6259_v34 = vld [vmem:[#allocation48_spill] sm:$0xff]  ;;  %v6263_v4 = vld [vmem:[#allocation57_spill] sm:$0xff] }
 0x37f   :  { %v1321_v18 = vsub.f32 1.0, %v1320_v12  ;;  %vm1176_vm10 = vcmp.eq.f32.partialorder %v1175_v26, 8.507059e+37  ;;  %v6265_v26 = vld [vmem:[#allocation80_spill] sm:$0xff] }
 0x380   :  { %v1179_v63 = vsel %vm1176_vm10, %v1178_v17, %v1174_v50  ;;  %v6267_v57 = vld [vmem:[#allocation28_spill] sm:$0xff]  ;;  %v6272_v17 = vld [vmem:[#allocation85_spill] sm:$0xff] }
 0x381   :  { %v1322_v39 = vmul.f32 %v2889_v9, %v1321_v18  ;;  %v1312_v18 = vadd.f32 %v1311_v14, %v6094_v28  ;;  %v2891_v16 = vpop.eup %2890  ;;  %v1187_v41 = vmul.f32 %v1179_v63, %v4446_v56  ;;  %v1489_v56 = vld [vmem:[#allocation4 + $0x8] sm:$0x3] }
 0x382   :  { %v6271_v50 = vld [vmem:[#allocation84_spill] sm:$0xff] }
 0x383   :  { %v1323_v15 = vadd.f32 %v2889_v9, %v1322_v39  ;;  %v1185_v39 = vsub.f32 1.0, %v1179_v63  ;;  %v6276_v63 = vld [vmem:[#allocation34_spill] sm:$0xff] }
 0x385   :  { %v1327_v12 = vsel %vm1326_vm4, %v2889_v9, %v1323_v15  ;;  %v1348_v9 = vand.u32 2147483647, %v4679_v54  ;;  %v1186_v14 = vmul.f32 %v2891_v16, %v1185_v39  ;;  %v6277_v16 = vld [vmem:[#allocation90_spill] sm:$0xff]  ;;  %v6279_v39 = vld [vmem:[#allocation36_spill] sm:$0xff] }
 0x386   :  { %v1332_v30 = vsel %vm1329_vm5, %v1331_v11, %v1327_v12  ;;  %v6262_v12 = vld [vmem:[#allocation54_spill] sm:$0xff] }
 0x387   :  { %v1354_v2 = vmul.f32 %v1332_v30, %v1312_v18  ;;  %vm1349_vm11 = vcmp.eq.f32.partialorder %v1348_v9, 8.507059e+37  ;;  %v4719_v11 = vadd.f32 %v1187_v41, %v1186_v14  ;;  %v6261_v18 = vld [vmem:[#allocation78_spill] sm:$0xff]  ;;  %v6281_v14 = vld [vmem:[#allocation95_spill] sm:$0xff] }
 0x388   :  { %v1352_v33 = vsel %vm1349_vm11, %v1351_v61, %v1347_v62  ;;  %v6264_v30 = vld [vmem:[#allocation26_spill] sm:$0xff]  ;;  %v6274_v62 = vld [vmem:[#allocation87_spill] sm:$0xff]  ;;  %v6275_v61 = vld [vmem:[#allocation88_spill] sm:$0xff] }
 0x389   :  { %v1355_v7 = vadd.f32 %v1354_v2, %v1252_v19  ;;  %v1357_v43 = vsub.f32 1.0, %v1352_v33  ;;  %v1359_v59 = vmul.f32 %v1352_v33, %v4448_v21  ;;  %v6258_v21 = vld [vmem:[#allocation23_spill] sm:$0xff]  ;;  %v6268_v19 = vld [vmem:[#allocation82_spill] sm:$0xff]  ;;  %v6269_v2 = vld [vmem:[#allocation113_spill] sm:$0xff] }
 0x38a   :  { %v6270_v9 = vld [vmem:[#allocation30_spill] sm:$0xff]  ;;  %v6278_v33 = vld [vmem:[#allocation92_spill] sm:$0xff]  ;;  %v6284_v41 = vld [vmem:[#allocation99_spill] sm:$0xff] }
 0x38b   :  { %2892 = vtanh.f32 %v1355_v7  ;;  %v6273_v7 = vld [vmem:[#allocation32_spill] sm:$0xff] }
 0x391   :  { %v2893_v54 = vpop.eup %2892 }
 0x392   :  { %v1358_v15 = vmul.f32 %v2893_v54, %v1357_v43  ;;  %v6280_v43 = vld [vmem:[#allocation94_spill] sm:$0xff] }
 0x393   :  { %v6282_v54 = vld [vmem:[#allocation38_spill] sm:$0xff] }
 0x394   :  { %v4721_v38 = vadd.f32 %v1359_v59, %v1358_v15  ;;  %v6283_v59 = vld [vmem:[#allocation98_spill] sm:$0xff]  ;;  %v6285_v15 = vld [vmem:[#allocation40_spill] sm:$0xff] }
 0x396   :  { %v1361_v23 = vadd.f32 %v4721_v38, %v4719_v11 }
 0x398   :  { %1378 = vmatmul.f32.vlgmr.msra.gmra.mxu3 %v1361_v23  ;;  %1398 = vmatmul.f32.vlgmr.msra.gmra.mxu0 %v1361_v23 }
 0x399   :  { %1418 = vmatmul.f32.vlgmr.msra.gmra.mxu1 %v1361_v23  ;;  %1438 = vmatmul.f32.vlgmr.msra.gmra.mxu2 %v1361_v23  ;;  %v6286_v23 = vld [vmem:[#allocation42_spill] sm:$0xff] }
 0x39a   :  { %1528 = vmatpush.msra.mxu3 %v4147_v40  ;;  %1701 = vmatpush.msra.mxu0 %v4453_v49  ;;  %v6251_v40 = vld [vmem:[#allocation37_spill] sm:$0xff] }
 0x39b   :  { %1721 = vmatpush.msra.mxu1 %v4456_v44  ;;  %1807 = vmatpush.msra.mxu2 %v4152_v52  ;;  %v6252_v52 = vld [vmem:[#allocation22_spill] sm:$0xff] }
 0x39c   :  { %1702 = vmatpush.msra.mxu0 %v4460_v47 }
 0x39d   :  { %1722 = vmatpush.msra.mxu1 %v4463_v36 }
 0x39e   :  { %1703 = vmatpush.msra.mxu0 %v4466_v29 }
 0x39f   :  { %1723 = vmatpush.msra.mxu1 %v4469_v35 }
 0x3a0   :  { %2778 = vmatmul.msk.f32.vlgmr.msrb.gmra.mxu3 %vm181_vm0, %v1489_v56  ;;  %1589 = vmatmul.f32.vlgmr.msrb.gmra.mxu0 %v4721_v38 }
 0x3a1   :  { %1609 = vmatmul.f32.vlgmr.msrb.gmra.mxu1 %v4721_v38  ;;  %1548 = vmatpush.msrb.mxu3 %v4162_v32  ;;  %v6253_v32 = vld [vmem:[#allocation39_spill] sm:$0xff] }
 0x3a2   :  { %1704 = vmatpush.msra.mxu0 %v4476_v0  ;;  %1724 = vmatpush.msra.mxu1 %v4479_v42 }
 0x3a4   :  { %1705 = vmatpush.msra.mxu0 %v4482_v20  ;;  %1725 = vmatpush.msra.mxu1 %v4485_v5 }
 0x3a6   :  { %1706 = vmatpush.msra.mxu0 %v4488_v53  ;;  %1726 = vmatpush.msra.mxu1 %v4491_v1 }
 0x3a8   :  { %2779 = vmatmul.msk.f32.vlgmr.msra.gmra.mxu3 %vm181_vm0, %v1489_v56  ;;  %1707 = vmatpush.msra.mxu0 %v4495_v45 }
 0x3a9   :  { %1553 = vmatpush.msra.mxu3 %v4173_v22  ;;  %1727 = vmatpush.msra.mxu1 %v4499_v48  ;;  %v6254_v22 = vld [vmem:[#allocation41_spill] sm:$0xff] }
 0x3aa   :  { %1708 = vmatpush.msra.mxu0 %v4502_v37 }
 0x3ab   :  { %1554 = vmatpush.msra.mxu3 %v4178_v6  ;;  %1728 = vmatpush.msra.mxu1 %v4506_v58  ;;  %v6255_v6 = vld [vmem:[#allocation76_spill] sm:$0xff] }
 0x3ac   :  { %1709 = vmatpush.msra.mxu0 %v4509_v31 }
 0x3ad   :  { %1555 = vmatpush.msra.mxu3 %v4183_v8  ;;  %1729 = vmatpush.msra.mxu1 %v4513_v24  ;;  %v6256_v8 = vld [vmem:[#allocation43_spill] sm:$0xff] }
 0x3ae   :  { %1710 = vmatpush.msra.mxu0 %v4516_v13 }
 0x3af   :  { %1556 = vmatpush.msra.mxu3 %v4188_v25  ;;  %1730 = vmatpush.msra.mxu1 %v4520_v46  ;;  %v6257_v25 = vld [vmem:[#allocation45_spill] sm:$0xff] }
 0x3b0   :  { %2780 = vmatmul.msk.f32.vlgmr.msrb.gmra.mxu3 %vm181_vm0, %v1489_v56  ;;  %1711 = vmatpush.msra.mxu0 %v4524_v3  ;;  %v6287_v56 = vld [vmem:[#allocation100_spill] sm:$0xff] }
 0x3b1   :  { %1557 = vmatpush.msra.mxu3 %v4194_v55  ;;  %1731 = vmatpush.msra.mxu1 %v4528_v60  ;;  %v6260_v55 = vld [vmem:[#allocation51_spill] sm:$0xff] }
 0x3b2   :  { %1712 = vmatpush.msra.mxu0 %v6251_v40 }
 0x3b3   :  { %1558 = vmatpush.msra.mxu3 %v6252_v52  ;;  %1732 = vmatpush.msra.mxu1 %v6253_v32  ;;  %v6288_v52 = vld [vmem:[#allocation44_spill] sm:$0xff] }
 0x3b4   :  { %1713 = vmatpush.msra.mxu0 %v6254_v22 }
 0x3b5   :  { %1559 = vmatpush.msra.mxu3 %v6255_v6  ;;  %1733 = vmatpush.msra.mxu1 %v6256_v8  ;;  %v6289_v6 = vld [vmem:[#allocation47_spill] sm:$0xff] }
 0x3b6   :  { %1714 = vmatpush.msra.mxu0 %v6257_v25 }
 0x3b7   :  { %1560 = vmatpush.msra.mxu3 %v6258_v21  ;;  %1734 = vmatpush.msra.mxu1 %v6259_v34  ;;  %v6290_v21 = vld [vmem:[#allocation103_spill] sm:$0xff] }
 0x3b8   :  { %1715 = vmatpush.msra.mxu0 %v6260_v55 }
 0x3b9   :  { %1561 = vmatpush.msra.mxu3 %v6261_v18  ;;  %1735 = vmatpush.msra.mxu1 %v6262_v12  ;;  %v6291_v18 = vld [vmem:[#allocation50_spill] sm:$0xff] }
 0x3ba   :  { %1716 = vmatpush.msra.mxu0 %v6263_v4 }
 0x3bb   :  { %1562 = vmatpush.msra.mxu3 %v6264_v30  ;;  %1736 = vmatpush.msra.mxu1 %v6266_v51  ;;  %v6292_v30 = vld [vmem:[#allocation53_spill] sm:$0xff] }
 0x3bc   :  { %1892 = vmatpush.msrb.mxu0 %v6265_v26  ;;  %v6293_v26 = vld [vmem:[#allocation104_spill] sm:$0xff] }
 0x3bd   :  { %1563 = vmatpush.msra.mxu3 %v6267_v57  ;;  %1960 = vmatpush.msrb.mxu1 %v6269_v2  ;;  %v6294_v57 = vld [vmem:[#allocation46_spill] sm:$0xff] }
 0x3be   :  { %1893 = vmatpush.msrb.mxu0 %v6268_v19  ;;  %v6295_v19 = vld [vmem:[#allocation56_spill] sm:$0xff] }
 0x3bf   :  { %1564 = vmatpush.msra.mxu3 %v6270_v9  ;;  %1961 = vmatpush.msrb.mxu1 %v6272_v17  ;;  %v6296_v9 = vld [vmem:[#allocation105_spill] sm:$0xff] }
 0x3c0   :  { %1894 = vmatpush.msrb.mxu0 %v6271_v50  ;;  %v6297_v50 = vld [vmem:[#allocation49_spill] sm:$0xff] }
 0x3c1   :  { %1565 = vmatpush.msra.mxu3 %v6273_v7  ;;  %1962 = vmatpush.msrb.mxu1 %v6275_v61  ;;  %v6298_v7 = vld [vmem:[#allocation65_spill] sm:$0xff] }
 0x3c2   :  { %1895 = vmatpush.msrb.mxu0 %v6274_v62  ;;  %v6299_v62 = vld [vmem:[#allocation106_spill] sm:$0xff] }
 0x3c3   :  { %1566 = vmatpush.msra.mxu3 %v6276_v63  ;;  %1963 = vmatpush.msrb.mxu1 %v6278_v33  ;;  %v6300_v63 = vld [vmem:[#allocation52_spill] sm:$0xff] }
 0x3c4   :  { %1896 = vmatpush.msrb.mxu0 %v6277_v16  ;;  %v6301_v16 = vld [vmem:[#allocation66_spill] sm:$0xff] }
 0x3c5   :  { %1567 = vmatpush.msra.mxu3 %v6279_v39  ;;  %1964 = vmatpush.msrb.mxu1 %v6281_v14  ;;  %v6302_v39 = vld [vmem:[#allocation107_spill] sm:$0xff] }
 0x3c6   :  { %1897 = vmatpush.msrb.mxu0 %v6280_v43  ;;  %v6303_v43 = vld [vmem:[#allocation55_spill] sm:$0xff] }
 0x3c7   :  { %1568 = vmatpush.msra.mxu3 %v6282_v54  ;;  %1965 = vmatpush.msrb.mxu1 %v6284_v41  ;;  %v6304_v54 = vld [vmem:[#allocation67_spill] sm:$0xff] }
 0x3c8   :  { %1898 = vmatpush.msrb.mxu0 %v6283_v59  ;;  %1569 = vmatmul.f32.vlgmr.msra.gmra.mxu3 %v4721_v38  ;;  %v6305_v59 = vld [vmem:[#allocation108_spill] sm:$0xff]  ;;  %v4872_v14 = vld [vmem:[%s5580_s7] ss:$0 sm:$0xff] }
 0x3c9   :  { %1681 = vmatpush.msrb.mxu3 %v6285_v15  ;;  %1966 = vmatpush.msrb.mxu1 %v6287_v56  ;;  %v6306_v15 = vld [vmem:[#allocation58_spill] sm:$0xff] }
 0x3ca   :  { %1899 = vmatpush.msrb.mxu0 %v6286_v23  ;;  %v6307_v23 = vld [vmem:[#allocation68_spill] sm:$0xff]  ;;  %v6341_v56 = vld [vmem:[#allocation102_spill] sm:$0xff] }
 0x3cb   :  { %1682 = vmatpush.msrb.mxu3 %v6288_v52  ;;  %1967 = vmatpush.msrb.mxu1 %v6290_v21  ;;  %v6308_v52 = vld [vmem:[#allocation109_spill] sm:$0xff] }
 0x3cc   :  { %1900 = vmatpush.msrb.mxu0 %v6289_v6  ;;  %v6309_v6 = vld [vmem:[#allocation59_spill] sm:$0xff] }
 0x3cd   :  { %1683 = vmatpush.msrb.mxu3 %v6291_v18  ;;  %1968 = vmatpush.msrb.mxu1 %v6293_v26  ;;  %v6310_v18 = vld [vmem:[#allocation69_spill] sm:$0xff] }
 0x3ce   :  { %1901 = vmatpush.msrb.mxu0 %v6292_v30  ;;  %v6311_v30 = vld [vmem:[#allocation110_spill] sm:$0xff] }
 0x3cf   :  { %1684 = vmatpush.msrb.mxu3 %v6294_v57  ;;  %1969 = vmatpush.msrb.mxu1 %v6296_v9  ;;  %v6312_v57 = vld [vmem:[#allocation60_spill] sm:$0xff] }
 0x3d0   :  { %1902 = vmatpush.msrb.mxu0 %v6295_v19  ;;  %v6313_v19 = vld [vmem:[#allocation111_spill] sm:$0xff] }
 0x3d1   :  { %1685 = vmatpush.msrb.mxu3 %v6297_v50  ;;  %1970 = vmatpush.msrb.mxu1 %v6299_v62  ;;  %v6314_v50 = vld [vmem:[#allocation71_spill] sm:$0xff]  ;;  %v6339_v62 = vld [vmem:[#allocation96_spill] sm:$0xff] }
 0x3d2   :  { %1903 = vmatpush.msrb.mxu0 %v6298_v7  ;;  %v6315_v7 = vld [vmem:[#allocation61_spill] sm:$0xff] }
 0x3d3   :  { %1686 = vmatpush.msrb.mxu3 %v6300_v63  ;;  %1971 = vmatpush.msrb.mxu1 %v6302_v39  ;;  %v6316_v63 = vld [vmem:[#allocation73_spill] sm:$0xff]  ;;  %v6338_v39 = vld [vmem:[#allocation72_spill] sm:$0xff] }
 0x3d4   :  { %1904 = vmatpush.msrb.mxu0 %v6301_v16  ;;  %v6317_v16 = vld [vmem:[#allocation62_spill] sm:$0xff] }
 0x3d5   :  { %1687 = vmatpush.msrb.mxu3 %v6303_v43  ;;  %1972 = vmatpush.msrb.mxu1 %v6305_v59  ;;  %v6318_v43 = vld [vmem:[#allocation75_spill] sm:$0xff] }
 0x3d6   :  { %1905 = vmatpush.msrb.mxu0 %v6304_v54  ;;  %v6319_v54 = vld [vmem:[#allocation63_spill] sm:$0xff] }
 0x3d7   :  { %1688 = vmatpush.msrb.mxu3 %v6306_v15  ;;  %1973 = vmatpush.msrb.mxu1 %v6308_v52  ;;  %v6320_v15 = vld [vmem:[#allocation77_spill] sm:$0xff] }
 0x3d8   :  { %1906 = vmatpush.msrb.mxu0 %v6307_v23  ;;  %v6321_v23 = vld [vmem:[#allocation64_spill] sm:$0xff] }
 0x3d9   :  { %1689 = vmatpush.msrb.mxu3 %v6309_v6  ;;  %1974 = vmatpush.msrb.mxu1 %v6311_v30  ;;  %v6322_v6 = vld [vmem:[#allocation79_spill] sm:$0xff] }
 0x3da   :  { %1907 = vmatpush.msrb.mxu0 %v6310_v18  ;;  %v6323_v18 = vld [vmem:[#allocation81_spill] sm:$0xff] }
 0x3db   :  { %1690 = vmatpush.msrb.mxu3 %v6312_v57  ;;  %1975 = vmatpush.msrb.mxu1 %v6313_v19  ;;  %v6324_v57 = vld [vmem:[#allocation83_spill] sm:$0xff]  ;;  %v6336_v19 = vld [vmem:[#allocation70_spill] sm:$0xff] }
 0x3dd   :  { %1691 = vmatpush.msrb.mxu3 %v6314_v50  ;;  %v6325_v50 = vld [vmem:[#allocation86_spill] sm:$0xff] }
 0x3df   :  { %1692 = vmatpush.msrb.mxu3 %v6315_v7  ;;  %v6326_v7 = vld [vmem:[#allocation89_spill] sm:$0xff] }
 0x3e1   :  { %1693 = vmatpush.msrb.mxu3 %v6316_v63  ;;  %v6327_v63 = vld [vmem:[#allocation93_spill] sm:$0xff] }
 0x3e3   :  { %1694 = vmatpush.msrb.mxu3 %v6317_v16  ;;  %v6328_v16 = vld [vmem:[#allocation97_spill] sm:$0xff] }
 0x3e5   :  { %1695 = vmatpush.msrb.mxu3 %v6318_v43  ;;  %v6329_v43 = vld [vmem:[#allocation24_spill] sm:$0xff] }
 0x3e7   :  { %1696 = vmatpush.msrb.mxu3 %v6319_v54  ;;  %v6330_v54 = vld [vmem:[#allocation25_spill] sm:$0xff] }
 0x3e9   :  { %1872 = vmatpush.msra.mxu3 %v6320_v15  ;;  %v6331_v15 = vld [vmem:[#allocation27_spill] sm:$0xff] }
 0x3eb   :  { %1873 = vmatpush.msra.mxu3 %v6321_v23  ;;  %v6332_v23 = vld [vmem:[#allocation29_spill] sm:$0xff] }
 0x3ed   :  { %1874 = vmatpush.msra.mxu3 %v6322_v6  ;;  %v6333_v6 = vld [vmem:[#allocation31_spill] sm:$0xff] }
 0x3ef   :  { %1875 = vmatpush.msra.mxu3 %v6323_v18  ;;  %v6334_v18 = vld [vmem:[#allocation33_spill] sm:$0xff] }
 0x3f1   :  { %1876 = vmatpush.msra.mxu3 %v6324_v57  ;;  %v6335_v57 = vld [vmem:[#allocation35_spill] sm:$0xff] }
 0x3f3   :  { %1877 = vmatpush.msra.mxu3 %v6325_v50 }
 0x3f5   :  { %1878 = vmatpush.msra.mxu3 %v6326_v7 }
 0x3f7   :  { %1879 = vmatpush.msra.mxu3 %v6327_v63 }
 0x3f9   :  { %1880 = vmatpush.msra.mxu3 %v6328_v16 }
 0x3fb   :  { %1881 = vmatpush.msra.mxu3 %v6329_v43 }
 0x3fd   :  { %1882 = vmatpush.msra.mxu3 %v6330_v54  ;;  %v6337_v54 = vld [vmem:[#allocation91_spill] sm:$0xff] }
 0x3ff   :  { %1883 = vmatpush.msra.mxu3 %v6331_v15 }
 0x401   :  { %1884 = vmatpush.msra.mxu3 %v6332_v23 }
 0x403   :  { %1885 = vmatpush.msra.mxu3 %v6333_v6 }
 0x405   :  { %1886 = vmatpush.msra.mxu3 %v6334_v18 }
 0x407   :  { %1887 = vmatpush.msra.mxu3 %v6335_v57 }
 0x415   :  { %v1399_v30 = vpop.f32.mrf.mxu0 }
 0x416   :  { %v1400_v23 = vadd.f32 %v1399_v30, %v6338_v39 }
 0x418   :  { %v2777_v57 = vmul.f32 -1.442695, %v1400_v23 }
 0x41b   :  { %v1379_v50 = vpop.f32.mrf.mxu3 }
 0x41c   :  { %v1380_v63 = vadd.f32 %v1379_v50, %v6336_v19 }
 0x41d   :  { %v1590_v52 = vpop.f32.mrf.mxu0 }
 0x41e   :  { %v2776_v16 = vmul.f32 -1.442695, %v1380_v63  ;;  %v1591_v6 = vadd.f32 %v1590_v52, %v6339_v62 }
 0x420   :  { %2894 = vpow2.f32 %v2776_v16  ;;  %v6340_v16 = vld [vmem:[#allocation101_spill] sm:$0xff] }
 0x423   :  { %v1510_v7 = vpop.f32.mrf.mxu3 }
 0x424   :  { %v1511_v19 = vadd.f32 %v1510_v7, %v6340_v16 }
 0x426   :  { %v2895_v15 = vpop.eup %2894 }
 0x427   :  { %v1445_v9 = vadd.f32 1.0, %v2895_v15 }
 0x429   :  { %2896 = vrcp.f32 %v1445_v9  ;;  %vm1451_vm13 = vweird.f32 %v1445_v9 }
 0x42a   :  { %2898 = vpow2.f32 %v2777_v57 }
 0x42b   :  { %v1530_v43 = vpop.f32.mrf.mxu3 }
 0x42c   :  { %v1531_v59 = vadd.f32 %v1530_v43, %v6337_v54 }
 0x42e   :  { %v1633_v18 = vadd.f32 %v1591_v6, %v1531_v59 }
 0x42f   :  { %v2897_v50 = vpop.eup %2896 }
 0x430   :  { %v2782_v21 = vmul.f32 -1.442695, %v1633_v18  ;;  %v2899_v54 = vpop.eup %2898  ;;  %v1447_v41 = vmul.f32 %v2897_v50, %v1445_v9  ;;  %vm1452_vm12 = vweird.f32 %v2897_v50 }
 0x431   :  { %v4854_v52 = vadd.f32 1.0, %v2899_v54  ;;  %vm1453_vm14 = vmor %vm1451_vm13, %vm1452_vm12 }
 0x432   :  { %2900 = vpow2.f32 %v2782_v21  ;;  %v1448_v15 = vsub.f32 1.0, %v1447_v41  ;;  %v1419_v41 = vpop.f32.mrf.mxu1 }
 0x433   :  { %v4850_v26 = vpop.f32.mrf.mxu3  ;;  %vm1470_vm5 = vweird.f32 %v4854_v52 }
 0x434   :  { %v1449_v21 = vmul.f32 %v2897_v50, %v1448_v15 }
 0x436   :  { %v1450_v57 = vadd.f32 %v2897_v50, %v1449_v21 }
 0x438   :  { %v2901_v39 = vpop.eup %2900  ;;  %v1454_v15 = vsel %vm1453_vm14, %v2897_v50, %v1450_v57 }
 0x439   :  { %v4856_v6 = vadd.f32 1.0, %v2901_v39  ;;  %v1455_v39 = vand.u32 2147483647, %v1445_v9 }
 0x43b   :  { %vm1456_vm15 = vcmp.eq.f32.partialorder %v1455_v39, 8.507059e+37  ;;  %v1610_v39 = vpop.f32.mrf.mxu1  ;;  %vm1643_vm9 = vweird.f32 %v4856_v6 }
 0x44b   :  { %v1570_v63 = vpop.f32.mrf.mxu3 }
 0x44c   :  { %v1571_v43 = vadd.f32 %v1570_v63, %v6341_v56  ;;  %v1457_v63 = vand.u32 2147483648, %v1445_v9 }
 0x44e   :  { %v1613_v30 = vadd.f32 %v1571_v43, %v1511_v19  ;;  %v1439_v19 = vpop.f32.mrf.mxu2 }
 0x450   :  { %v2781_v59 = vmul.f32 -1.442695, %v1613_v30  ;;  %v6342_v30 = vld [vmem:[#allocation74_spill] sm:$0xff] }
 0x452   :  { %2902 = vpow2.f32 %v2781_v59  ;;  %v1440_v59 = vadd.f32 %v1439_v19, %v6342_v30 }
 0x453   :  { %2904 = vrcp.f32 %v4854_v52 }
 0x454   :  { %2906 = vrcp.f32 %v4856_v6  ;;  %v1480_v9 = vadd.f32 %v4872_v14, %v1440_v59  ;;  %v1611_v59 = vadd.f32 %v1610_v39, %v6094_v28 }
 0x458   :  { %v2903_v23 = vpop.eup %2902 }
 0x459   :  { %v1617_v7 = vadd.f32 1.0, %v2903_v23  ;;  %v4860_v18 = vpop.eup %2904  ;;  %v1458_v23 = vor.u32 1.1754944e-38, %v1457_v63  ;;  %v1420_v63 = vadd.f32 %v1419_v41, %v4112_v10 }
 0x45a   :  { %v4862_v54 = vpop.eup %2906  ;;  %v1466_v43 = vmul.f32 %v4860_v18, %v4854_v52  ;;  %vm1471_vm3 = vweird.f32 %v4860_v18 }
 0x45b   :  { %2908 = vrcp.f32 %v1617_v7  ;;  %v1639_v21 = vmul.f32 %v4862_v54, %v4856_v6  ;;  %v1459_v62 = vsel %vm1456_vm15, %v1458_v23, %v1454_v15  ;;  %v1629_v57 = vand.u32 2147483648, %v1617_v7  ;;  %vm4886_vm8 = vmor %vm1470_vm5, %vm1471_vm3 }
 0x45c   :  { %v1467_v16 = vsub.f32 1.0, %v1466_v43  ;;  %v1481_v17 = vmul.f32 %v1480_v9, %v1459_v62  ;;  %v1627_v43 = vand.u32 2147483647, %v1617_v7  ;;  %vm1623_vm2 = vweird.f32 %v1617_v7 }
 0x45d   :  { %v1640_v61 = vsub.f32 1.0, %v1639_v21  ;;  %vm1644_vm7 = vweird.f32 %v4862_v54  ;;  %v1551_v9 = vadd.f32 %v4850_v26, %v3928_v27 }
 0x45e   :  { %v1468_v50 = vmul.f32 %v4860_v18, %v1467_v16  ;;  %v1482_v23 = vadd.f32 %v1481_v17, %v1420_v63  ;;  %v1476_v16 = vand.u32 2147483648, %v4854_v52  ;;  %vm1628_vm6 = vcmp.eq.f32.partialorder %v1627_v43, 8.507059e+37  ;;  %vm1645_vm10 = vmor %vm1643_vm9, %vm1644_vm7 }
 0x45f   :  { %v1641_v15 = vmul.f32 %v4862_v54, %v1640_v61  ;;  %v1474_v61 = vand.u32 2147483647, %v4854_v52 }
 0x460   :  { %v1469_v62 = vadd.f32 %v4860_v18, %v1468_v50  ;;  %2910 = vtanh.f32 %v1482_v23  ;;  %v1477_v52 = vor.u32 1.1754944e-38, %v1476_v16 }
 0x461   :  { %v2909_v56 = vpop.eup %2908  ;;  %v1642_v21 = vadd.f32 %v4862_v54, %v1641_v15  ;;  %vm1475_vm11 = vcmp.eq.f32.partialorder %v1474_v61, 8.507059e+37  ;;  %v5036_v61 = vld [vmem:[#allocation13 + $0x1c8] sm:$0xff] }
 0x462   :  { %v1619_v33 = vmul.f32 %v2909_v56, %v1617_v7  ;;  %vm1624_vm1 = vweird.f32 %v2909_v56  ;;  %6364 = vst [vmem:[#allocation54_spill] sm:$0xff] %v5036_v61  ;;  %v5039_v7 = vld [vmem:[#allocation10 + $0xb8] sm:$0xff] }
 0x463   :  { %vm1625_vm4 = vmor %vm1623_vm2, %vm1624_vm1 }
 0x464   :  { %v1620_v19 = vsub.f32 1.0, %v1619_v33  ;;  %v1630_v33 = vor.u32 1.1754944e-38, %v1629_v57  ;;  %v1646_v57 = vsel %vm1645_vm10, %v4862_v54, %v1642_v21  ;;  %v4907_v21 = vld [vmem:[#allocation7 + $0x8] sm:$0xff] }
 0x466   :  { %v1621_v30 = vmul.f32 %v2909_v56, %v1620_v19  ;;  %v2911_v26 = vpop.eup %2910 }
 0x468   :  { %v1622_v2 = vadd.f32 %v2909_v56, %v1621_v30  ;;  %v1649_v30 = vand.u32 2147483648, %v4856_v6 }
 0x46a   :  { %v1626_v41 = vsel %vm1625_vm4, %v2909_v56, %v1622_v2  ;;  %v1647_v2 = vand.u32 2147483647, %v4856_v6  ;;  %v1473_v56 = vsel %vm4886_vm8, %v4860_v18, %v1469_v62  ;;  %v1650_v63 = vor.u32 1.1754944e-38, %v1649_v30  ;;  %v6365_v30 = vld [vmem:[#allocation103_spill] sm:$0xff] }
 0x46b   :  { %v1631_v17 = vsel %vm1628_vm6, %v1630_v33, %v1626_v41  ;;  %v1478_v39 = vsel %vm1475_vm11, %v1477_v52, %v1473_v56  ;;  %v5050_v56 = vld [vmem:[#allocation13 + $0x188] sm:$0xff] }
 0x46c   :  { %v1653_v19 = vmul.f32 %v1631_v17, %v1611_v59  ;;  %vm1648_vm12 = vcmp.eq.f32.partialorder %v1647_v2, 8.507059e+37  ;;  %v1484_v15 = vsub.f32 1.0, %v1478_v39  ;;  %v1486_v18 = vmul.f32 %v1478_v39, %v4719_v11  ;;  %v4912_v11 = vld [vmem:[#allocation7] sm:$0xff]  ;;  %v6363_v17 = vld [vmem:[#allocation100_spill] sm:$0xff]  ;;  %6369 = vst [vmem:[#allocation80_spill] sm:$0xff] %v5050_v56 }
 0x46d   :  { %v1651_v43 = vsel %vm1648_vm12, %v1650_v63, %v1646_v57  ;;  %v6368_v2 = vld [vmem:[#allocation104_spill] sm:$0xff]  ;;  %v5053_v52 = vld [vmem:[#allocation10 + $0x88] sm:$0xff] }
 0x46e   :  { %v1654_v50 = vadd.f32 %v1653_v19, %v1551_v9  ;;  %v1656_v23 = vsub.f32 1.0, %v1651_v43  ;;  %v1485_v59 = vmul.f32 %v2911_v26, %v1484_v15  ;;  %v1658_v33 = vmul.f32 %v1651_v43, %v4721_v38  ;;  %v1788_v38 = vld [vmem:[#allocation4 + $0xa] sm:$0x3]  ;;  %v5043_v9 = vld [vmem:[#allocation13 + $0x1a8] sm:$0xff]  ;;  %v5046_v19 = vld [vmem:[#allocation10 + $0xa0] sm:$0xff]  ;;  %6370 = vst [vmem:[#allocation114_spill] sm:$0xff] %v5053_v52 }
 0x46f   :  { %6366 = vst [vmem:[#allocation57_spill] sm:$0xff] %v5043_v9  ;;  %v5057_v57 = vld [vmem:[#allocation13 + $0x168] sm:$0xff]  ;;  %v5067_v43 = vld [vmem:[#allocation10 + $0x58] sm:$0xff] }
 0x470   :  { %2912 = vtanh.f32 %v1654_v50  ;;  %v4901_v16 = vadd.f32 %v1486_v18, %v1485_v59  ;;  %6367 = vst [vmem:[#allocation26_spill] sm:$0xff] %v5046_v19  ;;  %v6371_v50 = vld [vmem:[#allocation105_spill] sm:$0xff]  ;;  %v5060_v63 = vld [vmem:[#allocation10 + $0x70] sm:$0xff]  ;;  %v6374_v39 = vld [vmem:[#allocation106_spill] sm:$0xff] }
 0x471   :  { %6372 = vst [vmem:[#allocation28_spill] sm:$0xff] %v5057_v57  ;;  %v5064_v26 = vld [vmem:[#allocation13 + $0x148] sm:$0xff]  ;;  %v5074_v59 = vld [vmem:[#allocation10 + $0x40] sm:$0xff] }
 0x472   :  { %6373 = vst [vmem:[#allocation82_spill] sm:$0xff] %v5060_v63  ;;  %v6377_v15 = vld [vmem:[#allocation107_spill] sm:$0xff] }
 0x473   :  { %6375 = vst [vmem:[#allocation30_spill] sm:$0xff] %v5064_v26  ;;  %v5081_v18 = vld [vmem:[#allocation10 + $0x28] sm:$0xff] }
 0x474   :  { %6376 = vst [vmem:[#allocation84_spill] sm:$0xff] %v5067_v43 }
 0x475   :  { %6379 = vst [vmem:[#allocation87_spill] sm:$0xff] %v5074_v59 }
 0x476   :  { %v2913_v6 = vpop.eup %2912  ;;  %6382 = vst [vmem:[#allocation90_spill] sm:$0xff] %v5081_v18 }
 0x477   :  { %v1657_v62 = vmul.f32 %v2913_v6, %v1656_v23  ;;  %v5071_v23 = vld [vmem:[#allocation13 + $0x128] sm:$0xff]  ;;  %v6380_v6 = vld [vmem:[#allocation108_spill] sm:$0xff] }
 0x478   :  { %6378 = vst [vmem:[#allocation32_spill] sm:$0xff] %v5071_v23 }
 0x479   :  { %v4903_v41 = vadd.f32 %v1658_v33, %v1657_v62  ;;  %v5078_v33 = vld [vmem:[#allocation13 + $0x108] sm:$0xff]  ;;  %v6383_v62 = vld [vmem:[#allocation109_spill] sm:$0xff] }
 0x47a   :  { %6381 = vst [vmem:[#allocation34_spill] sm:$0xff] %v5078_v33 }
 0x47b   :  { %v1660_v54 = vadd.f32 %v4903_v41, %v4901_v16 }
 0x47d   :  { %1677 = vmatmul.f32.vlgmr.msrb.gmra.mxu2 %v1660_v54  ;;  %1697 = vmatmul.f32.vlgmr.msrb.gmra.mxu3 %v1660_v54 }
 0x47e   :  { %1717 = vmatmul.f32.vlgmr.msra.gmra.mxu0 %v1660_v54  ;;  %1737 = vmatmul.f32.vlgmr.msra.gmra.mxu1 %v1660_v54  ;;  %v5085_v54 = vld [vmem:[#allocation13 + $0xe8] sm:$0xff] }
 0x47f   :  { %1827 = vmatpush.msrb.mxu2 %v4907_v21  ;;  %2000 = vmatpush.msrb.mxu3 %v4453_v49  ;;  %v4922_v49 = vld [vmem:[#allocation7 + $0x10] sm:$0xff]  ;;  %6384 = vst [vmem:[#allocation36_spill] sm:$0xff] %v5085_v54 }
 0x480   :  { %2020 = vmatpush.msra.mxu0 %v4456_v44  ;;  %2106 = vmatpush.msra.mxu1 %v4912_v11  ;;  %v4933_v44 = vld [vmem:[#allocation10 + $0x168] sm:$0xff] }
 0x481   :  { %2001 = vmatpush.msrb.mxu3 %v4460_v47  ;;  %v4938_v47 = vld [vmem:[#allocation10 + $0x150] sm:$0xff] }
 0x482   :  { %2021 = vmatpush.msra.mxu0 %v4463_v36  ;;  %v4943_v36 = vld [vmem:[#allocation10 + $0x138] sm:$0xff] }
 0x483   :  { %2002 = vmatpush.msrb.mxu3 %v4466_v29  ;;  %v4948_v29 = vld [vmem:[#allocation10 + $0x120] sm:$0xff] }
 0x484   :  { %2022 = vmatpush.msra.mxu0 %v4469_v35  ;;  %v4954_v35 = vld [vmem:[#allocation10 + $0x108] sm:$0xff] }
 0x485   :  { %2785 = vmatmul.msk.f32.vlgmr.msra.gmra.mxu2 %vm181_vm0, %v1788_v38  ;;  %1888 = vmatmul.f32.vlgmr.msra.gmra.mxu3 %v4903_v41 }
 0x486   :  { %1908 = vmatmul.f32.vlgmr.msrb.gmra.mxu0 %v4903_v41  ;;  %1847 = vmatpush.msra.mxu2 %v4922_v49 }
 0x487   :  { %2003 = vmatpush.msrb.mxu3 %v4476_v0  ;;  %2023 = vmatpush.msra.mxu0 %v4479_v42  ;;  %v4959_v0 = vld [vmem:[#allocation10 + $0xf0] sm:$0xff]  ;;  %v4964_v42 = vld [vmem:[#allocation10 + $0xd8] sm:$0xff] }
 0x488   :  { %6345 = vst [vmem:[#allocation112_spill] sm:$0xff] %v4959_v0 }
 0x489   :  { %2004 = vmatpush.msrb.mxu3 %v4482_v20  ;;  %2024 = vmatpush.msra.mxu0 %v4485_v5  ;;  %6346 = vst [vmem:[#allocation37_spill] sm:$0xff] %v4964_v42  ;;  %v4969_v20 = vld [vmem:[#allocation10 + $0xc0] sm:$0xff]  ;;  %v4974_v5 = vld [vmem:[#allocation10 + $0xa8] sm:$0xff] }
 0x48a   :  { %6347 = vst [vmem:[#allocation22_spill] sm:$0xff] %v4969_v20 }
 0x48b   :  { %2005 = vmatpush.msrb.mxu3 %v4488_v53  ;;  %2025 = vmatpush.msra.mxu0 %v4491_v1  ;;  %6348 = vst [vmem:[#allocation39_spill] sm:$0xff] %v4974_v5  ;;  %v4979_v53 = vld [vmem:[#allocation10 + $0x90] sm:$0xff]  ;;  %v4982_v1 = vld [vmem:[#allocation10 + $0x178] sm:$0xff] }
 0x48c   :  { %6349 = vst [vmem:[#allocation41_spill] sm:$0xff] %v4979_v53 }
 0x48d   :  { %2786 = vmatmul.msk.f32.vlgmr.msrb.gmra.mxu2 %vm181_vm0, %v1788_v38  ;;  %2006 = vmatpush.msrb.mxu3 %v4495_v45  ;;  %v4986_v45 = vld [vmem:[#allocation10 + $0x78] sm:$0xff] }
 0x48e   :  { %1852 = vmatpush.msrb.mxu2 %v4933_v44  ;;  %2026 = vmatpush.msra.mxu0 %v4499_v48  ;;  %6350 = vst [vmem:[#allocation76_spill] sm:$0xff] %v4986_v45  ;;  %v4989_v48 = vld [vmem:[#allocation10 + $0x160] sm:$0xff] }
 0x48f   :  { %2007 = vmatpush.msrb.mxu3 %v4502_v37  ;;  %v6351_v37 = vld [vmem:[#allocation113_spill] sm:$0xff] }
 0x490   :  { %1853 = vmatpush.msrb.mxu2 %v4938_v47  ;;  %2027 = vmatpush.msra.mxu0 %v4506_v58  ;;  %v4993_v58 = vld [vmem:[#allocation10 + $0x60] sm:$0xff] }
 0x491   :  { %2008 = vmatpush.msrb.mxu3 %v4509_v31  ;;  %6352 = vst [vmem:[#allocation43_spill] sm:$0xff] %v4993_v58  ;;  %v4996_v31 = vld [vmem:[#allocation10 + $0x148] sm:$0xff] }
 0x492   :  { %1854 = vmatpush.msrb.mxu2 %v4943_v36  ;;  %2028 = vmatpush.msra.mxu0 %v4513_v24  ;;  %v6353_v24 = vld [vmem:[#allocation85_spill] sm:$0xff] }
 0x493   :  { %2009 = vmatpush.msrb.mxu3 %v4516_v13  ;;  %v5000_v13 = vld [vmem:[#allocation10 + $0x48] sm:$0xff] }
 0x494   :  { %1855 = vmatpush.msrb.mxu2 %v4948_v29  ;;  %2029 = vmatpush.msra.mxu0 %v4520_v46  ;;  %6354 = vst [vmem:[#allocation45_spill] sm:$0xff] %v5000_v13  ;;  %v5003_v46 = vld [vmem:[#allocation10 + $0x130] sm:$0xff] }
 0x495   :  { %2787 = vmatmul.msk.f32.vlgmr.msra.gmra.mxu2 %vm181_vm0, %v1788_v38  ;;  %2010 = vmatpush.msrb.mxu3 %v4524_v3  ;;  %v6355_v3 = vld [vmem:[#allocation88_spill] sm:$0xff] }
 0x496   :  { %1856 = vmatpush.msrb.mxu2 %v4954_v35  ;;  %2030 = vmatpush.msra.mxu0 %v4528_v60  ;;  %v5007_v60 = vld [vmem:[#allocation10 + $0x30] sm:$0xff] }
 0x497   :  { %2011 = vmatpush.msrb.mxu3 %v6251_v40  ;;  %6356 = vst [vmem:[#allocation23_spill] sm:$0xff] %v5007_v60  ;;  %v5010_v40 = vld [vmem:[#allocation10 + $0x118] sm:$0xff]  ;;  %v5088_v38 = vld [vmem:[#allocation10 + $0x10] sm:$0xff] }
 0x498   :  { %1857 = vmatpush.msrb.mxu2 %v4959_v0  ;;  %2031 = vmatpush.msra.mxu0 %v6253_v32  ;;  %v6357_v32 = vld [vmem:[#allocation92_spill] sm:$0xff]  ;;  %6385 = vst [vmem:[#allocation94_spill] sm:$0xff] %v5088_v38 }
 0x499   :  { %2012 = vmatpush.msrb.mxu3 %v6254_v22  ;;  %v5014_v22 = vld [vmem:[#allocation10 + $0x18] sm:$0xff] }
 0x49a   :  { %1858 = vmatpush.msrb.mxu2 %v4964_v42  ;;  %2032 = vmatpush.msra.mxu0 %v6256_v8  ;;  %6358 = vst [vmem:[#allocation48_spill] sm:$0xff] %v5014_v22  ;;  %v5017_v8 = vld [vmem:[#allocation10 + $0x100] sm:$0xff] }
 0x49b   :  { %2013 = vmatpush.msrb.mxu3 %v6257_v25  ;;  %v6359_v25 = vld [vmem:[#allocation95_spill] sm:$0xff] }
 0x49c   :  { %1859 = vmatpush.msrb.mxu2 %v4969_v20  ;;  %2033 = vmatpush.msra.mxu0 %v6259_v34  ;;  %v5021_v34 = vld [vmem:[#allocation10] sm:$0xff] }
 0x49d   :  { %2014 = vmatpush.msrb.mxu3 %v6260_v55  ;;  %6360 = vst [vmem:[#allocation51_spill] sm:$0xff] %v5021_v34  ;;  %v5024_v55 = vld [vmem:[#allocation10 + $0xe8] sm:$0xff] }
 0x49e   :  { %1860 = vmatpush.msrb.mxu2 %v4974_v5  ;;  %2034 = vmatpush.msra.mxu0 %v6262_v12  ;;  %v6361_v12 = vld [vmem:[#allocation99_spill] sm:$0xff] }
 0x49f   :  { %2015 = vmatpush.msrb.mxu3 %v6263_v4  ;;  %v5029_v4 = vld [vmem:[#allocation13 + $0x1e8] sm:$0xff] }
 0x4a0   :  { %1861 = vmatpush.msrb.mxu2 %v4979_v53  ;;  %2035 = vmatpush.msra.mxu0 %v6266_v51  ;;  %6362 = vst [vmem:[#allocation78_spill] sm:$0xff] %v5029_v4  ;;  %v5032_v51 = vld [vmem:[#allocation10 + $0xd0] sm:$0xff] }
 0x4a1   :  { %2191 = vmatpush.msra.mxu3 %v4982_v1 }
 0x4a2   :  { %1862 = vmatpush.msrb.mxu2 %v4986_v45  ;;  %2259 = vmatpush.msrb.mxu0 %v6351_v37  ;;  %v6386_v37 = vld [vmem:[#allocation110_spill] sm:$0xff] }
 0x4a3   :  { %2192 = vmatpush.msra.mxu3 %v4989_v48 }
 0x4a4   :  { %1863 = vmatpush.msrb.mxu2 %v4993_v58  ;;  %2260 = vmatpush.msrb.mxu0 %v6353_v24  ;;  %v5092_v24 = vld [vmem:[#allocation13 + $0xc8] sm:$0xff] }
 0x4a5   :  { %2193 = vmatpush.msra.mxu3 %v4996_v31  ;;  %6387 = vst [vmem:[#allocation38_spill] sm:$0xff] %v5092_v24 }
 0x4a6   :  { %1864 = vmatpush.msrb.mxu2 %v5000_v13  ;;  %2261 = vmatpush.msrb.mxu0 %v6355_v3  ;;  %v6388_v3 = vld [vmem:[#allocation111_spill] sm:$0xff] }
 0x4a7   :  { %2194 = vmatpush.msra.mxu3 %v5003_v46 }
 0x4a8   :  { %1865 = vmatpush.msrb.mxu2 %v5007_v60  ;;  %2262 = vmatpush.msrb.mxu0 %v6357_v32  ;;  %v5096_v32 = vld [vmem:[#allocation13 + $0xa8] sm:$0xff] }
 0x4a9   :  { %2195 = vmatpush.msra.mxu3 %v5010_v40  ;;  %6389 = vst [vmem:[#allocation98_spill] sm:$0xff] %v5096_v32 }
 0x4aa   :  { %1866 = vmatpush.msrb.mxu2 %v5014_v22  ;;  %2263 = vmatpush.msrb.mxu0 %v6359_v25  ;;  %v5099_v25 = vld [vmem:[#allocation13 + $0x88] sm:$0xff] }
 0x4ab   :  { %2196 = vmatpush.msra.mxu3 %v5017_v8  ;;  %6390 = vst [vmem:[#allocation40_spill] sm:$0xff] %v5099_v25 }
 0x4ac   :  { %1867 = vmatpush.msrb.mxu2 %v5021_v34  ;;  %2264 = vmatpush.msrb.mxu0 %v6361_v12  ;;  %v5102_v12 = vld [vmem:[#allocation13 + $0x68] sm:$0xff] }
 0x4ad   :  { %2197 = vmatpush.msra.mxu3 %v5024_v55  ;;  %1868 = vmatmul.f32.vlgmr.msrb.gmra.mxu2 %v4903_v41  ;;  %6391 = vst [vmem:[#allocation42_spill] sm:$0xff] %v5102_v12 }
 0x4ae   :  { %1980 = vmatpush.msra.mxu2 %v5029_v4  ;;  %2265 = vmatpush.msrb.mxu0 %v6363_v17  ;;  %v5105_v17 = vld [vmem:[#allocation13 + $0x48] sm:$0xff] }
 0x4af   :  { %2198 = vmatpush.msra.mxu3 %v5032_v51  ;;  %6392 = vst [vmem:[#allocation44_spill] sm:$0xff] %v5105_v17 }
 0x4b0   :  { %1981 = vmatpush.msra.mxu2 %v5036_v61  ;;  %2266 = vmatpush.msrb.mxu0 %v6365_v30  ;;  %v5108_v30 = vld [vmem:[#allocation13 + $0x28] sm:$0xff] }
 0x4b1   :  { %2199 = vmatpush.msra.mxu3 %v5039_v7  ;;  %6393 = vst [vmem:[#allocation47_spill] sm:$0xff] %v5108_v30 }
 0x4b2   :  { %1982 = vmatpush.msra.mxu2 %v5043_v9  ;;  %2267 = vmatpush.msrb.mxu0 %v6368_v2  ;;  %v5111_v2 = vld [vmem:[#allocation13 + $0x8] sm:$0xff] }
 0x4b3   :  { %2200 = vmatpush.msra.mxu3 %v5046_v19  ;;  %6394 = vst [vmem:[#allocation50_spill] sm:$0xff] %v5111_v2 }
 0x4b4   :  { %1983 = vmatpush.msra.mxu2 %v5050_v56  ;;  %2268 = vmatpush.msrb.mxu0 %v6371_v50  ;;  %v5114_v50 = vld [vmem:[#allocation10 + $0x170] sm:$0xff] }
 0x4b5   :  { %2201 = vmatpush.msra.mxu3 %v5053_v52  ;;  %6395 = vst [vmem:[#allocation53_spill] sm:$0xff] %v5114_v50 }
 0x4b6   :  { %1984 = vmatpush.msra.mxu2 %v5057_v57  ;;  %2269 = vmatpush.msrb.mxu0 %v6374_v39  ;;  %v5117_v39 = vld [vmem:[#allocation10 + $0x158] sm:$0xff] }
 0x4b7   :  { %2202 = vmatpush.msra.mxu3 %v5060_v63  ;;  %6396 = vst [vmem:[#allocation46_spill] sm:$0xff] %v5117_v39 }
 0x4b8   :  { %1985 = vmatpush.msra.mxu2 %v5064_v26  ;;  %2270 = vmatpush.msrb.mxu0 %v6377_v15  ;;  %v5120_v15 = vld [vmem:[#allocation10 + $0x140] sm:$0xff] }
 0x4b9   :  { %2203 = vmatpush.msra.mxu3 %v5067_v43  ;;  %6397 = vst [vmem:[#allocation56_spill] sm:$0xff] %v5120_v15  ;;  %v6416_v43 = vld [vmem:[#allocation102_spill] sm:$0xff] }
 0x4ba   :  { %1986 = vmatpush.msra.mxu2 %v5071_v23  ;;  %2271 = vmatpush.msrb.mxu0 %v6380_v6  ;;  %v5123_v6 = vld [vmem:[#allocation10 + $0x128] sm:$0xff] }
 0x4bb   :  { %2204 = vmatpush.msra.mxu3 %v5074_v59  ;;  %6398 = vst [vmem:[#allocation49_spill] sm:$0xff] %v5123_v6 }
 0x4bc   :  { %1987 = vmatpush.msra.mxu2 %v5078_v33  ;;  %2272 = vmatpush.msrb.mxu0 %v6383_v62  ;;  %v5126_v62 = vld [vmem:[#allocation10 + $0x110] sm:$0xff] }
 0x4bd   :  { %2205 = vmatpush.msra.mxu3 %v5081_v18  ;;  %6399 = vst [vmem:[#allocation65_spill] sm:$0xff] %v5126_v62 }
 0x4be   :  { %1988 = vmatpush.msra.mxu2 %v5085_v54  ;;  %2273 = vmatpush.msrb.mxu0 %v6386_v37  ;;  %v5129_v37 = vld [vmem:[#allocation10 + $0xf8] sm:$0xff] }
 0x4bf   :  { %2206 = vmatpush.msra.mxu3 %v5088_v38  ;;  %6400 = vst [vmem:[#allocation52_spill] sm:$0xff] %v5129_v37  ;;  %v6414_v54 = vld [vmem:[#allocation96_spill] sm:$0xff] }
 0x4c0   :  { %1989 = vmatpush.msra.mxu2 %v5092_v24  ;;  %2274 = vmatpush.msrb.mxu0 %v6388_v3  ;;  %v5132_v3 = vld [vmem:[#allocation10 + $0xe0] sm:$0xff]  ;;  %v6413_v24 = vld [vmem:[#allocation72_spill] sm:$0xff] }
 0x4c1   :  { %6401 = vst [vmem:[#allocation66_spill] sm:$0xff] %v5132_v3 }
 0x4c2   :  { %1990 = vmatpush.msra.mxu2 %v5096_v32 }
 0x4c4   :  { %1991 = vmatpush.msra.mxu2 %v5099_v25  ;;  %v6412_v25 = vld [vmem:[#allocation91_spill] sm:$0xff] }
 0x4c6   :  { %1992 = vmatpush.msra.mxu2 %v5102_v12 }
 0x4c8   :  { %1993 = vmatpush.msra.mxu2 %v5105_v17 }
 0x4ca   :  { %1994 = vmatpush.msra.mxu2 %v5108_v30 }
 0x4cc   :  { %1995 = vmatpush.msra.mxu2 %v5111_v2  ;;  %v6411_v2 = vld [vmem:[#allocation70_spill] sm:$0xff] }
 0x4ce   :  { %2171 = vmatpush.msrb.mxu2 %v5114_v50 }
 0x4d0   :  { %2172 = vmatpush.msrb.mxu2 %v5117_v39  ;;  %v5135_v39 = vld [vmem:[#allocation10 + $0xc8] sm:$0xff] }
 0x4d1   :  { %6402 = vst [vmem:[#allocation55_spill] sm:$0xff] %v5135_v39 }
 0x4d2   :  { %2173 = vmatpush.msrb.mxu2 %v5120_v15  ;;  %v5138_v15 = vld [vmem:[#allocation10 + $0xb0] sm:$0xff] }
 0x4d3   :  { %6403 = vst [vmem:[#allocation67_spill] sm:$0xff] %v5138_v15 }
 0x4d4   :  { %2174 = vmatpush.msrb.mxu2 %v5123_v6  ;;  %v5141_v6 = vld [vmem:[#allocation10 + $0x98] sm:$0xff] }
 0x4d5   :  { %6404 = vst [vmem:[#allocation58_spill] sm:$0xff] %v5141_v6 }
 0x4d6   :  { %2175 = vmatpush.msrb.mxu2 %v5126_v62  ;;  %v5144_v62 = vld [vmem:[#allocation10 + $0x80] sm:$0xff] }
 0x4d7   :  { %6405 = vst [vmem:[#allocation68_spill] sm:$0xff] %v5144_v62 }
 0x4d8   :  { %2176 = vmatpush.msrb.mxu2 %v5129_v37  ;;  %v5147_v37 = vld [vmem:[#allocation10 + $0x68] sm:$0xff] }
 0x4d9   :  { %6406 = vst [vmem:[#allocation59_spill] sm:$0xff] %v5147_v37 }
 0x4da   :  { %2177 = vmatpush.msrb.mxu2 %v5132_v3  ;;  %v5150_v3 = vld [vmem:[#allocation10 + $0x50] sm:$0xff] }
 0x4db   :  { %6407 = vst [vmem:[#allocation69_spill] sm:$0xff] %v5150_v3 }
 0x4dc   :  { %2178 = vmatpush.msrb.mxu2 %v5135_v39  ;;  %v5153_v39 = vld [vmem:[#allocation10 + $0x38] sm:$0xff] }
 0x4dd   :  { %6408 = vst [vmem:[#allocation60_spill] sm:$0xff] %v5153_v39 }
 0x4de   :  { %2179 = vmatpush.msrb.mxu2 %v5138_v15  ;;  %v5156_v15 = vld [vmem:[#allocation10 + $0x20] sm:$0xff] }
 0x4df   :  { %6409 = vst [vmem:[#allocation71_spill] sm:$0xff] %v5156_v15 }
 0x4e0   :  { %2180 = vmatpush.msrb.mxu2 %v5141_v6  ;;  %v5159_v6 = vld [vmem:[#allocation10 + $0x8] sm:$0xff] }
 0x4e1   :  { %6410 = vst [vmem:[#allocation61_spill] sm:$0xff] %v5159_v6 }
 0x4e2   :  { %2181 = vmatpush.msrb.mxu2 %v5144_v62 }
 0x4e4   :  { %2182 = vmatpush.msrb.mxu2 %v5147_v37 }
 0x4e6   :  { %2183 = vmatpush.msrb.mxu2 %v5150_v3 }
 0x4e8   :  { %2184 = vmatpush.msrb.mxu2 %v5153_v39 }
 0x4ea   :  { %2185 = vmatpush.msrb.mxu2 %v5156_v15 }
 0x4ec   :  { %2186 = vmatpush.msrb.mxu2 %v5159_v6 }
 0x500   :  { %v1678_v62 = vpop.f32.mrf.mxu2  ;;  %v1698_v30 = vpop.f32.mrf.mxu3 }
 0x501   :  { %v1679_v37 = vadd.f32 %v1678_v62, %v6411_v2  ;;  %v1699_v38 = vadd.f32 %v1698_v30, %v6413_v24 }
 0x503   :  { %v2783_v17 = vmul.f32 -1.442695, %v1679_v37  ;;  %v2784_v6 = vmul.f32 -1.442695, %v1699_v38  ;;  %v6415_v37 = vld [vmem:[#allocation101_spill] sm:$0xff] }
 0x505   :  { %2914 = vpow2.f32 %v2783_v17 }
 0x508   :  { %v1809_v50 = vpop.f32.mrf.mxu2  ;;  %v1889_v12 = vpop.f32.mrf.mxu3 }
 0x509   :  { %v1890_v15 = vadd.f32 %v1889_v12, %v6414_v54  ;;  %v1810_v2 = vadd.f32 %v1809_v50, %v6415_v37 }
 0x50b   :  { %v2915_v39 = vpop.eup %2914 }
 0x50c   :  { %v1744_v18 = vadd.f32 1.0, %v2915_v39 }
 0x50e   :  { %2916 = vrcp.f32 %v1744_v18  ;;  %vm1750_vm14 = vweird.f32 %v1744_v18 }
 0x50f   :  { %2918 = vpow2.f32 %v2784_v6 }
 0x510   :  { %v1829_v3 = vpop.f32.mrf.mxu2 }
 0x511   :  { %v1830_v32 = vadd.f32 %v1829_v3, %v6412_v25 }
 0x513   :  { %v1932_v33 = vadd.f32 %v1890_v15, %v1830_v32 }
 0x514   :  { %v2917_v62 = vpop.eup %2916 }
 0x515   :  { %v2789_v23 = vmul.f32 -1.442695, %v1932_v33  ;;  %v2919_v25 = vpop.eup %2918  ;;  %v1746_v26 = vmul.f32 %v2917_v62, %v1744_v18  ;;  %vm1751_vm13 = vweird.f32 %v2917_v62 }
 0x516   :  { %v5170_v12 = vadd.f32 1.0, %v2919_v25  ;;  %vm1752_vm15 = vmor %vm1750_vm14, %vm1751_vm13 }
 0x517   :  { %2920 = vpow2.f32 %v2789_v23  ;;  %v1747_v39 = vsub.f32 1.0, %v1746_v26  ;;  %v1718_v26 = vpop.f32.mrf.mxu0 }
 0x518   :  { %v5166_v59 = vpop.f32.mrf.mxu2  ;;  %vm1769_vm6 = vweird.f32 %v5170_v12 }
 0x519   :  { %v1748_v23 = vmul.f32 %v2917_v62, %v1747_v39 }
 0x51b   :  { %v1749_v6 = vadd.f32 %v2917_v62, %v1748_v23 }
 0x51d   :  { %v2921_v24 = vpop.eup %2920  ;;  %v1753_v39 = vsel %vm1752_vm15, %v2917_v62, %v1749_v6 }
 0x51e   :  { %v5172_v15 = vadd.f32 1.0, %v2921_v24  ;;  %v1754_v24 = vand.u32 2147483647, %v1744_v18 }
 0x51f   :  { %v1909_v62 = vpop.f32.mrf.mxu0 }
 0x520   :  { %vm1755_vm1 = vcmp.eq.f32.partialorder %v1754_v24, 8.507059e+37  ;;  %vm1942_vm10 = vweird.f32 %v5172_v15 }
 0x530   :  { %v1869_v17 = vpop.f32.mrf.mxu2 }
 0x531   :  { %v1870_v3 = vadd.f32 %v1869_v17, %v6416_v43  ;;  %v1756_v17 = vand.u32 2147483648, %v1744_v18 }
 0x533   :  { %v1912_v30 = vadd.f32 %v1870_v3, %v1810_v2  ;;  %v1738_v2 = vpop.f32.mrf.mxu1 }
 0x535   :  { %v2788_v32 = vmul.f32 -1.442695, %v1912_v30  ;;  %v6417_v30 = vld [vmem:[#allocation74_spill] sm:$0xff] }
 0x537   :  { %2922 = vpow2.f32 %v2788_v32  ;;  %v1739_v32 = vadd.f32 %v1738_v2, %v6417_v30  ;;  %v1719_v2 = vadd.f32 %v1718_v26, %v4112_v10  ;;  %v5245_v26 = vld [vmem:[#allocation13 + $0x198] sm:$0xff] }
 0x538   :  { %2924 = vrcp.f32 %v5170_v12 }
 0x539   :  { %2926 = vrcp.f32 %v5172_v15  ;;  %v1779_v63 = vadd.f32 %v4872_v14, %v1739_v32  ;;  %v1910_v32 = vadd.f32 %v1909_v62, %v6094_v28 }
 0x53d   :  { %v2923_v33 = vpop.eup %2922 }
 0x53e   :  { %v1916_v38 = vadd.f32 1.0, %v2923_v33  ;;  %v5176_v50 = vpop.eup %2924  ;;  %v1757_v33 = vor.u32 1.1754944e-38, %v1756_v17 }
 0x53f   :  { %v5178_v25 = vpop.eup %2926  ;;  %v1765_v3 = vmul.f32 %v5176_v50, %v5170_v12  ;;  %vm1770_vm4 = vweird.f32 %v5176_v50 }
 0x540   :  { %2928 = vrcp.f32 %v1916_v38  ;;  %v1938_v23 = vmul.f32 %v5178_v25, %v5172_v15  ;;  %v1758_v37 = vsel %vm1755_vm1, %v1757_v33, %v1753_v39  ;;  %v1928_v9 = vand.u32 2147483648, %v1916_v38  ;;  %vm5197_vm9 = vmor %vm1769_vm6, %vm1770_vm4 }
 0x541   :  { %v1766_v54 = vsub.f32 1.0, %v1765_v3  ;;  %v1780_v18 = vmul.f32 %v1779_v63, %v1758_v37  ;;  %v1926_v17 = vand.u32 2147483647, %v1916_v38  ;;  %vm1922_vm3 = vweird.f32 %v1916_v38 }
 0x542   :  { %v1939_v52 = vsub.f32 1.0, %v1938_v23  ;;  %vm1943_vm8 = vweird.f32 %v5178_v25 }
 0x543   :  { %v1767_v19 = vmul.f32 %v5176_v50, %v1766_v54  ;;  %v1781_v3 = vadd.f32 %v1780_v18, %v1719_v2  ;;  %v1775_v54 = vand.u32 2147483648, %v5170_v12  ;;  %vm1927_vm7 = vcmp.eq.f32.partialorder %v1926_v17, 8.507059e+37  ;;  %vm1944_vm11 = vmor %vm1942_vm10, %vm1943_vm8 }
 0x544   :  { %v1940_v24 = vmul.f32 %v5178_v25, %v1939_v52 }
 0x545   :  { %v1768_v63 = vadd.f32 %v5176_v50, %v1767_v19  ;;  %v1850_v19 = vadd.f32 %v5166_v59, %v3928_v27  ;;  %2930 = vtanh.f32 %v1781_v3 }
 0x546   :  { %v2929_v43 = vpop.eup %2928  ;;  %v1941_v37 = vadd.f32 %v5178_v25, %v1940_v24 }
 0x547   :  { %v1918_v57 = vmul.f32 %v2929_v43, %v1916_v38  ;;  %vm1923_vm2 = vweird.f32 %v2929_v43  ;;  %v1773_v38 = vand.u32 2147483647, %v5170_v12  ;;  %v1776_v12 = vor.u32 1.1754944e-38, %v1775_v54  ;;  %v5219_v54 = vld [vmem:[#allocation13 + $0x1f0] sm:$0xff] }
 0x548   :  { %vm1924_vm5 = vmor %vm1922_vm3, %vm1923_vm2  ;;  %v1945_v23 = vsel %vm1944_vm11, %v5178_v25, %v1941_v37  ;;  %v5229_v37 = vld [vmem:[#allocation13 + $0x1d8] sm:$0xff] }
 0x549   :  { %v1919_v56 = vsub.f32 1.0, %v1918_v57  ;;  %v1929_v57 = vor.u32 1.1754944e-38, %v1928_v9  ;;  %v1948_v9 = vand.u32 2147483648, %v5172_v15  ;;  %vm1774_vm12 = vcmp.eq.f32.partialorder %v1773_v38, 8.507059e+37  ;;  %v5235_v38 = vld [vmem:[#allocation13 + $0x1b8] sm:$0xff] }
 0x54b   :  { %v1920_v6 = vmul.f32 %v2929_v43, %v1919_v56  ;;  %v1949_v18 = vor.u32 1.1754944e-38, %v1948_v9  ;;  %v2931_v59 = vpop.eup %2930  ;;  %v5248_v9 = vld [vmem:[#allocation13 + $0x170] sm:$0xff] }
 0x54d   :  { %v1921_v30 = vadd.f32 %v2929_v43, %v1920_v6 }
 0x54f   :  { %v1925_v56 = vsel %vm1924_vm5, %v2929_v43, %v1921_v30  ;;  %v1946_v43 = vand.u32 2147483647, %v5172_v15  ;;  %v1772_v30 = vsel %vm5197_vm9, %v5176_v50, %v1768_v63 }
 0x550   :  { %v1930_v52 = vsel %vm1927_vm7, %v1929_v57, %v1925_v56  ;;  %v1777_v2 = vsel %vm1774_vm12, %v1776_v12, %v1772_v30  ;;  %v2087_v56 = vld [vmem:[#allocation4 + $0xc] sm:$0x3]  ;;  %v5261_v30 = vld [vmem:[#allocation13 + $0x130] sm:$0xff] }
 0x551   :  { %v1952_v39 = vmul.f32 %v1930_v52, %v1910_v32  ;;  %vm1947_vm13 = vcmp.eq.f32.partialorder %v1946_v43, 8.507059e+37  ;;  %v1783_v6 = vsub.f32 1.0, %v1777_v2  ;;  %v1785_v50 = vmul.f32 %v1777_v2, %v4901_v16  ;;  %v5226_v16 = vld [vmem:[#allocation13 + $0x1d0] sm:$0xff]  ;;  %v5257_v43 = vld [vmem:[#allocation13 + $0x158] sm:$0xff] }
 0x552   :  { %v1950_v62 = vsel %vm1947_vm13, %v1949_v18, %v1945_v23  ;;  %v5232_v52 = vld [vmem:[#allocation13 + $0x1b0] sm:$0xff]  ;;  %v5265_v12 = vld [vmem:[#allocation13 + $0x138] sm:$0xff] }
 0x553   :  { %v1953_v33 = vadd.f32 %v1952_v39, %v1850_v19  ;;  %v1955_v17 = vsub.f32 1.0, %v1950_v62  ;;  %v1784_v24 = vmul.f32 %v2931_v59, %v1783_v6  ;;  %v1957_v3 = vmul.f32 %v1950_v62, %v4903_v41  ;;  %v5222_v41 = vld [vmem:[#allocation13 + $0x1f8] sm:$0xff]  ;;  %v5254_v39 = vld [vmem:[#allocation13 + $0x150] sm:$0xff] }
 0x554   :  { %v5251_v19 = vld [vmem:[#allocation13 + $0x178] sm:$0xff]  ;;  %v5275_v18 = vld [vmem:[#allocation13 + $0xf0] sm:$0xff] }
 0x555   :  { %2932 = vtanh.f32 %v1953_v33  ;;  %v5212_v57 = vadd.f32 %v1785_v50, %v1784_v24  ;;  %v5268_v33 = vld [vmem:[#allocation13 + $0x110] sm:$0xff]  ;;  %v5272_v23 = vld [vmem:[#allocation13 + $0x118] sm:$0xff] }
 0x556   :  { %v5279_v2 = vld [vmem:[#allocation13 + $0xf8] sm:$0xff]  ;;  %v5282_v59 = vld [vmem:[#allocation13 + $0xd0] sm:$0xff] }
 0x557   :  { %v5286_v62 = vld [vmem:[#allocation13 + $0xd8] sm:$0xff]  ;;  %v5290_v6 = vld [vmem:[#allocation13 + $0xb0] sm:$0xff] }
 0x558   :  { %v5297_v24 = vld [vmem:[#allocation13 + $0x90] sm:$0xff]  ;;  %v5308_v50 = vld [vmem:[#allocation13 + $0x78] sm:$0xff] }
 0x559   :  { %6422 = vst [vmem:[#allocation75_spill] sm:$0xff] %v5308_v50 }
 0x55b   :  { %v2933_v15 = vpop.eup %2932 }
 0x55c   :  { %v1956_v32 = vmul.f32 %v2933_v15, %v1955_v17  ;;  %v5294_v17 = vld [vmem:[#allocation13 + $0xb8] sm:$0xff] }
 0x55d   :  { %v5301_v15 = vld [vmem:[#allocation13 + $0x98] sm:$0xff] }
 0x55e   :  { %v5214_v63 = vadd.f32 %v1957_v3, %v1956_v32  ;;  %6420 = vst [vmem:[#allocation73_spill] sm:$0xff] %v5301_v15  ;;  %v5304_v3 = vld [vmem:[#allocation13 + $0x70] sm:$0xff] }
 0x55f   :  { %6421 = vst [vmem:[#allocation62_spill] sm:$0xff] %v5304_v3  ;;  %v5311_v32 = vld [vmem:[#allocation13 + $0x50] sm:$0xff] }
 0x560   :  { %v1959_v25 = vadd.f32 %v5214_v63, %v5212_v57  ;;  %6423 = vst [vmem:[#allocation63_spill] sm:$0xff] %v5311_v32 }
 0x562   :  { %1976 = vmatmul.f32.vlgmr.msrb.gmra.mxu1 %v1959_v25  ;;  %1996 = vmatmul.f32.vlgmr.msra.gmra.mxu2 %v1959_v25 }
 0x563   :  { %2016 = vmatmul.f32.vlgmr.msrb.gmra.mxu3 %v1959_v25  ;;  %2036 = vmatmul.f32.vlgmr.msra.gmra.mxu0 %v1959_v25  ;;  %v5315_v25 = vld [vmem:[#allocation13 + $0x58] sm:$0xff] }
 0x564   :  { %2126 = vmatpush.msrb.mxu1 %v4907_v21  ;;  %2299 = vmatpush.msra.mxu2 %v5219_v54  ;;  %6424 = vst [vmem:[#allocation77_spill] sm:$0xff] %v5315_v25 }
 0x565   :  { %2319 = vmatpush.msrb.mxu3 %v5222_v41  ;;  %2405 = vmatpush.msra.mxu0 %v4912_v11  ;;  %v5242_v11 = vld [vmem:[#allocation13 + $0x190] sm:$0xff] }
 0x566   :  { %2300 = vmatpush.msra.mxu2 %v5226_v16 }
 0x567   :  { %2320 = vmatpush.msrb.mxu3 %v5229_v37 }
 0x568   :  { %2301 = vmatpush.msra.mxu2 %v5232_v52 }
 0x569   :  { %2321 = vmatpush.msrb.mxu3 %v5235_v38 }
 0x56a   :  { %2792 = vmatmul.msk.f32.vlgmr.msra.gmra.mxu1 %vm181_vm0, %v2087_v56  ;;  %2187 = vmatmul.f32.vlgmr.msrb.gmra.mxu2 %v5214_v63 }
 0x56b   :  { %2207 = vmatmul.f32.vlgmr.msra.gmra.mxu3 %v5214_v63  ;;  %2146 = vmatpush.msra.mxu1 %v4922_v49 }
 0x56c   :  { %2302 = vmatpush.msra.mxu2 %v5242_v11  ;;  %2322 = vmatpush.msrb.mxu3 %v5245_v26 }
 0x56e   :  { %2303 = vmatpush.msra.mxu2 %v5248_v9  ;;  %2323 = vmatpush.msrb.mxu3 %v5251_v19 }
 0x570   :  { %2304 = vmatpush.msra.mxu2 %v5254_v39  ;;  %2324 = vmatpush.msrb.mxu3 %v5257_v43 }
 0x572   :  { %2793 = vmatmul.msk.f32.vlgmr.msrb.gmra.mxu1 %vm181_vm0, %v2087_v56  ;;  %2305 = vmatpush.msra.mxu2 %v5261_v30 }
 0x573   :  { %2151 = vmatpush.msrb.mxu1 %v4933_v44  ;;  %2325 = vmatpush.msrb.mxu3 %v5265_v12 }
 0x574   :  { %2306 = vmatpush.msra.mxu2 %v5268_v33 }
 0x575   :  { %2152 = vmatpush.msrb.mxu1 %v4938_v47  ;;  %2326 = vmatpush.msrb.mxu3 %v5272_v23 }
 0x576   :  { %2307 = vmatpush.msra.mxu2 %v5275_v18 }
 0x577   :  { %2153 = vmatpush.msrb.mxu1 %v4943_v36  ;;  %2327 = vmatpush.msrb.mxu3 %v5279_v2 }
 0x578   :  { %2308 = vmatpush.msra.mxu2 %v5282_v59 }
 0x579   :  { %2154 = vmatpush.msrb.mxu1 %v4948_v29  ;;  %2328 = vmatpush.msrb.mxu3 %v5286_v62 }
 0x57a   :  { %2794 = vmatmul.msk.f32.vlgmr.msra.gmra.mxu1 %vm181_vm0, %v2087_v56  ;;  %2309 = vmatpush.msra.mxu2 %v5290_v6  ;;  %v5318_v56 = vld [vmem:[#allocation13 + $0x30] sm:$0xff] }
 0x57b   :  { %2155 = vmatpush.msrb.mxu1 %v4954_v35  ;;  %2329 = vmatpush.msrb.mxu3 %v5294_v17  ;;  %6425 = vst [vmem:[#allocation64_spill] sm:$0xff] %v5318_v56 }
 0x57c   :  { %2310 = vmatpush.msra.mxu2 %v5297_v24 }
 0x57d   :  { %2156 = vmatpush.msrb.mxu1 %v4959_v0  ;;  %2330 = vmatpush.msrb.mxu3 %v5301_v15 }
 0x57e   :  { %2311 = vmatpush.msra.mxu2 %v5304_v3 }
 0x57f   :  { %2157 = vmatpush.msrb.mxu1 %v4964_v42  ;;  %2331 = vmatpush.msrb.mxu3 %v5308_v50  ;;  %v5322_v42 = vld [vmem:[#allocation13 + $0x38] sm:$0xff]  ;;  %v5325_v50 = vld [vmem:[#allocation13 + $0x10] sm:$0xff] }
 0x580   :  { %2312 = vmatpush.msra.mxu2 %v5311_v32  ;;  %6426 = vst [vmem:[#allocation79_spill] sm:$0xff] %v5322_v42 }
 0x581   :  { %2158 = vmatpush.msrb.mxu1 %v4969_v20  ;;  %2332 = vmatpush.msrb.mxu3 %v5315_v25  ;;  %6427 = vst [vmem:[#allocation81_spill] sm:$0xff] %v5325_v50  ;;  %v5330_v20 = vld [vmem:[#allocation13 + $0x18] sm:$0xff] }
 0x582   :  { %2313 = vmatpush.msra.mxu2 %v5318_v56  ;;  %6428 = vst [vmem:[#allocation83_spill] sm:$0xff] %v5330_v20 }
 0x583   :  { %2159 = vmatpush.msrb.mxu1 %v4974_v5  ;;  %2333 = vmatpush.msrb.mxu3 %v5322_v42  ;;  %v3199_v5 = vld [vmem:[#allocation13 + $0x1e0] sm:$0xff] }
 0x584   :  { %2314 = vmatpush.msra.mxu2 %v5325_v50  ;;  %v3200_v42 = vld [vmem:[#allocation13 + $0x1c0] sm:$0xff] }
 0x585   :  { %2160 = vmatpush.msrb.mxu1 %v4979_v53  ;;  %2334 = vmatpush.msrb.mxu3 %v5330_v20  ;;  %v6471_v53 = vld [vmem:[#allocation102_spill] sm:$0xff] }
 0x586   :  { %2490 = vmatpush.msrb.mxu2 %v4982_v1  ;;  %v3201_v1 = vld [vmem:[#allocation13 + $0x1a0] sm:$0xff] }
 0x587   :  { %2161 = vmatpush.msrb.mxu1 %v4986_v45  ;;  %2558 = vmatpush.msra.mxu3 %v3199_v5  ;;  %v3202_v45 = vld [vmem:[#allocation13 + $0x180] sm:$0xff] }
 0x588   :  { %2491 = vmatpush.msrb.mxu2 %v4989_v48  ;;  %v3203_v5 = vld [vmem:[#allocation13 + $0x160] sm:$0xff] }
 0x589   :  { %2162 = vmatpush.msrb.mxu1 %v4993_v58  ;;  %2559 = vmatpush.msra.mxu3 %v3200_v42  ;;  %v3204_v42 = vld [vmem:[#allocation13 + $0x140] sm:$0xff] }
 0x58a   :  { %2492 = vmatpush.msrb.mxu2 %v4996_v31  ;;  %v3205_v48 = vld [vmem:[#allocation13 + $0x120] sm:$0xff] }
 0x58b   :  { %2163 = vmatpush.msrb.mxu1 %v5000_v13  ;;  %2560 = vmatpush.msra.mxu3 %v3201_v1  ;;  %v6429_v31 = vld [vmem:[#allocation57_spill] sm:$0xff] }
 0x58c   :  { %2493 = vmatpush.msrb.mxu2 %v5003_v46  ;;  %v6430_v46 = vld [vmem:[#allocation26_spill] sm:$0xff] }
 0x58d   :  { %2164 = vmatpush.msrb.mxu1 %v5007_v60  ;;  %2561 = vmatpush.msra.mxu3 %v3202_v45  ;;  %v3206_v45 = vld [vmem:[#allocation13 + $0x100] sm:$0xff]  ;;  %v6469_v60 = vld [vmem:[#allocation96_spill] sm:$0xff] }
 0x58e   :  { %2494 = vmatpush.msrb.mxu2 %v5010_v40  ;;  %v3207_v40 = vld [vmem:[#allocation13 + $0xe0] sm:$0xff] }
 0x58f   :  { %2165 = vmatpush.msrb.mxu1 %v5014_v22  ;;  %2562 = vmatpush.msra.mxu3 %v3203_v5  ;;  %v3208_v1 = vld [vmem:[#allocation13 + $0xc0] sm:$0xff]  ;;  %v6468_v22 = vld [vmem:[#allocation72_spill] sm:$0xff] }
 0x590   :  { %2495 = vmatpush.msrb.mxu2 %v5017_v8  ;;  %v6431_v8 = vld [vmem:[#allocation80_spill] sm:$0xff]  ;;  %v6434_v5 = vld [vmem:[#allocation82_spill] sm:$0xff] }
 0x591   :  { %2166 = vmatpush.msrb.mxu1 %v5021_v34  ;;  %2563 = vmatpush.msra.mxu3 %v3204_v42  ;;  %v3209_v42 = vld [vmem:[#allocation13 + $0xa0] sm:$0xff] }
 0x592   :  { %2496 = vmatpush.msrb.mxu2 %v5024_v55  ;;  %2167 = vmatmul.f32.vlgmr.msrb.gmra.mxu1 %v5214_v63  ;;  %v6432_v55 = vld [vmem:[#allocation114_spill] sm:$0xff] }
 0x593   :  { %2279 = vmatpush.msra.mxu1 %v5029_v4  ;;  %2564 = vmatpush.msra.mxu3 %v3205_v48  ;;  %v6436_v48 = vld [vmem:[#allocation84_spill] sm:$0xff] }
 0x594   :  { %2497 = vmatpush.msrb.mxu2 %v5032_v51  ;;  %v6433_v51 = vld [vmem:[#allocation28_spill] sm:$0xff] }
 0x595   :  { %2280 = vmatpush.msra.mxu1 %v5036_v61  ;;  %2565 = vmatpush.msra.mxu3 %v3206_v45  ;;  %v3210_v45 = vld [vmem:[#allocation13 + $0x80] sm:$0xff] }
 0x596   :  { %2498 = vmatpush.msrb.mxu2 %v5039_v7  ;;  %v6435_v7 = vld [vmem:[#allocation30_spill] sm:$0xff] }
 0x597   :  { %2281 = vmatpush.msra.mxu1 %v6429_v31  ;;  %2566 = vmatpush.msra.mxu3 %v3207_v40  ;;  %v6438_v40 = vld [vmem:[#allocation87_spill] sm:$0xff]  ;;  %v6466_v31 = vld [vmem:[#allocation70_spill] sm:$0xff] }
 0x598   :  { %2499 = vmatpush.msrb.mxu2 %v6430_v46  ;;  %v6437_v46 = vld [vmem:[#allocation32_spill] sm:$0xff] }
 0x599   :  { %2282 = vmatpush.msra.mxu1 %v6431_v8  ;;  %2567 = vmatpush.msra.mxu3 %v3208_v1  ;;  %v3211_v8 = vld [vmem:[#allocation13 + $0x60] sm:$0xff] }
 0x59a   :  { %2500 = vmatpush.msrb.mxu2 %v6432_v55  ;;  %v6439_v55 = vld [vmem:[#allocation34_spill] sm:$0xff] }
 0x59b   :  { %2283 = vmatpush.msra.mxu1 %v6433_v51  ;;  %2568 = vmatpush.msra.mxu3 %v3209_v42  ;;  %v6440_v1 = vld [vmem:[#allocation90_spill] sm:$0xff] }
 0x59c   :  { %2501 = vmatpush.msrb.mxu2 %v6434_v5  ;;  %v3212_v51 = vld [vmem:[#allocation13 + $0x40] sm:$0xff]  ;;  %v6441_v5 = vld [vmem:[#allocation36_spill] sm:$0xff] }
 0x59d   :  { %2284 = vmatpush.msra.mxu1 %v6435_v7  ;;  %2569 = vmatpush.msra.mxu3 %v3210_v45  ;;  %v6442_v42 = vld [vmem:[#allocation94_spill] sm:$0xff] }
 0x59e   :  { %2502 = vmatpush.msrb.mxu2 %v6436_v48  ;;  %v3213_v7 = vld [vmem:[#allocation13 + $0x20] sm:$0xff] }
 0x59f   :  { %2285 = vmatpush.msra.mxu1 %v6437_v46  ;;  %2570 = vmatpush.msra.mxu3 %v3211_v8  ;;  %v6443_v48 = vld [vmem:[#allocation38_spill] sm:$0xff] }
 0x5a0   :  { %2503 = vmatpush.msrb.mxu2 %v6438_v40  ;;  %v3214_v45 = vld [vmem:[#allocation13] sm:$0xff]  ;;  %v6445_v40 = vld [vmem:[#allocation40_spill] sm:$0xff] }
 0x5a1   :  { %2286 = vmatpush.msra.mxu1 %v6439_v55  ;;  %2571 = vmatpush.msra.mxu3 %v3212_v51  ;;  %v6444_v46 = vld [vmem:[#allocation98_spill] sm:$0xff]  ;;  %v6447_v55 = vld [vmem:[#allocation44_spill] sm:$0xff] }
 0x5a2   :  { %2504 = vmatpush.msrb.mxu2 %v6440_v1  ;;  %v6446_v8 = vld [vmem:[#allocation42_spill] sm:$0xff]  ;;  %v6448_v1 = vld [vmem:[#allocation47_spill] sm:$0xff] }
 0x5a3   :  { %2287 = vmatpush.msra.mxu1 %v6441_v5  ;;  %2572 = vmatpush.msra.mxu3 %v3213_v7  ;;  %v6449_v51 = vld [vmem:[#allocation50_spill] sm:$0xff]  ;;  %v6450_v5 = vld [vmem:[#allocation53_spill] sm:$0xff]  ;;  %v6452_v7 = vld [vmem:[#allocation56_spill] sm:$0xff] }
 0x5a4   :  { %2505 = vmatpush.msrb.mxu2 %v6442_v42  ;;  %v6451_v42 = vld [vmem:[#allocation46_spill] sm:$0xff] }
 0x5a5   :  { %2288 = vmatpush.msra.mxu1 %v6443_v48  ;;  %2573 = vmatpush.msra.mxu3 %v3214_v45  ;;  %v6453_v48 = vld [vmem:[#allocation49_spill] sm:$0xff] }
 0x5a6   :  { %v6454_v45 = vld [vmem:[#allocation65_spill] sm:$0xff] }
 0x5a7   :  { %2289 = vmatpush.msra.mxu1 %v6444_v46  ;;  %v6455_v46 = vld [vmem:[#allocation52_spill] sm:$0xff] }
 0x5a9   :  { %2290 = vmatpush.msra.mxu1 %v6445_v40  ;;  %v6456_v40 = vld [vmem:[#allocation66_spill] sm:$0xff] }
 0x5ab   :  { %2291 = vmatpush.msra.mxu1 %v6446_v8  ;;  %v6457_v8 = vld [vmem:[#allocation55_spill] sm:$0xff] }
 0x5ad   :  { %2292 = vmatpush.msra.mxu1 %v6447_v55  ;;  %v6458_v55 = vld [vmem:[#allocation67_spill] sm:$0xff] }
 0x5af   :  { %2293 = vmatpush.msra.mxu1 %v6448_v1  ;;  %v6459_v1 = vld [vmem:[#allocation58_spill] sm:$0xff] }
 0x5b1   :  { %2294 = vmatpush.msra.mxu1 %v6449_v51  ;;  %v6460_v51 = vld [vmem:[#allocation68_spill] sm:$0xff] }
 0x5b3   :  { %2470 = vmatpush.msrb.mxu1 %v6450_v5  ;;  %v6461_v5 = vld [vmem:[#allocation59_spill] sm:$0xff] }
 0x5b5   :  { %2471 = vmatpush.msrb.mxu1 %v6451_v42  ;;  %v6462_v42 = vld [vmem:[#allocation69_spill] sm:$0xff] }
 0x5b7   :  { %2472 = vmatpush.msrb.mxu1 %v6452_v7  ;;  %v6463_v7 = vld [vmem:[#allocation60_spill] sm:$0xff] }
 0x5b9   :  { %2473 = vmatpush.msrb.mxu1 %v6453_v48  ;;  %v6464_v48 = vld [vmem:[#allocation71_spill] sm:$0xff] }
 0x5bb   :  { %2474 = vmatpush.msrb.mxu1 %v6454_v45  ;;  %v6465_v45 = vld [vmem:[#allocation61_spill] sm:$0xff] }
 0x5bd   :  { %2475 = vmatpush.msrb.mxu1 %v6455_v46 }
 0x5bf   :  { %2476 = vmatpush.msrb.mxu1 %v6456_v40 }
 0x5c1   :  { %2477 = vmatpush.msrb.mxu1 %v6457_v8 }
 0x5c3   :  { %2478 = vmatpush.msrb.mxu1 %v6458_v55 }
 0x5c5   :  { %2479 = vmatpush.msrb.mxu1 %v6459_v1 }
 0x5c7   :  { %2480 = vmatpush.msrb.mxu1 %v6460_v51  ;;  %v6467_v51 = vld [vmem:[#allocation91_spill] sm:$0xff] }
 0x5c9   :  { %2481 = vmatpush.msrb.mxu1 %v6461_v5 }
 0x5cb   :  { %2482 = vmatpush.msrb.mxu1 %v6462_v42 }
 0x5cd   :  { %2483 = vmatpush.msrb.mxu1 %v6463_v7 }
 0x5cf   :  { %2484 = vmatpush.msrb.mxu1 %v6464_v48 }
 0x5d1   :  { %2485 = vmatpush.msrb.mxu1 %v6465_v45 }
 0x5df   :  { %v1977_v46 = vpop.f32.mrf.mxu1 }
 0x5e0   :  { %v1978_v8 = vadd.f32 %v1977_v46, %v6466_v31 }
 0x5e2   :  { %v2790_v55 = vmul.f32 -1.442695, %v1978_v8 }
 0x5e4   :  { %2934 = vpow2.f32 %v2790_v55  ;;  %v6470_v55 = vld [vmem:[#allocation101_spill] sm:$0xff] }
 0x5e5   :  { %v1997_v61 = vpop.f32.mrf.mxu2 }
 0x5e6   :  { %v1998_v42 = vadd.f32 %v1997_v61, %v6468_v22 }
 0x5e7   :  { %v2108_v40 = vpop.f32.mrf.mxu1 }
 0x5e8   :  { %v2791_v45 = vmul.f32 -1.442695, %v1998_v42  ;;  %v2109_v31 = vadd.f32 %v2108_v40, %v6470_v55 }
 0x5ea   :  { %v2935_v5 = vpop.eup %2934 }
 0x5eb   :  { %v2043_v13 = vadd.f32 1.0, %v2935_v5 }
 0x5ed   :  { %v2188_v4 = vpop.f32.mrf.mxu2  ;;  %2936 = vrcp.f32 %v2043_v13  ;;  %vm2049_vm15 = vweird.f32 %v2043_v13 }
 0x5ee   :  { %v2189_v7 = vadd.f32 %v2188_v4, %v6469_v60  ;;  %2938 = vpow2.f32 %v2791_v45 }
 0x5ef   :  { %v2128_v1 = vpop.f32.mrf.mxu1 }
 0x5f0   :  { %v2129_v34 = vadd.f32 %v2128_v1, %v6467_v51 }
 0x5f2   :  { %v2231_v48 = vadd.f32 %v2189_v7, %v2129_v34 }
 0x5f3   :  { %v2937_v46 = vpop.eup %2936 }
 0x5f4   :  { %v2796_v20 = vmul.f32 -1.442695, %v2231_v48  ;;  %v2939_v51 = vpop.eup %2938  ;;  %v2045_v50 = vmul.f32 %v2937_v46, %v2043_v13  ;;  %vm2050_vm14 = vweird.f32 %v2937_v46 }
 0x5f5   :  { %v5395_v4 = vadd.f32 1.0, %v2939_v51  ;;  %vm2051_vm1 = vmor %vm2049_vm15, %vm2050_vm14 }
 0x5f6   :  { %2940 = vpow2.f32 %v2796_v20  ;;  %v2046_v5 = vsub.f32 1.0, %v2045_v50  ;;  %v2017_v50 = vpop.f32.mrf.mxu3 }
 0x5f7   :  { %v5391_v58 = vpop.f32.mrf.mxu1  ;;  %vm2068_vm7 = vweird.f32 %v5395_v4 }
 0x5f8   :  { %v2047_v20 = vmul.f32 %v2937_v46, %v2046_v5 }
 0x5fa   :  { %v2048_v45 = vadd.f32 %v2937_v46, %v2047_v20 }
 0x5fc   :  { %v2941_v22 = vpop.eup %2940  ;;  %v2052_v5 = vsel %vm2051_vm1, %v2937_v46, %v2048_v45 }
 0x5fd   :  { %v5397_v7 = vadd.f32 1.0, %v2941_v22  ;;  %v2053_v22 = vand.u32 2147483647, %v2043_v13 }
 0x5fe   :  { %v2208_v46 = vpop.f32.mrf.mxu3 }
 0x5ff   :  { %vm2054_vm2 = vcmp.eq.f32.partialorder %v2053_v22, 8.507059e+37  ;;  %vm2241_vm11 = vweird.f32 %v5397_v7 }
 0x60f   :  { %v2168_v8 = vpop.f32.mrf.mxu1 }
 0x610   :  { %v2169_v1 = vadd.f32 %v2168_v8, %v6471_v53  ;;  %v2055_v8 = vand.u32 2147483648, %v2043_v13 }
 0x612   :  { %v2211_v61 = vadd.f32 %v2169_v1, %v2109_v31  ;;  %v2037_v31 = vpop.f32.mrf.mxu0 }
 0x614   :  { %v2795_v34 = vmul.f32 -1.442695, %v2211_v61  ;;  %v6472_v61 = vld [vmem:[#allocation74_spill] sm:$0xff] }
 0x616   :  { %2942 = vpow2.f32 %v2795_v34  ;;  %v2038_v34 = vadd.f32 %v2037_v31, %v6472_v61  ;;  %v2018_v31 = vadd.f32 %v2017_v50, %v4112_v10 }
 0x617   :  { %2944 = vrcp.f32 %v5395_v4 }
 0x618   :  { %2946 = vrcp.f32 %v5397_v7  ;;  %v2078_v56 = vadd.f32 %v4872_v14, %v2038_v34 }
 0x61c   :  { %v2943_v42 = vpop.eup %2942 }
 0x61d   :  { %v2215_v40 = vadd.f32 1.0, %v2943_v42  ;;  %v5401_v48 = vpop.eup %2944  ;;  %v2056_v42 = vor.u32 1.1754944e-38, %v2055_v8 }
 0x61e   :  { %v5403_v51 = vpop.eup %2946  ;;  %v2064_v1 = vmul.f32 %v5401_v48, %v5395_v4  ;;  %vm2069_vm5 = vweird.f32 %v5401_v48 }
 0x61f   :  { %2948 = vrcp.f32 %v2215_v40  ;;  %v2237_v20 = vmul.f32 %v5403_v51, %v5397_v7  ;;  %v2057_v60 = vsel %vm2054_vm2, %v2056_v42, %v2052_v5  ;;  %v2227_v0 = vand.u32 2147483648, %v2215_v40  ;;  %vm2070_vm10 = vmor %vm2068_vm7, %vm2069_vm5 }
 0x620   :  { %v2065_v55 = vsub.f32 1.0, %v2064_v1  ;;  %v2079_v13 = vmul.f32 %v2078_v56, %v2057_v60  ;;  %v2225_v8 = vand.u32 2147483647, %v2215_v40  ;;  %vm2221_vm4 = vweird.f32 %v2215_v40 }
 0x621   :  { %v2238_v32 = vsub.f32 1.0, %v2237_v20  ;;  %v2209_v60 = vadd.f32 %v2208_v46, %v6094_v28  ;;  %v2074_v56 = vand.u32 2147483648, %v5395_v4  ;;  %vm2242_vm9 = vweird.f32 %v5403_v51 }
 0x622   :  { %v2066_v15 = vmul.f32 %v5401_v48, %v2065_v55  ;;  %v2080_v61 = vadd.f32 %v2079_v13, %v2018_v31  ;;  %vm2226_vm8 = vcmp.eq.f32.partialorder %v2225_v8, 8.507059e+37  ;;  %v2072_v55 = vand.u32 2147483647, %v5395_v4  ;;  %vm2243_vm12 = vmor %vm2241_vm11, %vm2242_vm9 }
 0x623   :  { %v2239_v22 = vmul.f32 %v5403_v51, %v2238_v32  ;;  %v2075_v4 = vor.u32 1.1754944e-38, %v2074_v56  ;;  %v6506_v56 = vld [vmem:[#allocation44_spill] sm:$0xff] }
 0x624   :  { %v2067_v14 = vadd.f32 %v5401_v48, %v2066_v15  ;;  %2950 = vtanh.f32 %v2080_v61  ;;  %v2247_v15 = vand.u32 2147483648, %v5397_v7  ;;  %vm2073_vm13 = vcmp.eq.f32.partialorder %v2072_v55, 8.507059e+37  ;;  %v6508_v55 = vld [vmem:[#allocation50_spill] sm:$0xff] }
 0x625   :  { %v2949_v53 = vpop.eup %2948  ;;  %v2240_v32 = vadd.f32 %v5403_v51, %v2239_v22 }
 0x626   :  { %v2217_v25 = vmul.f32 %v2949_v53, %v2215_v40  ;;  %vm2222_vm3 = vweird.f32 %v2949_v53  ;;  %v2071_v34 = vsel %vm2070_vm10, %v5401_v48, %v2067_v14  ;;  %v2248_v61 = vor.u32 1.1754944e-38, %v2247_v15  ;;  %v6509_v15 = vld [vmem:[#allocation70_spill] sm:$0xff] }
 0x627   :  { %vm2223_vm6 = vmor %vm2221_vm4, %vm2222_vm3  ;;  %v2244_v42 = vsel %vm2243_vm12, %v5403_v51, %v2240_v32  ;;  %v2076_v20 = vsel %vm2073_vm13, %v2075_v4, %v2071_v34 }
 0x628   :  { %v2218_v3 = vsub.f32 1.0, %v2217_v25  ;;  %v2228_v25 = vor.u32 1.1754944e-38, %v2227_v0  ;;  %v2149_v0 = vadd.f32 %v5391_v58, %v3928_v27  ;;  %v2082_v58 = vsub.f32 1.0, %v2076_v20 }
 0x62a   :  { %v2219_v45 = vmul.f32 %v2949_v53, %v2218_v3  ;;  %v2951_v13 = vpop.eup %2950 }
 0x62b   :  { %v2083_v46 = vmul.f32 %v2951_v13, %v2082_v58 }
 0x62c   :  { %v2220_v1 = vadd.f32 %v2949_v53, %v2219_v45 }
 0x62e   :  { %v2224_v3 = vsel %vm2223_vm6, %v2949_v53, %v2220_v1  ;;  %v2245_v53 = vand.u32 2147483647, %v5397_v7  ;;  %v2084_v7 = vmul.f32 %v2076_v20, %v5212_v57  ;;  %v2386_v57 = vld [vmem:[#allocation4 + $0xe] sm:$0x3] }
 0x62f   :  { %v2229_v40 = vsel %vm2226_vm8, %v2228_v25, %v2224_v3  ;;  %v6505_v25 = vld [vmem:[#allocation42_spill] sm:$0xff]  ;;  %v6507_v3 = vld [vmem:[#allocation47_spill] sm:$0xff] }
 0x630   :  { %v2251_v50 = vmul.f32 %v2229_v40, %v2209_v60  ;;  %vm2246_vm14 = vcmp.eq.f32.partialorder %v2245_v53, 8.507059e+37  ;;  %v5431_v1 = vadd.f32 %v2084_v7, %v2083_v46  ;;  %v6504_v60 = vld [vmem:[#allocation40_spill] sm:$0xff] }
 0x631   :  { %v2249_v31 = vsel %vm2246_vm14, %v2248_v61, %v2244_v42  ;;  %v6511_v61 = vld [vmem:[#allocation72_spill] sm:$0xff] }
 0x632   :  { %v2252_v5 = vadd.f32 %v2251_v50, %v2149_v0  ;;  %v2254_v45 = vsub.f32 1.0, %v2249_v31  ;;  %v2256_v8 = vmul.f32 %v2249_v31, %v5214_v63  ;;  %v6479_v63 = vld [vmem:[#allocation22_spill] sm:$0xff]  ;;  %v6512_v31 = vld [vmem:[#allocation96_spill] sm:$0xff] }
 0x634   :  { %2952 = vtanh.f32 %v2252_v5  ;;  %v6510_v5 = vld [vmem:[#allocation91_spill] sm:$0xff] }
 0x63a   :  { %v2953_v48 = vpop.eup %2952 }
 0x63b   :  { %v2255_v22 = vmul.f32 %v2953_v48, %v2254_v45 }
 0x63d   :  { %v5433_v14 = vadd.f32 %v2256_v8, %v2255_v22 }
 0x63f   :  { %v2258_v51 = vadd.f32 %v5433_v14, %v5431_v1 }
 0x641   :  { %2275 = vmatmul.f32.vlgmr.msrb.gmra.mxu0 %v2258_v51  ;;  %2295 = vmatmul.f32.vlgmr.msra.gmra.mxu1 %v2258_v51 }
 0x642   :  { %2315 = vmatmul.f32.vlgmr.msra.gmra.mxu2 %v2258_v51  ;;  %2335 = vmatmul.f32.vlgmr.msrb.gmra.mxu3 %v2258_v51 }
 0x643   :  { %2425 = vmatpush.msrb.mxu0 %v4907_v21  ;;  %2598 = vmatpush.msra.mxu1 %v5219_v54  ;;  %v6473_v21 = vld [vmem:[#allocation112_spill] sm:$0xff]  ;;  %v6480_v54 = vld [vmem:[#allocation77_spill] sm:$0xff] }
 0x644   :  { %2618 = vmatpush.msra.mxu2 %v5222_v41  ;;  %v6482_v41 = vld [vmem:[#allocation39_spill] sm:$0xff] }
 0x645   :  { %2599 = vmatpush.msra.mxu1 %v5226_v16  ;;  %v6483_v16 = vld [vmem:[#allocation79_spill] sm:$0xff] }
 0x646   :  { %2619 = vmatpush.msra.mxu2 %v5229_v37  ;;  %v6484_v37 = vld [vmem:[#allocation81_spill] sm:$0xff] }
 0x647   :  { %2600 = vmatpush.msra.mxu1 %v5232_v52  ;;  %v6485_v52 = vld [vmem:[#allocation41_spill] sm:$0xff] }
 0x648   :  { %2620 = vmatpush.msra.mxu2 %v5235_v38  ;;  %v6486_v38 = vld [vmem:[#allocation83_spill] sm:$0xff] }
 0x649   :  { %2799 = vmatmul.msk.f32.vlgmr.msra.gmra.mxu0 %vm181_vm0, %v2386_v57  ;;  %2486 = vmatmul.f32.vlgmr.msrb.gmra.mxu1 %v5433_v14 }
 0x64a   :  { %2506 = vmatmul.f32.vlgmr.msrb.gmra.mxu2 %v5433_v14  ;;  %2445 = vmatpush.msra.mxu0 %v4922_v49  ;;  %v6474_v49 = vld [vmem:[#allocation73_spill] sm:$0xff] }
 0x64b   :  { %2601 = vmatpush.msra.mxu1 %v5242_v11  ;;  %2621 = vmatpush.msra.mxu2 %v5245_v26  ;;  %v6487_v11 = vld [vmem:[#allocation76_spill] sm:$0xff]  ;;  %v6488_v26 = vld [vmem:[#allocation43_spill] sm:$0xff] }
 0x64d   :  { %2602 = vmatpush.msra.mxu1 %v5248_v9  ;;  %2622 = vmatpush.msra.mxu2 %v5251_v19  ;;  %v6489_v9 = vld [vmem:[#allocation45_spill] sm:$0xff]  ;;  %v6490_v19 = vld [vmem:[#allocation23_spill] sm:$0xff] }
 0x64f   :  { %2603 = vmatpush.msra.mxu1 %v5254_v39  ;;  %2623 = vmatpush.msra.mxu2 %v5257_v43  ;;  %v6491_v39 = vld [vmem:[#allocation48_spill] sm:$0xff]  ;;  %v6492_v43 = vld [vmem:[#allocation51_spill] sm:$0xff] }
 0x651   :  { %2800 = vmatmul.msk.f32.vlgmr.msrb.gmra.mxu0 %vm181_vm0, %v2386_v57  ;;  %2604 = vmatpush.msra.mxu1 %v5261_v30  ;;  %v6493_v30 = vld [vmem:[#allocation78_spill] sm:$0xff] }
 0x652   :  { %2450 = vmatpush.msrb.mxu0 %v4933_v44  ;;  %2624 = vmatpush.msra.mxu2 %v5265_v12  ;;  %v6475_v44 = vld [vmem:[#allocation62_spill] sm:$0xff] }
 0x653   :  { %2605 = vmatpush.msra.mxu1 %v5268_v33  ;;  %v6494_v12 = vld [vmem:[#allocation54_spill] sm:$0xff]  ;;  %v6495_v33 = vld [vmem:[#allocation57_spill] sm:$0xff] }
 0x654   :  { %2451 = vmatpush.msrb.mxu0 %v4938_v47  ;;  %2625 = vmatpush.msra.mxu2 %v5272_v23  ;;  %v6476_v47 = vld [vmem:[#allocation37_spill] sm:$0xff]  ;;  %v6496_v23 = vld [vmem:[#allocation80_spill] sm:$0xff] }
 0x655   :  { %2606 = vmatpush.msra.mxu1 %v5275_v18  ;;  %v6497_v18 = vld [vmem:[#allocation28_spill] sm:$0xff] }
 0x656   :  { %2452 = vmatpush.msrb.mxu0 %v4943_v36  ;;  %2626 = vmatpush.msra.mxu2 %v5279_v2  ;;  %v6477_v36 = vld [vmem:[#allocation75_spill] sm:$0xff]  ;;  %v6498_v2 = vld [vmem:[#allocation30_spill] sm:$0xff] }
 0x657   :  { %2607 = vmatpush.msra.mxu1 %v5282_v59  ;;  %v6499_v59 = vld [vmem:[#allocation32_spill] sm:$0xff] }
 0x658   :  { %2453 = vmatpush.msrb.mxu0 %v4948_v29  ;;  %2627 = vmatpush.msra.mxu2 %v5286_v62  ;;  %v6478_v29 = vld [vmem:[#allocation63_spill] sm:$0xff]  ;;  %v6500_v62 = vld [vmem:[#allocation34_spill] sm:$0xff] }
 0x659   :  { %2801 = vmatmul.msk.f32.vlgmr.msra.gmra.mxu0 %vm181_vm0, %v2386_v57  ;;  %2608 = vmatpush.msra.mxu1 %v5290_v6  ;;  %v6501_v6 = vld [vmem:[#allocation36_spill] sm:$0xff]  ;;  %v6513_v57 = vld [vmem:[#allocation101_spill] sm:$0xff] }
 0x65a   :  { %2454 = vmatpush.msrb.mxu0 %v4954_v35  ;;  %2628 = vmatpush.msra.mxu2 %v5294_v17  ;;  %v6481_v35 = vld [vmem:[#allocation64_spill] sm:$0xff]  ;;  %v6502_v17 = vld [vmem:[#allocation38_spill] sm:$0xff] }
 0x65b   :  { %2609 = vmatpush.msra.mxu1 %v5297_v24  ;;  %v6503_v24 = vld [vmem:[#allocation98_spill] sm:$0xff] }
 0x65c   :  { %2455 = vmatpush.msrb.mxu0 %v6473_v21  ;;  %2629 = vmatpush.msra.mxu2 %v6474_v49  ;;  %v6514_v49 = vld [vmem:[#allocation102_spill] sm:$0xff] }
 0x65d   :  { %2610 = vmatpush.msra.mxu1 %v6475_v44 }
 0x65e   :  { %2456 = vmatpush.msrb.mxu0 %v6476_v47  ;;  %2630 = vmatpush.msra.mxu2 %v6477_v36 }
 0x65f   :  { %2611 = vmatpush.msra.mxu1 %v6478_v29 }
 0x660   :  { %2457 = vmatpush.msrb.mxu0 %v6479_v63  ;;  %2631 = vmatpush.msra.mxu2 %v6480_v54 }
 0x661   :  { %2612 = vmatpush.msra.mxu1 %v6481_v35 }
 0x662   :  { %2458 = vmatpush.msrb.mxu0 %v6482_v41  ;;  %2632 = vmatpush.msra.mxu2 %v6483_v16 }
 0x663   :  { %2613 = vmatpush.msra.mxu1 %v6484_v37 }
 0x664   :  { %2459 = vmatpush.msrb.mxu0 %v6485_v52  ;;  %2633 = vmatpush.msra.mxu2 %v6486_v38 }
 0x666   :  { %2460 = vmatpush.msrb.mxu0 %v6487_v11 }
 0x668   :  { %2461 = vmatpush.msrb.mxu0 %v6488_v26 }
 0x66a   :  { %2462 = vmatpush.msrb.mxu0 %v6489_v9 }
 0x66c   :  { %2463 = vmatpush.msrb.mxu0 %v6490_v19 }
 0x66e   :  { %2464 = vmatpush.msrb.mxu0 %v6491_v39 }
 0x670   :  { %2465 = vmatpush.msrb.mxu0 %v6492_v43 }
 0x671   :  { %2466 = vmatmul.f32.vlgmr.msrb.gmra.mxu0 %v5433_v14 }
 0x672   :  { %2578 = vmatpush.msra.mxu0 %v6493_v30 }
 0x674   :  { %2579 = vmatpush.msra.mxu0 %v6494_v12 }
 0x676   :  { %2580 = vmatpush.msra.mxu0 %v6495_v33  ;;  %v6515_v33 = vld [vmem:[#allocation74_spill] sm:$0xff] }
 0x678   :  { %2581 = vmatpush.msra.mxu0 %v6496_v23 }
 0x67a   :  { %2582 = vmatpush.msra.mxu0 %v6497_v18 }
 0x67c   :  { %2583 = vmatpush.msra.mxu0 %v6498_v2 }
 0x67e   :  { %2584 = vmatpush.msra.mxu0 %v6499_v59 }
 0x680   :  { %2585 = vmatpush.msra.mxu0 %v6500_v62 }
 0x682   :  { %2586 = vmatpush.msra.mxu0 %v6501_v6 }
 0x684   :  { %2587 = vmatpush.msra.mxu0 %v6502_v17 }
 0x686   :  { %2588 = vmatpush.msra.mxu0 %v6503_v24  ;;  %v5535_v24 = vld [vmem:[%s5580_s7] ss:$0 sm:$0xff] }
 0x688   :  { %2589 = vmatpush.msra.mxu0 %v6504_v60 }
 0x68a   :  { %2590 = vmatpush.msra.mxu0 %v6505_v25 }
 0x68c   :  { %2591 = vmatpush.msra.mxu0 %v6506_v56 }
 0x68e   :  { %2592 = vmatpush.msra.mxu0 %v6507_v3 }
 0x690   :  { %2593 = vmatpush.msra.mxu0 %v6508_v55 }
 0x6be   :  { %v2276_v32 = vpop.f32.mrf.mxu0  ;;  %v2296_v50 = vpop.f32.mrf.mxu1 }
 0x6bf   :  { %v2277_v0 = vadd.f32 %v2276_v32, %v6509_v15  ;;  %v2297_v13 = vadd.f32 %v2296_v50, %v6511_v61 }
 0x6c1   :  { %v2797_v34 = vmul.f32 -1.442695, %v2277_v0  ;;  %v2798_v8 = vmul.f32 -1.442695, %v2297_v13 }
 0x6c3   :  { %2954 = vpow2.f32 %v2797_v34 }
 0x6c5   :  { %v2336_v9 = vpop.f32.mrf.mxu3  ;;  %v2316_v12 = vpop.f32.mrf.mxu2 }
 0x6c6   :  { %v2407_v40 = vpop.f32.mrf.mxu0  ;;  %v2487_v4 = vpop.f32.mrf.mxu1  ;;  %v2337_v23 = vadd.f32 %v2336_v9, %v6515_v33  ;;  %v2317_v0 = vadd.f32 %v2316_v12, %v4112_v10  ;;  %v2704_v9 = vld [vmem:[#allocation15 + $0x78] sm:$0xff] }
 0x6c7   :  { %v2488_v58 = vadd.f32 %v2487_v4, %v6512_v31  ;;  %v2408_v21 = vadd.f32 %v2407_v40, %v6513_v57  ;;  %2709 = vmatpush.msrb.mxu3 %v2704_v9 }
 0x6c8   :  { %v2377_v60 = vadd.f32 %v5535_v24, %v2337_v23  ;;  %v2698_v23 = vld [vmem:[#allocation15 + $0x48] sm:$0xff] }
 0x6c9   :  { %v2955_v20 = vpop.eup %2954 }
 0x6ca   :  { %v2342_v46 = vadd.f32 1.0, %v2955_v20 }
 0x6cc   :  { %2956 = vrcp.f32 %v2342_v46  ;;  %v2354_v19 = vand.u32 2147483648, %v2342_v46  ;;  %vm2348_vm15 = vweird.f32 %v2342_v46  ;;  %v2352_v43 = vand.u32 2147483647, %v2342_v46 }
 0x6cd   :  { %2958 = vpow2.f32 %v2798_v8 }
 0x6ce   :  { %v2427_v53 = vpop.f32.mrf.mxu0  ;;  %v2355_v2 = vor.u32 1.1754944e-38, %v2354_v19  ;;  %vm2353_vm2 = vcmp.eq.f32.partialorder %v2352_v43, 8.507059e+37  ;;  %v2703_v19 = vld [vmem:[#allocation15 + $0x70] sm:$0xff]  ;;  %v2700_v43 = vld [vmem:[#allocation15 + $0x58] sm:$0xff] }
 0x6cf   :  { %v2428_v42 = vadd.f32 %v2427_v53, %v6510_v5  ;;  %v2507_v53 = vpop.f32.mrf.mxu2  ;;  %2710 = vmatpush.msrb.mxu3 %v2703_v19 }
 0x6d1   :  { %v2530_v45 = vadd.f32 %v2488_v58, %v2428_v42  ;;  %v2508_v58 = vadd.f32 %v2507_v53, %v6094_v28 }
 0x6d2   :  { %v2957_v22 = vpop.eup %2956 }
 0x6d3   :  { %v2803_v7 = vmul.f32 -1.442695, %v2530_v45  ;;  %v2959_v47 = vpop.eup %2958  ;;  %v2344_v36 = vmul.f32 %v2957_v22, %v2342_v46  ;;  %vm2349_vm0 = vweird.f32 %v2957_v22 }
 0x6d4   :  { %v5517_v54 = vadd.f32 1.0, %v2959_v47  ;;  %vm2350_vm1 = vmor %vm2348_vm15, %vm2349_vm0 }
 0x6d5   :  { %2960 = vpow2.f32 %v2803_v7  ;;  %v2345_v41 = vsub.f32 1.0, %v2344_v36 }
 0x6d6   :  { %v5513_v48 = vpop.f32.mrf.mxu0  ;;  %vm2367_vm5 = vweird.f32 %v5517_v54  ;;  %v2373_v31 = vand.u32 2147483648, %v5517_v54  ;;  %v2371_v8 = vand.u32 2147483647, %v5517_v54 }
 0x6d7   :  { %v2346_v37 = vmul.f32 %v2957_v22, %v2345_v41 }
 0x6d8   :  { %vm2372_vm13 = vcmp.eq.f32.partialorder %v2371_v8, 8.507059e+37 }
 0x6d9   :  { %v2347_v26 = vadd.f32 %v2957_v22, %v2346_v37 }
 0x6db   :  { %v2961_v63 = vpop.eup %2960  ;;  %v2351_v18 = vsel %vm2350_vm1, %v2957_v22, %v2347_v26  ;;  %v2448_v22 = vadd.f32 %v5513_v48, %v3928_v27 }
 0x6dc   :  { %v5519_v16 = vadd.f32 1.0, %v2961_v63  ;;  %v2356_v17 = vsel %vm2353_vm2, %v2355_v2, %v2351_v18  ;;  %v2697_v2 = vld [vmem:[#allocation15 + $0x40] sm:$0xff] }
 0x6dd   :  { %v2378_v3 = vmul.f32 %v2377_v60, %v2356_v17  ;;  %v2695_v17 = vld [vmem:[#allocation15 + $0x30] sm:$0xff] }
 0x6de   :  { %vm2540_vm11 = vweird.f32 %v5519_v16 }
 0x6df   :  { %v2379_v5 = vadd.f32 %v2378_v3, %v2317_v0 }
 0x6ee   :  { %v2467_v51 = vpop.f32.mrf.mxu0 }
 0x6ef   :  { %v2468_v44 = vadd.f32 %v2467_v51, %v6514_v49  ;;  %v2546_v51 = vand.u32 2147483648, %v5519_v16  ;;  %v2374_v49 = vor.u32 1.1754944e-38, %v2373_v31 }
 0x6f1   :  { %v2510_v29 = vadd.f32 %v2468_v44, %v2408_v21  ;;  %v2544_v21 = vand.u32 2147483647, %v5519_v16 }
 0x6f3   :  { %v2802_v35 = vmul.f32 -1.442695, %v2510_v29  ;;  %v2547_v29 = vor.u32 1.1754944e-38, %v2546_v51  ;;  %vm2545_vm14 = vcmp.eq.f32.partialorder %v2544_v21, 8.507059e+37 }
 0x6f5   :  { %2962 = vpow2.f32 %v2802_v35 }
 0x6f6   :  { %2964 = vrcp.f32 %v5517_v54 }
 0x6f7   :  { %2966 = vrcp.f32 %v5519_v16 }
 0x6fb   :  { %v2963_v52 = vpop.eup %2962 }
 0x6fc   :  { %v2514_v38 = vadd.f32 1.0, %v2963_v52  ;;  %v5523_v11 = vpop.eup %2964 }
 0x6fd   :  { %v5525_v39 = vpop.eup %2966  ;;  %v2363_v30 = vmul.f32 %v5523_v11, %v5517_v54  ;;  %vm2368_vm6 = vweird.f32 %v5523_v11 }
 0x6fe   :  { %2968 = vrcp.f32 %v2514_v38  ;;  %v2536_v59 = vmul.f32 %v5525_v39, %v5519_v16  ;;  %v2526_v40 = vand.u32 2147483648, %v2514_v38  ;;  %v2524_v34 = vand.u32 2147483647, %v2514_v38  ;;  %vm2369_vm10 = vmor %vm2367_vm5, %vm2368_vm6 }
 0x6ff   :  { %v2364_v6 = vsub.f32 1.0, %v2363_v30  ;;  %vm2520_vm4 = vweird.f32 %v2514_v38  ;;  %vm2541_vm9 = vweird.f32 %v5525_v39  ;;  %2970 = vtanh.f32 %v2379_v5 }
 0x700   :  { %v2537_v56 = vsub.f32 1.0, %v2536_v59  ;;  %v2527_v20 = vor.u32 1.1754944e-38, %v2526_v40  ;;  %vm2525_vm8 = vcmp.eq.f32.partialorder %v2524_v34, 8.507059e+37  ;;  %vm2542_vm12 = vmor %vm2540_vm11, %vm2541_vm9  ;;  %v2696_v59 = vld [vmem:[#allocation15 + $0x38] sm:$0xff]  ;;  %v2690_v40 = vld [vmem:[#allocation15 + $0x8] sm:$0xff] }
 0x701   :  { %v2365_v32 = vmul.f32 %v5523_v11, %v2364_v6 }
 0x702   :  { %v2538_v4 = vmul.f32 %v5525_v39, %v2537_v56  ;;  %v2693_v56 = vld [vmem:[#allocation15 + $0x20] sm:$0xff] }
 0x703   :  { %v2366_v13 = vadd.f32 %v5523_v11, %v2365_v32  ;;  %v2691_v32 = vld [vmem:[#allocation15 + $0x10] sm:$0xff] }
 0x704   :  { %v2969_v62 = vpop.eup %2968  ;;  %v2539_v7 = vadd.f32 %v5525_v39, %v2538_v4 }
 0x705   :  { %v2516_v25 = vmul.f32 %v2969_v62, %v2514_v38  ;;  %vm2521_vm3 = vweird.f32 %v2969_v62  ;;  %v2370_v28 = vsel %vm2369_vm10, %v5523_v11, %v2366_v13  ;;  %v2971_v27 = vpop.eup %2970 }
 0x706   :  { %vm2522_vm7 = vmor %vm2520_vm4, %vm2521_vm3  ;;  %v2543_v47 = vsel %vm2542_vm12, %v5525_v39, %v2539_v7  ;;  %v2375_v36 = vsel %vm2372_vm13, %v2374_v49, %v2370_v28  ;;  %v2702_v39 = vld [vmem:[#allocation15 + $0x68] sm:$0xff] }
 0x707   :  { %v2517_v55 = vsub.f32 1.0, %v2516_v25  ;;  %v2548_v48 = vsel %vm2545_vm14, %v2547_v29, %v2543_v47  ;;  %v2381_v63 = vsub.f32 1.0, %v2375_v36  ;;  %v2383_v37 = vmul.f32 %v2375_v36, %v5431_v1  ;;  %2711 = vmatpush.msrb.mxu3 %v2702_v39  ;;  %v2701_v1 = vld [vmem:[#allocation15 + $0x60] sm:$0xff]  ;;  %v2694_v25 = vld [vmem:[#allocation15 + $0x28] sm:$0xff] }
 0x708   :  { %v2553_v35 = vsub.f32 1.0, %v2548_v48  ;;  %v2555_v16 = vmul.f32 %v2548_v48, %v5433_v14  ;;  %v2699_v14 = vld [vmem:[#allocation15 + $0x50] sm:$0xff] }
 0x709   :  { %v2518_v50 = vmul.f32 %v2969_v62, %v2517_v55  ;;  %v2382_v54 = vmul.f32 %v2971_v27, %v2381_v63  ;;  %2712 = vmatpush.msrb.mxu3 %v2701_v1 }
 0x70b   :  { %v2519_v42 = vadd.f32 %v2969_v62, %v2518_v50  ;;  %v5558_v38 = vadd.f32 %v2383_v37, %v2382_v54  ;;  %2713 = vmatpush.msrb.mxu3 %v2700_v43  ;;  %v2689_v50 = vld [vmem:[#allocation15] sm:$0xff] }
 0x70d   :  { %v2523_v46 = vsel %vm2522_vm7, %v2969_v62, %v2519_v42  ;;  %2714 = vmatpush.msrb.mxu3 %v2699_v14 }
 0x70e   :  { %v2528_v45 = vsel %vm2525_vm8, %v2527_v20, %v2523_v46 }
 0x70f   :  { %v2550_v57 = vmul.f32 %v2528_v45, %v2508_v58  ;;  %2715 = vmatpush.msrb.mxu3 %v2698_v23 }
 0x711   :  { %v2551_v44 = vadd.f32 %v2550_v57, %v2448_v22  ;;  %2716 = vmatpush.msrb.mxu3 %v2697_v2 }
 0x713   :  { %2972 = vtanh.f32 %v2551_v44  ;;  %2717 = vmatpush.msrb.mxu3 %v2696_v59 }
 0x715   :  { %2718 = vmatpush.msrb.mxu3 %v2695_v17 }
 0x717   :  { %2719 = vmatpush.msrb.mxu3 %v2694_v25 }
 0x719   :  { %v2973_v41 = vpop.eup %2972  ;;  %2720 = vmatpush.msrb.mxu3 %v2693_v56 }
 0x71a   :  { %v2554_v52 = vmul.f32 %v2973_v41, %v2553_v35 }
 0x71c   :  { %v2556_v11 = vadd.f32 %v2555_v16, %v2554_v52 }
 0x71e   :  { %v2557_v26 = vadd.f32 %v2556_v11, %v5558_v38  ;;  %2684 = vst [vmem:[#allocation2] sm:$0x3] %v2556_v11 }
 0x720   :  { %2574 = vmatmul.f32.vlgmr.msra.gmra.mxu3 %v2557_v26  ;;  %2594 = vmatmul.f32.vlgmr.msra.gmra.mxu0 %v2557_v26 }
 0x721   :  { %2614 = vmatmul.f32.vlgmr.msra.gmra.mxu1 %v2557_v26  ;;  %2634 = vmatmul.f32.vlgmr.msra.gmra.mxu2 %v2557_v26 }
 0x79d   :  { %v2595_v30 = vpop.f32.mrf.mxu0 }
 0x79e   :  { %v2596_v12 = vadd.f32 %v2595_v30, %v6511_v61  ;;  %v2692_v61 = vld [vmem:[#allocation15 + $0x18] sm:$0xff]  ;;  %v2615_v22 = vpop.f32.mrf.mxu1 }
 0x79f   :  { %2721 = vmatpush.msrb.mxu3 %v2692_v61  ;;  %v2616_v44 = vadd.f32 %v2615_v22, %v4112_v10  ;;  %v2823_v10 = vld [vmem:[%s5582_s9] ss:$0 sm:$0xff] }
 0x7a0   :  { %v2805_v18 = vmul.f32 -1.442695, %v2596_v12 }
 0x7a1   :  { %2722 = vmatpush.msrb.mxu3 %v2691_v32 }
 0x7a2   :  { %2974 = vpow2.f32 %v2805_v18 }
 0x7a3   :  { %v2575_v62 = vpop.f32.mrf.mxu3  ;;  %2723 = vmatpush.msrb.mxu3 %v2690_v40 }
 0x7a4   :  { %v2576_v6 = vadd.f32 %v2575_v62, %v6509_v15  ;;  %v2635_v20 = vpop.f32.mrf.mxu2 }
 0x7a5   :  { %2724 = vmatpush.msrb.mxu3 %v2689_v50  ;;  %v2636_v58 = vadd.f32 %v2635_v20, %v6515_v33 }
 0x7a6   :  { %v2804_v60 = vmul.f32 -1.442695, %v2576_v6 }
 0x7a7   :  { %v2676_v28 = vadd.f32 %v5535_v24, %v2636_v58 }
 0x7a8   :  { %v2975_v3 = vpop.eup %2974  ;;  %2976 = vpow2.f32 %v2804_v60 }
 0x7a9   :  { %v2660_v55 = vadd.f32 1.0, %v2975_v3 }
 0x7ab   :  { %2978 = vrcp.f32 %v2660_v55  ;;  %v2672_v33 = vand.u32 2147483648, %v2660_v55  ;;  %vm2666_vm4 = vweird.f32 %v2660_v55  ;;  %v2670_v36 = vand.u32 2147483647, %v2660_v55 }
 0x7ad   :  { %v2673_v48 = vor.u32 1.1754944e-38, %v2672_v33  ;;  %vm2671_vm6 = vcmp.eq.f32.partialorder %v2670_v36, 8.507059e+37 }
 0x7ae   :  { %v2977_v0 = vpop.eup %2976 }
 0x7af   :  { %v2641_v34 = vadd.f32 1.0, %v2977_v0 }
 0x7b1   :  { %2980 = vrcp.f32 %v2641_v34  ;;  %v2979_v15 = vpop.eup %2978  ;;  %v2653_v31 = vand.u32 2147483648, %v2641_v34  ;;  %v2651_v45 = vand.u32 2147483647, %v2641_v34  ;;  %vm2647_vm15 = vweird.f32 %v2641_v34 }
 0x7b2   :  { %v2662_v53 = vmul.f32 %v2979_v15, %v2660_v55  ;;  %vm2667_vm3 = vweird.f32 %v2979_v15 }
 0x7b3   :  { %v2654_v51 = vor.u32 1.1754944e-38, %v2653_v31  ;;  %vm2652_vm2 = vcmp.eq.f32.partialorder %v2651_v45, 8.507059e+37  ;;  %vm2668_vm5 = vmor %vm2666_vm4, %vm2667_vm3 }
 0x7b4   :  { %v2663_v42 = vsub.f32 1.0, %v2662_v53 }
 0x7b6   :  { %v2664_v8 = vmul.f32 %v2979_v15, %v2663_v42 }
 0x7b7   :  { %v2981_v4 = vpop.eup %2980 }
 0x7b8   :  { %v2643_v5 = vmul.f32 %v2981_v4, %v2641_v34  ;;  %vm2648_vm0 = vweird.f32 %v2981_v4  ;;  %v2665_v49 = vadd.f32 %v2979_v15, %v2664_v8 }
 0x7b9   :  { %vm2649_vm1 = vmor %vm2647_vm15, %vm2648_vm0 }
 0x7ba   :  { %v2644_v13 = vsub.f32 1.0, %v2643_v5  ;;  %v2669_v27 = vsel %vm2668_vm5, %v2979_v15, %v2665_v49 }
 0x7bb   :  { %v2674_v63 = vsel %vm2671_vm6, %v2673_v48, %v2669_v27 }
 0x7bc   :  { %v2645_v46 = vmul.f32 %v2981_v4, %v2644_v13  ;;  %v2680_v54 = vsub.f32 1.0, %v2674_v63  ;;  %v2682_v24 = vmul.f32 %v2674_v63, %v5558_v38 }
 0x7be   :  { %v2646_v7 = vadd.f32 %v2981_v4, %v2645_v46 }
 0x7c0   :  { %v2650_v57 = vsel %vm2649_vm1, %v2981_v4, %v2646_v7 }
 0x7c1   :  { %v2655_v21 = vsel %vm2652_vm2, %v2654_v51, %v2650_v57 }
 0x7c2   :  { %v2677_v47 = vmul.f32 %v2676_v28, %v2655_v21 }
 0x7c4   :  { %v2678_v29 = vadd.f32 %v2677_v47, %v2616_v44 }
 0x7c6   :  { %2982 = vtanh.f32 %v2678_v29 }
 0x7cc   :  { %v2983_v35 = vpop.eup %2982 }
 0x7cd   :  { %v2681_v41 = vmul.f32 %v2983_v35, %v2680_v54 }
 0x7cf   :  { %v2683_v37 = vadd.f32 %v2682_v24, %v2681_v41 }
 0x7d1   :  { %2685 = vst [vmem:[#allocation3] sm:$0x3] %v2683_v37  ;;  %2725 = vmatmul.f32.vlgmr.msrb.gmra.mxu3 %v2683_v37 }
 0x854   :  { %v2726_v52 = vpop.f32.mrf.mxu3 }
 0x855   :  { %v2727_v16 = vadd.f32 %v2823_v10, %v2726_v52 }
 0x857   :  { %2729 = vst [vmem:[#allocation16] sm:$0x3] %v2727_v16 }
 0x858   :  { %2740 = dma.vmem_to_hbm [thread:$0]  %s2736_s15, 32, %s2738_s5, [#allocation6]  }
 0x859   :  { %3416 = dma.done.wait [#allocation6], 32  }
 0x85a   :  { %3417 = vsyncadd [#allocation6], 4294967264 }
 0x85b   :  { %2745 = vsyncpa [#allocation5], 1 }
 0x85c   :  { %2746 = vsyncpa [#allocation8], 1 }
 0x85d   :  { %2747 = vsyncpa [#allocation11], 1 }
 0x85e   :  { %2748 = vsyncpa [#allocation14], 1 }
 0x85f   :  { %2749 = vsyncpa [#allocation6], 1 }

</bundles_post_ra>
